<compile_context>
chip_gen: v6e
topology: v6e:2x2x1
jax: 0.10.0
libtpu: 0.0.40
codegen_flags: <defaults>
</compile_context>

<pallas_src>
import functools
import math

import numpy as np
import jax
import jax.numpy as jnp
from jax import lax
from jax.experimental import pallas as pl
from jax.experimental.pallas import tpu as pltpu

ACT = "tanh"      # config.act = 'tanh'
LN_EPS = 1e-5     # torch nn.LayerNorm default


def _apply_act(x, act):
    if act == "tanh":
        return jnp.tanh(x)
    if act == "relu":
        return jnp.maximum(x, 0.0)
    if act == "sigmoid":
        return jax.nn.sigmoid(x)
    if act == "gelu":
        return jax.nn.gelu(x, approximate=False)
    raise NotImplementedError(act)


# --------------------------- trace-time constants ----------------------------

def _block_diag_ones(C, nh):
    """[C, C] f32 with ones on the per-head (hd x hd) diagonal blocks.

    p @ ones_bd is the per-head segmented row-sum broadcast back to [.., C]; it also serves as
    the block-diagonal mask for the k^T v context.  Built with NumPy at trace time so no
    iota/compare work is replayed inside the kernel.
    """
    hd = C // nh
    return jnp.asarray(np.kron(np.eye(nh, dtype=np.float32),
                               np.ones((hd, hd), np.float32)))


def _expert_expand(E, I):
    """[E, E*I] f32 block one-hot: gate @ expand broadcasts each expert's gate over its slice."""
    return jnp.asarray(np.kron(np.eye(E, dtype=np.float32),
                               np.ones((1, I), np.float32)))


# ------------------------- in-kernel math helpers ----------------------------

def _mm(a, w_ref):
    """bf16 x bf16 MXU matmul with f32 accumulation (weights are stored bf16 by pack_params)."""
    w = w_ref[...]
    return jnp.dot(a.astype(w.dtype), w, preferred_element_type=jnp.float32)


def _layernorm(x, g, b, eps):
    mu = jnp.mean(x, axis=-1, keepdims=True)
    var = jnp.mean(jnp.square(x - mu), axis=-1, keepdims=True)
    return (x - mu) * lax.rsqrt(var + eps) * g + b


def _head_softmax(z, ones_bd):
    """Softmax over each contiguous head block of the last axis (z:[M, C]).

    Row-max subtraction is shift-invariant per head block, so one lane reduce suffices; the
    per-head denominator is a single [M,C]x[C,C] matmul against the block-diagonal ones matrix.
    """
    z = z - jnp.max(z, axis=-1, keepdims=True)
    e = jnp.exp(z)
    denom = jnp.dot(e, ones_bd, preferred_element_type=jnp.float32)
    return e * pl.reciprocal(denom, approx=True)


def _l1_attention(q_s, k_s, v, ones_bd):
    """One 'l1' linear-attention term  (q @ (k^T v)) * D_inv  for a [Bb, T, C] block."""
    Bb, T1, C = q_s.shape
    k_cum = jnp.sum(k_s, axis=1, keepdims=True)                                   # [Bb,1,C]
    d = jnp.dot((q_s * k_cum).reshape(Bb * T1, C), ones_bd,
                preferred_element_type=jnp.float32)                               # segmented sum
    d_inv = pl.reciprocal(d, approx=True).reshape(Bb, T1, C)
    ctx = jnp.einsum("btc,btd->bcd",
                     k_s.astype(jnp.bfloat16), v.astype(jnp.bfloat16),
                     preferred_element_type=jnp.float32)                          # [Bb,C,C]
    ctx = (ctx * ones_bd).astype(jnp.bfloat16)                                    # per-head blocks
    att = jnp.einsum("btc,bcd->btd", q_s.astype(jnp.bfloat16), ctx,
                     preferred_element_type=jnp.float32)
    return att * d_inv


def _gate_mlp(pos2, gw, act):
    """pos2:[M,S] -> softmax(gatenet(pos)) : [M, E]."""
    gw1, gb1, gw2, gb2, gw3, gb3 = gw
    h = _apply_act(_mm(pos2, gw1) + gb1[...], act)
    h = _apply_act(_mm(h, gw2) + gb2[...], act)
    g = _mm(h, gw3) + gb3[...]
    g = g - jnp.max(g, axis=-1, keepdims=True)
    e = jnp.exp(g)
    return e * pl.reciprocal(jnp.sum(e, axis=-1, keepdims=True), approx=True)


def _moe_apply(x2, gate, expand, w1, b1, w2, b2, lng, lnb, act, eps):
    """x2:[M,C] -> x2 + LN(sum_e gate_e * expert_e(x2)), experts stacked lane-dense."""
    h = _apply_act(_mm(x2, w1) + b1[...], act)                                    # [M, E*I]
    gate_full = jnp.dot(gate, expand, preferred_element_type=jnp.float32)         # [M, E*I]
    y = (_mm(h * gate_full, w2)
         + jnp.dot(gate, b2[...], preferred_element_type=jnp.float32))            # gated bias
    return x2 + _layernorm(y, lng[...], lnb[...], eps)


# ------------------------------ Pallas kernels -------------------------------

def _cross_moe_kernel(*refs, n_inputs, act, eps):
    # refs: x, pos, ones_bd, expand, ln1_g, ln1_b, wq, bq,
    #       {y_i, ln2_g_i, ln2_b_i, wkv_i, bkv_i} * n_inputs,
    #       wproj, bproj, gate(w1,b1,w2,b2,w3,b3), moe1(w1,b1,w2,b2,ln_g,ln_b), out
    it = iter(refs)
    x_ref, pos_ref, ones_ref, expand_ref = next(it), next(it), next(it), next(it)
    ln1g, ln1b, wq, bq = next(it), next(it), next(it), next(it)
    branches = [tuple(next(it) for _ in range(5)) for _ in range(n_inputs)]
    wproj, bproj = next(it), next(it)
    gw = tuple(next(it) for _ in range(6))
    mw1, mb1, mw2, mb2, mlng, mlnb = (next(it) for _ in range(6))
    o_ref = next(it)

    x = x_ref[...]                                      # [Bb, T1, C]
    Bb, T1, C = x.shape
    x2 = x.reshape(Bb * T1, C)
    ones_bd = ones_ref[...]

    # gate MLP (tiny; recomputed here so the [M,E] gate never hits HBM)
    gate = _gate_mlp(pos_ref[...].reshape(Bb * T1, -1), gw, act)

    # cross-attention
    xn = _layernorm(x2, ln1g[...], ln1b[...], eps)
    q_s = _head_softmax(_mm(xn, wq) + bq[...], ones_bd)          # [M1, C]
    q_s3 = q_s.reshape(Bb, T1, C)
    out = q_s                                                    # LinearCrossAttention: out starts at softmax(q)
    for (y_ref, g2, b2v, wkv, bkv) in branches:
        _, T2, _ = y_ref.shape
        yn = _layernorm(y_ref[...].reshape(Bb * T2, C), g2[...], b2v[...], eps)
        kv = _mm(yn, wkv) + bkv[...]                             # fused K|V proj: [M2, 2C]
        k_s = _head_softmax(kv[:, :C], ones_bd).reshape(Bb, T2, C)
        v = kv[:, C:].reshape(Bb, T2, C)
        out = out + _l1_attention(q_s3, k_s, v, ones_bd).reshape(Bb * T1, C)
    x2 = x2 + _mm(out, wproj) + bproj[...]                       # proj + residual

    # MoE-1 (+ln3+residual)
    x2 = _moe_apply(x2, gate, expand_ref[...], mw1, mb1, mw2, mb2, mlng, mlnb, act, eps)
    o_ref[...] = x2.reshape(Bb, T1, C)


def _self_moe_kernel(x_ref, pos_ref, ones_ref, expand_ref,
                     lng, lnb, wqkv, bqkv, wproj, bproj,
                     gw1, gb1, gw2, gb2, gw3, gb3,
                     mw1, mb1, mw2, mb2, mlng, mlnb,
                     o_ref, *, act, eps):
    x = x_ref[...]                                      # [Bb, T1, C]
    Bb, T1, C = x.shape
    x2 = x.reshape(Bb * T1, C)
    ones_bd = ones_ref[...]

    gate = _gate_mlp(pos_ref[...].reshape(Bb * T1, -1),
                     (gw1, gb1, gw2, gb2, gw3, gb3), act)

    # self-attention
    xn = _layernorm(x2, lng[...], lnb[...], eps)
    qkv = _mm(xn, wqkv) + bqkv[...]                              # fused Q|K|V proj: [M1, 3C]
    q_s = _head_softmax(qkv[:, :C], ones_bd)
    k_s = _head_softmax(qkv[:, C:2 * C], ones_bd)
    v = qkv[:, 2 * C:]
    att = q_s + _l1_attention(q_s.reshape(Bb, T1, C),
                              k_s.reshape(Bb, T1, C),
                              v.reshape(Bb, T1, C),
                              ones_bd).reshape(Bb * T1, C)
    x2 = x2 + _mm(att, wproj) + bproj[...]                       # proj + residual

    # MoE-2 (+ln5+residual)
    x2 = _moe_apply(x2, gate, expand_ref[...], mw1, mb1, mw2, mb2, mlng, mlnb, act, eps)
    o_ref[...] = x2.reshape(Bb, T1, C)


# ------------------------------ pallas wrappers ------------------------------

def _full(shape):
    nd = len(shape)
    return pl.BlockSpec(shape, lambda *_: (0,) * nd)


def _batch_tile(B, T1, target_rows=1024):
    """Largest divisor Bb of B with Bb*T1 <= target_rows while keeping >=2 grid steps (megacore)."""
    best = 1
    for bb in range(1, B + 1):
        if B % bb:
            continue
        if bb * T1 > target_rows:
            break
        if B // bb >= 2 or B == 1:
            best = bb
    return best


def _vmem_limit():
    # Half of physical VMEM: 64 MiB on v5e/v6e, 32 MiB on v7x — headroom for the pipeline's
    # double-buffered activation blocks on top of the resident packed weights.
    try:
        cap = int(pltpu.get_tpu_info().vmem_capacity_bytes)
    except Exception:  # conservative fallback
        cap = 128 * 1024 * 1024
    return int(min(cap // 2, 64 * 1024 * 1024))


def cross_moe_pallas(x, ys, pos, pc, pg, pm, consts, act, eps=LN_EPS):
    """Fused: x + proj(LinearCrossAttention(ln1(x), ln2_i(y_i)))  then  + ln3(gated MoE-1)."""
    B, T1, C = x.shape
    S = pos.shape[-1]
    ones_bd, expand = consts
    E, EI = expand.shape
    Ig = pg["w1"].shape[1]
    Bb = _batch_tile(B, T1)

    inputs = [x, pos, ones_bd, expand,
              pc["ln1_g"], pc["ln1_b"], pc["wq"], pc["bq"]]
    in_specs = [
        pl.BlockSpec((Bb, T1, C), lambda b: (b, 0, 0)),
        pl.BlockSpec((Bb, T1, S), lambda b: (b, 0, 0)),
        _full((C, C)), _full((E, EI)),
        _full((1, C)), _full((1, C)), _full((C, C)), _full((1, C)),
    ]
    for i, y in enumerate(ys):
        T2 = y.shape[1]
        inputs += [y, pc["ln2_g"][i], pc["ln2_b"][i], pc["wkv"][i], pc["bkv"][i]]
        in_specs += [
            pl.BlockSpec((Bb, T2, C), lambda b: (b, 0, 0)),
            _full((1, C)), _full((1, C)), _full((C, 2 * C)), _full((1, 2 * C)),
        ]
    inputs += [pc["wproj"], pc["bproj"],
               pg["w1"], pg["b1"], pg["w2"], pg["b2"], pg["w3"], pg["b3"],
               pm["w1"], pm["b1"], pm["w2"], pm["b2"], pm["ln_g"], pm["ln_b"]]
    in_specs += [_full((C, C)), _full((1, C)),
                 _full((S, Ig)), _full((1, Ig)), _full((Ig, Ig)), _full((1, Ig)),
                 _full((Ig, E)), _full((1, E)),
                 _full((C, EI)), _full((1, EI)), _full((EI, C)), _full((E, C)),
                 _full((1, C)), _full((1, C))]

    return pl.pallas_call(
        functools.partial(_cross_moe_kernel, n_inputs=len(ys), act=act, eps=eps),
        out_shape=jax.ShapeDtypeStruct((B, T1, C), jnp.float32),
        grid=(B // Bb,),
        in_specs=in_specs,
        out_specs=pl.BlockSpec((Bb, T1, C), lambda b: (b, 0, 0)),
        compiler_params=pltpu.CompilerParams(
            dimension_semantics=("parallel",),
            vmem_limit_bytes=_vmem_limit()),
    )(*inputs)


def self_moe_pallas(x, pos, ps, pg, pm, consts, act, eps=LN_EPS):
    """Fused: x + proj(LinearAttention(ln4(x)))  then  + ln5(gated MoE-2)."""
    B, T1, C = x.shape
    S = pos.shape[-1]
    ones_bd, expand = consts
    E, EI = expand.shape
    Ig = pg["w1"].shape[1]
    Bb = _batch_tile(B, T1)

    inputs = [x, pos, ones_bd, expand,
              ps["ln_g"], ps["ln_b"], ps["wqkv"], ps["bqkv"], ps["wproj"], ps["bproj"],
              pg["w1"], pg["b1"], pg["w2"], pg["b2"], pg["w3"], pg["b3"],
              pm["w1"], pm["b1"], pm["w2"], pm["b2"], pm["ln_g"], pm["ln_b"]]
    in_specs = [
        pl.BlockSpec((Bb, T1, C), lambda b: (b, 0, 0)),
        pl.BlockSpec((Bb, T1, S), lambda b: (b, 0, 0)),
        _full((C, C)), _full((E, EI)),
        _full((1, C)), _full((1, C)), _full((C, 3 * C)), _full((1, 3 * C)),
        _full((C, C)), _full((1, C)),
        _full((S, Ig)), _full((1, Ig)), _full((Ig, Ig)), _full((1, Ig)),
        _full((Ig, E)), _full((1, E)),
        _full((C, EI)), _full((1, EI)), _full((EI, C)), _full((E, C)),
        _full((1, C)), _full((1, C)),
    ]

    return pl.pallas_call(
        functools.partial(_self_moe_kernel, act=act, eps=eps),
        out_shape=jax.ShapeDtypeStruct((B, T1, C), jnp.float32),
        grid=(B // Bb,),
        in_specs=in_specs,
        out_specs=pl.BlockSpec((Bb, T1, C), lambda b: (b, 0, 0)),
        compiler_params=pltpu.CompilerParams(
            dimension_semantics=("parallel",),
            vmem_limit_bytes=_vmem_limit()),
    )(*inputs)


# ------------------------------- block forward -------------------------------

def mioe_cross_attention_block(packed, x, ys, pos, cfg):
    nh, act = cfg["n_head"], cfg["act"]
    C, E, I = cfg["n_embd"], cfg["n_experts"], cfg["n_inner"]
    consts = (_block_diag_ones(C, nh), _expert_expand(E, I))

    x = cross_moe_pallas(x, ys, pos, packed["cross"], packed["gate"], packed["moe1"],
                         consts, act)
    x = self_moe_pallas(x, pos, packed["self"], packed["gate"], packed["moe2"],
                        consts, act)
    return x


# -------------------------------- parameters ---------------------------------

def init_linear(key, in_dim, out_dim):
    # matches torch nn.Linear default init (uniform +-1/sqrt(fan_in)); weight stored [in, out]
    kw, kb = jax.random.split(key)
    bound = 1.0 / math.sqrt(in_dim)
    w = jax.random.uniform(kw, (in_dim, out_dim), jnp.float32, -bound, bound)
    b = jax.random.uniform(kb, (out_dim,), jnp.float32, -bound, bound)
    return w, b


def init_params(key, cfg):
    C, I = cfg["n_embd"], cfg["n_inner"]
    E, NI, S = cfg["n_experts"], cfg["n_inputs"], cfg["space_dim"]
    keys = iter(jax.random.split(key, 64))

    def lin(i, o):
        return init_linear(next(keys), i, o)

    def ln():
        return (jnp.ones((C,), jnp.float32), jnp.zeros((C,), jnp.float32))

    return {
        "ln1": ln(), "ln3": ln(), "ln4": ln(), "ln5": ln(),
        "ln2": [ln() for _ in range(NI)],
        "ca_q": lin(C, C),
        "ca_k": [lin(C, C) for _ in range(NI)],
        "ca_v": [lin(C, C) for _ in range(NI)],
        "ca_proj": lin(C, C),
        "sa_q": lin(C, C), "sa_k": lin(C, C), "sa_v": lin(C, C), "sa_proj": lin(C, C),
        "moe1": [lin(C, I) + lin(I, C) for _ in range(E)],
        "moe2": [lin(C, I) + lin(I, C) for _ in range(E)],
        "gate": [lin(S, I), lin(I, I), lin(I, E)],
    }


def pack_params(raw, cfg):
    """Concatenate weights so each fused kernel gets lane-dense, single-matmul operands.

    Matmul weights are stored bf16 (MXU-native, half the DMA/residency); biases and layernorm
    parameters stay f32.
    """
    NI, E = cfg["n_inputs"], cfg["n_experts"]

    def bf(w):
        return w.astype(jnp.bfloat16)

    def row(v):
        return v.reshape(1, -1)

    gate = dict(
        w1=bf(raw["gate"][0][0]), b1=row(raw["gate"][0][1]),
        w2=bf(raw["gate"][1][0]), b2=row(raw["gate"][1][1]),
        w3=bf(raw["gate"][2][0]), b3=row(raw["gate"][2][1]))

    cross = dict(
        ln1_g=row(raw["ln1"][0]), ln1_b=row(raw["ln1"][1]),
        wq=bf(raw["ca_q"][0]), bq=row(raw["ca_q"][1]),
        ln2_g=[row(raw["ln2"][i][0]) for i in range(NI)],
        ln2_b=[row(raw["ln2"][i][1]) for i in range(NI)],
        wkv=[bf(jnp.concatenate([raw["ca_k"][i][0], raw["ca_v"][i][0]], axis=1))
             for i in range(NI)],
        bkv=[row(jnp.concatenate([raw["ca_k"][i][1], raw["ca_v"][i][1]])) for i in range(NI)],
        wproj=bf(raw["ca_proj"][0]), bproj=row(raw["ca_proj"][1]))

    selfp = dict(
        ln_g=row(raw["ln4"][0]), ln_b=row(raw["ln4"][1]),
        wqkv=bf(jnp.concatenate([raw["sa_q"][0], raw["sa_k"][0], raw["sa_v"][0]], axis=1)),
        bqkv=row(jnp.concatenate([raw["sa_q"][1], raw["sa_k"][1], raw["sa_v"][1]])),
        wproj=bf(raw["sa_proj"][0]), bproj=row(raw["sa_proj"][1]))

    def pack_moe(experts, ln):
        return dict(
            w1=bf(jnp.concatenate([experts[e][0] for e in range(E)], axis=1)),   # [C, E*I]
            b1=row(jnp.concatenate([experts[e][1] for e in range(E)])),           # [1, E*I]
            w2=bf(jnp.concatenate([experts[e][2] for e in range(E)], axis=0)),    # [E*I, C]
            b2=jnp.stack([experts[e][3] for e in range(E)], axis=0),              # [E, C]
            ln_g=row(ln[0]), ln_b=row(ln[1]))

    return dict(gate=gate, cross=cross, self=selfp,
                moe1=pack_moe(raw["moe1"], raw["ln3"]),
                moe2=pack_moe(raw["moe2"], raw["ln5"]))


def round_weights_bf16(raw):
    """Round linear weights to bf16-and-back (the precision the kernel stores them at) so the
    f32 reference uses the same effective weights; remaining kernel-vs-reference drift is only
    activation rounding / approx reciprocal / reduction order."""
    def rb(wb):
        w, b = wb
        return (w.astype(jnp.bfloat16).astype(jnp.float32), b)

    out = dict(raw)
    for k in ("ca_q", "ca_proj", "sa_q", "sa_k", "sa_v", "sa_proj"):
        out[k] = rb(raw[k])
    out["ca_k"] = [rb(t) for t in raw["ca_k"]]
    out["ca_v"] = [rb(t) for t in raw["ca_v"]]
    out["gate"] = [rb(t) for t in raw["gate"]]

    def rexp(experts):
        return [(e[0].astype(jnp.bfloat16).astype(jnp.float32), e[1],
                 e[2].astype(jnp.bfloat16).astype(jnp.float32), e[3]) for e in experts]

    out["moe1"] = rexp(raw["moe1"])
    out["moe2"] = rexp(raw["moe2"])
    return out


# ----------------------- pure-JAX reference (torch math) ---------------------

def reference_forward(raw, x, ys, pos, cfg):
    nh, E, NI, act = cfg["n_head"], cfg["n_experts"], cfg["n_inputs"], cfg["act"]
    B, T1, C = x.shape
    hd = C // nh
    hi = lax.Precision.HIGHEST

    def lin(t, wb):
        w, b = wb
        return jnp.einsum("...i,io->...o", t, w, precision=hi) + b

    def ln(t, gb, eps=LN_EPS):
        g, b = gb
        mu = t.mean(-1, keepdims=True)
        var = ((t - mu) ** 2).mean(-1, keepdims=True)
        return (t - mu) / jnp.sqrt(var + eps) * g + b

    def heads(t):
        Bn, Tn, _ = t.shape
        return t.reshape(Bn, Tn, nh, hd).transpose(0, 2, 1, 3)

    def merge(t):
        Bn, _, Tn, _ = t.shape
        return t.transpose(0, 2, 1, 3).reshape(Bn, Tn, C)

    g = _apply_act(lin(pos, raw["gate"][0]), act)
    g = _apply_act(lin(g, raw["gate"][1]), act)
    gate = jax.nn.softmax(lin(g, raw["gate"][2]), axis=-1)            # [B, T1, E]

    # cross-attention branch
    xn = ln(x, raw["ln1"])
    q = jax.nn.softmax(heads(lin(xn, raw["ca_q"])), axis=-1)
    out = q
    for i in range(NI):
        yn = ln(ys[i], raw["ln2"][i])
        k = jax.nn.softmax(heads(lin(yn, raw["ca_k"][i])), axis=-1)
        v = heads(lin(yn, raw["ca_v"][i]))
        k_cum = k.sum(-2, keepdims=True)
        d_inv = 1.0 / (q * k_cum).sum(-1, keepdims=True)
        ctx = jnp.einsum("bhtd,bhte->bhde", k, v, precision=hi)
        out = out + jnp.einsum("bhtd,bhde->bhte", q, ctx, precision=hi) * d_inv
    x = x + lin(merge(out), raw["ca_proj"])

    def moe(t, experts):
        outs = [lin(_apply_act(lin(t, experts[e][:2]), act), experts[e][2:]) for e in range(E)]
        stacked = jnp.stack(outs, axis=-1)                            # [B, T1, C, E]
        return (gate[..., None, :] * stacked).sum(-1)

    x = x + ln(moe(x, raw["moe1"]), raw["ln3"])

    # self-attention branch
    xn = ln(x, raw["ln4"])
    q = jax.nn.softmax(heads(lin(xn, raw["sa_q"])), axis=-1)
    k = jax.nn.softmax(heads(lin(xn, raw["sa_k"])), axis=-1)
    v = heads(lin(xn, raw["sa_v"]))
    k_cum = k.sum(-2, keepdims=True)
    d_inv = 1.0 / (q * k_cum).sum(-1, keepdims=True)
    ctx = jnp.einsum("bhtd,bhte->bhde", k, v, precision=hi)
    att = jnp.einsum("bhtd,bhde->bhte", q, ctx, precision=hi) * d_inv + q
    x = x + lin(merge(att), raw["sa_proj"])

    x = x + ln(moe(x, raw["moe2"]), raw["ln5"])
    return x


# ----------------------------------- main -------------------------------------

if __name__ == "__main__":
    cfg = dict(n_embd=32, n_head=4, n_inputs=2, n_experts=2,
               n_inner=64, space_dim=2, act=ACT)
    B, T1, T2 = 2, 8, 8

    key = jax.random.PRNGKey(0)
    kp, kx, ky, kpos = jax.random.split(key, 4)
    raw = init_params(kp, cfg)
    packed = pack_params(raw, cfg)

    x = jax.random.normal(kx, (B, T1, cfg["n_embd"]), jnp.float32)
    ys = [jax.random.normal(jax.random.fold_in(ky, i), (B, T2, cfg["n_embd"]), jnp.float32)
          for i in range(cfg["n_inputs"])]
    pos = jax.random.normal(kpos, (B, T1, cfg["space_dim"]), jnp.float32)

    fwd = jax.jit(lambda p, xx, yy, pp: mioe_cross_attention_block(p, xx, yy, pp, cfg))
    out = jax.block_until_ready(fwd(packed, x, ys, pos))
    assert out.shape == (B, T1, cfg["n_embd"])
    assert bool(jnp.all(jnp.isfinite(out)))

    # Reference with bf16-rounded weights (matching the kernel's stored precision); residual
    # drift comes from bf16 activation rounding, approx reciprocal, and accumulation order.
    ref = jax.block_until_ready(reference_forward(round_weights_bf16(raw), x, ys, pos, cfg))
    max_err = float(jnp.max(jnp.abs(out - ref)))
    assert max_err < 7.5e-2, f"Pallas output mismatch vs reference (max abs err {max_err})"

    print("KERNEL_OK")
</pallas_src>

<mosaic_0001>
module attributes {stable_mosaic.version = 11 : i64} {
  func.func @_cross_moe_kernel(%arg0: i32, %arg1: memref<1x8x32xf32, #tpu.memory_space<vmem>>, %arg2: memref<1x8x2xf32, #tpu.memory_space<vmem>>, %arg3: memref<32x32xf32, #tpu.memory_space<vmem>>, %arg4: memref<2x128xf32, #tpu.memory_space<vmem>>, %arg5: memref<1x32xf32, #tpu.memory_space<vmem>>, %arg6: memref<1x32xf32, #tpu.memory_space<vmem>>, %arg7: memref<32x32xbf16, #tpu.memory_space<vmem>>, %arg8: memref<1x32xf32, #tpu.memory_space<vmem>>, %arg9: memref<1x8x32xf32, #tpu.memory_space<vmem>>, %arg10: memref<1x32xf32, #tpu.memory_space<vmem>>, %arg11: memref<1x32xf32, #tpu.memory_space<vmem>>, %arg12: memref<32x64xbf16, #tpu.memory_space<vmem>>, %arg13: memref<1x64xf32, #tpu.memory_space<vmem>>, %arg14: memref<1x8x32xf32, #tpu.memory_space<vmem>>, %arg15: memref<1x32xf32, #tpu.memory_space<vmem>>, %arg16: memref<1x32xf32, #tpu.memory_space<vmem>>, %arg17: memref<32x64xbf16, #tpu.memory_space<vmem>>, %arg18: memref<1x64xf32, #tpu.memory_space<vmem>>, %arg19: memref<32x32xbf16, #tpu.memory_space<vmem>>, %arg20: memref<1x32xf32, #tpu.memory_space<vmem>>, %arg21: memref<2x64xbf16, #tpu.memory_space<vmem>>, %arg22: memref<1x64xf32, #tpu.memory_space<vmem>>, %arg23: memref<64x64xbf16, #tpu.memory_space<vmem>>, %arg24: memref<1x64xf32, #tpu.memory_space<vmem>>, %arg25: memref<64x2xbf16, #tpu.memory_space<vmem>>, %arg26: memref<1x2xf32, #tpu.memory_space<vmem>>, %arg27: memref<32x128xbf16, #tpu.memory_space<vmem>>, %arg28: memref<1x128xf32, #tpu.memory_space<vmem>>, %arg29: memref<128x32xbf16, #tpu.memory_space<vmem>>, %arg30: memref<2x32xf32, #tpu.memory_space<vmem>>, %arg31: memref<1x32xf32, #tpu.memory_space<vmem>>, %arg32: memref<1x32xf32, #tpu.memory_space<vmem>>, %arg33: memref<1x8x32xf32, #tpu.memory_space<vmem>>) attributes {dimension_semantics = [#tpu.dimension_semantics<parallel>], iteration_bounds = array<i64: 2>, scalar_prefetch = 0 : i64, scratch_operands = 0 : i64, tpu.core_type = #tpu.core_type<tc>, window_params = [{transform_indices = @transform_0, window_bounds = array<i64: 1, 8, 32>}, {transform_indices = @transform_1, window_bounds = array<i64: 1, 8, 2>}, {pipeline_mode = #tpu.pipeline_mode<synchronous>, transform_indices = @transform_2, window_bounds = array<i64: 32, 32>}, {pipeline_mode = #tpu.pipeline_mode<synchronous>, transform_indices = @transform_3, window_bounds = array<i64: 2, 128>}, {pipeline_mode = #tpu.pipeline_mode<synchronous>, transform_indices = @transform_4, window_bounds = array<i64: 1, 32>}, {pipeline_mode = #tpu.pipeline_mode<synchronous>, transform_indices = @transform_5, window_bounds = array<i64: 1, 32>}, {pipeline_mode = #tpu.pipeline_mode<synchronous>, transform_indices = @transform_6, window_bounds = array<i64: 32, 32>}, {pipeline_mode = #tpu.pipeline_mode<synchronous>, transform_indices = @transform_7, window_bounds = array<i64: 1, 32>}, {transform_indices = @transform_8, window_bounds = array<i64: 1, 8, 32>}, {pipeline_mode = #tpu.pipeline_mode<synchronous>, transform_indices = @transform_9, window_bounds = array<i64: 1, 32>}, {pipeline_mode = #tpu.pipeline_mode<synchronous>, transform_indices = @transform_10, window_bounds = array<i64: 1, 32>}, {pipeline_mode = #tpu.pipeline_mode<synchronous>, transform_indices = @transform_11, window_bounds = array<i64: 32, 64>}, {pipeline_mode = #tpu.pipeline_mode<synchronous>, transform_indices = @transform_12, window_bounds = array<i64: 1, 64>}, {transform_indices = @transform_13, window_bounds = array<i64: 1, 8, 32>}, {pipeline_mode = #tpu.pipeline_mode<synchronous>, transform_indices = @transform_14, window_bounds = array<i64: 1, 32>}, {pipeline_mode = #tpu.pipeline_mode<synchronous>, transform_indices = @transform_15, window_bounds = array<i64: 1, 32>}, {pipeline_mode = #tpu.pipeline_mode<synchronous>, transform_indices = @transform_16, window_bounds = array<i64: 32, 64>}, {pipeline_mode = #tpu.pipeline_mode<synchronous>, transform_indices = @transform_17, window_bounds = array<i64: 1, 64>}, {pipeline_mode = #tpu.pipeline_mode<synchronous>, transform_indices = @transform_18, window_bounds = array<i64: 32, 32>}, {pipeline_mode = #tpu.pipeline_mode<synchronous>, transform_indices = @transform_19, window_bounds = array<i64: 1, 32>}, {pipeline_mode = #tpu.pipeline_mode<synchronous>, transform_indices = @transform_20, window_bounds = array<i64: 2, 64>}, {pipeline_mode = #tpu.pipeline_mode<synchronous>, transform_indices = @transform_21, window_bounds = array<i64: 1, 64>}, {pipeline_mode = #tpu.pipeline_mode<synchronous>, transform_indices = @transform_22, window_bounds = array<i64: 64, 64>}, {pipeline_mode = #tpu.pipeline_mode<synchronous>, transform_indices = @transform_23, window_bounds = array<i64: 1, 64>}, {pipeline_mode = #tpu.pipeline_mode<synchronous>, transform_indices = @transform_24, window_bounds = array<i64: 64, 2>}, {pipeline_mode = #tpu.pipeline_mode<synchronous>, transform_indices = @transform_25, window_bounds = array<i64: 1, 2>}, {pipeline_mode = #tpu.pipeline_mode<synchronous>, transform_indices = @transform_26, window_bounds = array<i64: 32, 128>}, {pipeline_mode = #tpu.pipeline_mode<synchronous>, transform_indices = @transform_27, window_bounds = array<i64: 1, 128>}, {pipeline_mode = #tpu.pipeline_mode<synchronous>, transform_indices = @transform_28, window_bounds = array<i64: 128, 32>}, {pipeline_mode = #tpu.pipeline_mode<synchronous>, transform_indices = @transform_29, window_bounds = array<i64: 2, 32>}, {pipeline_mode = #tpu.pipeline_mode<synchronous>, transform_indices = @transform_30, window_bounds = array<i64: 1, 32>}, {pipeline_mode = #tpu.pipeline_mode<synchronous>, transform_indices = @transform_31, window_bounds = array<i64: 1, 32>}, {transform_indices = @transform_32, window_bounds = array<i64: 1, 8, 32>}]} {
    %c0 = arith.constant 0 : index
    %c0_0 = arith.constant 0 : index
    %c0_1 = arith.constant 0 : index
    %0 = vector.load %arg1[%c0, %c0_0, %c0_1] : memref<1x8x32xf32, #tpu.memory_space<vmem>>, vector<1x8x32xf32>
    %1 = vector.shape_cast %0 : vector<1x8x32xf32> to vector<8x32xf32>
    %c0_2 = arith.constant 0 : index
    %c0_3 = arith.constant 0 : index
    %2 = vector.load %arg3[%c0_2, %c0_3] : memref<32x32xf32, #tpu.memory_space<vmem>>, vector<32x32xf32>
    %c0_4 = arith.constant 0 : index
    %c0_5 = arith.constant 0 : index
    %c0_6 = arith.constant 0 : index
    %3 = vector.load %arg2[%c0_4, %c0_5, %c0_6] : memref<1x8x2xf32, #tpu.memory_space<vmem>>, vector<1x8x2xf32>
    %4 = vector.shape_cast %3 : vector<1x8x2xf32> to vector<8x2xf32>
    %c0_7 = arith.constant 0 : index
    %c0_8 = arith.constant 0 : index
    %5 = vector.load %arg21[%c0_7, %c0_8] : memref<2x64xbf16, #tpu.memory_space<vmem>>, vector<2x64xbf16>
    %6 = arith.truncf %4 : vector<8x2xf32> to vector<8x2xbf16>
    %cst = arith.constant dense<0.000000e+00> : vector<8x64xf32>
    %7 = tpu.matmul %6, %5, %cst {dimension_numbers = #tpu.dot_dimension_numbers<[1], [0], [0], [1], [0, 0, 1, 1], [], []>} : vector<8x2xbf16>, vector<2x64xbf16>, vector<8x64xf32> -> vector<8x64xf32>
    %c0_9 = arith.constant 0 : index
    %c0_10 = arith.constant 0 : index
    %8 = vector.load %arg22[%c0_9, %c0_10] : memref<1x64xf32, #tpu.memory_space<vmem>>, vector<1x64xf32>
    %9 = vector.broadcast %8 : vector<1x64xf32> to vector<8x64xf32>
    %10 = arith.addf %7, %9 : vector<8x64xf32>
    %11 = math.tanh %10 : vector<8x64xf32>
    %c0_11 = arith.constant 0 : index
    %c0_12 = arith.constant 0 : index
    %12 = vector.load %arg23[%c0_11, %c0_12] : memref<64x64xbf16, #tpu.memory_space<vmem>>, vector<64x64xbf16>
    %13 = arith.truncf %11 : vector<8x64xf32> to vector<8x64xbf16>
    %cst_13 = arith.constant dense<0.000000e+00> : vector<8x64xf32>
    %14 = tpu.matmul %13, %12, %cst_13 {dimension_numbers = #tpu.dot_dimension_numbers<[1], [0], [0], [1], [0, 0, 1, 1], [], []>} : vector<8x64xbf16>, vector<64x64xbf16>, vector<8x64xf32> -> vector<8x64xf32>
    %c0_14 = arith.constant 0 : index
    %c0_15 = arith.constant 0 : index
    %15 = vector.load %arg24[%c0_14, %c0_15] : memref<1x64xf32, #tpu.memory_space<vmem>>, vector<1x64xf32>
    %16 = vector.broadcast %15 : vector<1x64xf32> to vector<8x64xf32>
    %17 = arith.addf %14, %16 : vector<8x64xf32>
    %18 = math.tanh %17 : vector<8x64xf32>
    %c0_16 = arith.constant 0 : index
    %c0_17 = arith.constant 0 : index
    %19 = vector.load %arg25[%c0_16, %c0_17] : memref<64x2xbf16, #tpu.memory_space<vmem>>, vector<64x2xbf16>
    %20 = arith.truncf %18 : vector<8x64xf32> to vector<8x64xbf16>
    %cst_18 = arith.constant dense<0.000000e+00> : vector<8x2xf32>
    %21 = tpu.matmul %20, %19, %cst_18 {dimension_numbers = #tpu.dot_dimension_numbers<[1], [0], [0], [1], [0, 0, 1, 1], [], []>} : vector<8x64xbf16>, vector<64x2xbf16>, vector<8x2xf32> -> vector<8x2xf32>
    %c0_19 = arith.constant 0 : index
    %c0_20 = arith.constant 0 : index
    %22 = vector.load %arg26[%c0_19, %c0_20] : memref<1x2xf32, #tpu.memory_space<vmem>>, vector<1x2xf32>
    %23 = vector.broadcast %22 : vector<1x2xf32> to vector<8x2xf32>
    %24 = arith.addf %21, %23 : vector<8x2xf32>
    %cst_21 = arith.constant dense<0xFF800000> : vector<8xf32>
    %25 = vector.multi_reduction <maximumf>, %24, %cst_21 [1] : vector<8x2xf32> to vector<8xf32>
    %26 = vector.shape_cast %25 : vector<8xf32> to vector<8x1xf32>
    %27 = vector.broadcast %26 : vector<8x1xf32> to vector<8x2xf32>
    %28 = arith.subf %24, %27 : vector<8x2xf32>
    %29 = math.exp %28 : vector<8x2xf32>
    %cst_22 = arith.constant dense<0.000000e+00> : vector<8xf32>
    %30 = vector.multi_reduction <add>, %29, %cst_22 [1] : vector<8x2xf32> to vector<8xf32>
    %31 = vector.shape_cast %30 : vector<8xf32> to vector<8x1xf32>
    %32 = tpu.reciprocal %31 {approx = true} : vector<8x1xf32> -> vector<8x1xf32>
    %33 = vector.broadcast %32 : vector<8x1xf32> to vector<8x2xf32>
    %34 = arith.mulf %29, %33 : vector<8x2xf32>
    %c0_23 = arith.constant 0 : index
    %c0_24 = arith.constant 0 : index
    %35 = vector.load %arg5[%c0_23, %c0_24] : memref<1x32xf32, #tpu.memory_space<vmem>>, vector<1x32xf32>
    %c0_25 = arith.constant 0 : index
    %c0_26 = arith.constant 0 : index
    %36 = vector.load %arg6[%c0_25, %c0_26] : memref<1x32xf32, #tpu.memory_space<vmem>>, vector<1x32xf32>
    %cst_27 = arith.constant dense<0.000000e+00> : vector<8xf32>
    %37 = vector.multi_reduction <add>, %1, %cst_27 [1] : vector<8x32xf32> to vector<8xf32>
    %38 = vector.shape_cast %37 : vector<8xf32> to vector<8x1xf32>
    %cst_28 = arith.constant 3.200000e+01 : f32
    %39 = vector.broadcast %cst_28 : f32 to vector<8x1xf32>
    %40 = arith.divf %38, %39 : vector<8x1xf32>
    %41 = vector.broadcast %40 : vector<8x1xf32> to vector<8x32xf32>
    %42 = arith.subf %1, %41 : vector<8x32xf32>
    %43 = arith.mulf %42, %42 : vector<8x32xf32>
    %cst_29 = arith.constant dense<0.000000e+00> : vector<8xf32>
    %44 = vector.multi_reduction <add>, %43, %cst_29 [1] : vector<8x32xf32> to vector<8xf32>
    %45 = vector.shape_cast %44 : vector<8xf32> to vector<8x1xf32>
    %cst_30 = arith.constant 3.200000e+01 : f32
    %46 = vector.broadcast %cst_30 : f32 to vector<8x1xf32>
    %47 = arith.divf %45, %46 : vector<8x1xf32>
    %48 = vector.broadcast %40 : vector<8x1xf32> to vector<8x32xf32>
    %49 = arith.subf %1, %48 : vector<8x32xf32>
    %cst_31 = arith.constant 9.99999974E-6 : f32
    %50 = vector.broadcast %cst_31 : f32 to vector<8x1xf32>
    %51 = arith.addf %47, %50 : vector<8x1xf32>
    %52 = math.rsqrt %51 : vector<8x1xf32>
    %53 = vector.broadcast %52 : vector<8x1xf32> to vector<8x32xf32>
    %54 = arith.mulf %49, %53 : vector<8x32xf32>
    %55 = vector.broadcast %35 : vector<1x32xf32> to vector<8x32xf32>
    %56 = arith.mulf %54, %55 : vector<8x32xf32>
    %57 = vector.broadcast %36 : vector<1x32xf32> to vector<8x32xf32>
    %58 = arith.addf %56, %57 : vector<8x32xf32>
    %c0_32 = arith.constant 0 : index
    %c0_33 = arith.constant 0 : index
    %59 = vector.load %arg7[%c0_32, %c0_33] : memref<32x32xbf16, #tpu.memory_space<vmem>>, vector<32x32xbf16>
    %60 = arith.truncf %58 : vector<8x32xf32> to vector<8x32xbf16>
    %cst_34 = arith.constant dense<0.000000e+00> : vector<8x32xf32>
    %61 = tpu.matmul %60, %59, %cst_34 {dimension_numbers = #tpu.dot_dimension_numbers<[1], [0], [0], [1], [0, 0, 1, 1], [], []>} : vector<8x32xbf16>, vector<32x32xbf16>, vector<8x32xf32> -> vector<8x32xf32>
    %c0_35 = arith.constant 0 : index
    %c0_36 = arith.constant 0 : index
    %62 = vector.load %arg8[%c0_35, %c0_36] : memref<1x32xf32, #tpu.memory_space<vmem>>, vector<1x32xf32>
    %63 = vector.broadcast %62 : vector<1x32xf32> to vector<8x32xf32>
    %64 = arith.addf %61, %63 : vector<8x32xf32>
    %cst_37 = arith.constant dense<0xFF800000> : vector<8xf32>
    %65 = vector.multi_reduction <maximumf>, %64, %cst_37 [1] : vector<8x32xf32> to vector<8xf32>
    %66 = vector.shape_cast %65 : vector<8xf32> to vector<8x1xf32>
    %67 = vector.broadcast %66 : vector<8x1xf32> to vector<8x32xf32>
    %68 = arith.subf %64, %67 : vector<8x32xf32>
    %69 = math.exp %68 : vector<8x32xf32>
    %cst_38 = arith.constant dense<0.000000e+00> : vector<8x32xf32>
    %70 = tpu.matmul %69, %2, %cst_38 {dimension_numbers = #tpu.dot_dimension_numbers<[1], [0], [0], [1], [0, 0, 1, 1], [], []>} : vector<8x32xf32>, vector<32x32xf32>, vector<8x32xf32> -> vector<8x32xf32>
    %71 = tpu.reciprocal %70 {approx = true} : vector<8x32xf32> -> vector<8x32xf32>
    %72 = arith.mulf %69, %71 : vector<8x32xf32>
    %73 = vector.shape_cast %72 : vector<8x32xf32> to vector<1x8x32xf32>
    %c0_39 = arith.constant 0 : index
    %c0_40 = arith.constant 0 : index
    %c0_41 = arith.constant 0 : index
    %74 = vector.load %arg9[%c0_39, %c0_40, %c0_41] : memref<1x8x32xf32, #tpu.memory_space<vmem>>, vector<1x8x32xf32>
    %75 = vector.shape_cast %74 : vector<1x8x32xf32> to vector<8x32xf32>
    %c0_42 = arith.constant 0 : index
    %c0_43 = arith.constant 0 : index
    %76 = vector.load %arg10[%c0_42, %c0_43] : memref<1x32xf32, #tpu.memory_space<vmem>>, vector<1x32xf32>
    %c0_44 = arith.constant 0 : index
    %c0_45 = arith.constant 0 : index
    %77 = vector.load %arg11[%c0_44, %c0_45] : memref<1x32xf32, #tpu.memory_space<vmem>>, vector<1x32xf32>
    %cst_46 = arith.constant dense<0.000000e+00> : vector<8xf32>
    %78 = vector.multi_reduction <add>, %75, %cst_46 [1] : vector<8x32xf32> to vector<8xf32>
    %79 = vector.shape_cast %78 : vector<8xf32> to vector<8x1xf32>
    %cst_47 = arith.constant 3.200000e+01 : f32
    %80 = vector.broadcast %cst_47 : f32 to vector<8x1xf32>
    %81 = arith.divf %79, %80 : vector<8x1xf32>
    %82 = vector.broadcast %81 : vector<8x1xf32> to vector<8x32xf32>
    %83 = arith.subf %75, %82 : vector<8x32xf32>
    %84 = arith.mulf %83, %83 : vector<8x32xf32>
    %cst_48 = arith.constant dense<0.000000e+00> : vector<8xf32>
    %85 = vector.multi_reduction <add>, %84, %cst_48 [1] : vector<8x32xf32> to vector<8xf32>
    %86 = vector.shape_cast %85 : vector<8xf32> to vector<8x1xf32>
    %cst_49 = arith.constant 3.200000e+01 : f32
    %87 = vector.broadcast %cst_49 : f32 to vector<8x1xf32>
    %88 = arith.divf %86, %87 : vector<8x1xf32>
    %89 = vector.broadcast %81 : vector<8x1xf32> to vector<8x32xf32>
    %90 = arith.subf %75, %89 : vector<8x32xf32>
    %cst_50 = arith.constant 9.99999974E-6 : f32
    %91 = vector.broadcast %cst_50 : f32 to vector<8x1xf32>
    %92 = arith.addf %88, %91 : vector<8x1xf32>
    %93 = math.rsqrt %92 : vector<8x1xf32>
    %94 = vector.broadcast %93 : vector<8x1xf32> to vector<8x32xf32>
    %95 = arith.mulf %90, %94 : vector<8x32xf32>
    %96 = vector.broadcast %76 : vector<1x32xf32> to vector<8x32xf32>
    %97 = arith.mulf %95, %96 : vector<8x32xf32>
    %98 = vector.broadcast %77 : vector<1x32xf32> to vector<8x32xf32>
    %99 = arith.addf %97, %98 : vector<8x32xf32>
    %c0_51 = arith.constant 0 : index
    %c0_52 = arith.constant 0 : index
    %100 = vector.load %arg12[%c0_51, %c0_52] : memref<32x64xbf16, #tpu.memory_space<vmem>>, vector<32x64xbf16>
    %101 = arith.truncf %99 : vector<8x32xf32> to vector<8x32xbf16>
    %cst_53 = arith.constant dense<0.000000e+00> : vector<8x64xf32>
    %102 = tpu.matmul %101, %100, %cst_53 {dimension_numbers = #tpu.dot_dimension_numbers<[1], [0], [0], [1], [0, 0, 1, 1], [], []>} : vector<8x32xbf16>, vector<32x64xbf16>, vector<8x64xf32> -> vector<8x64xf32>
    %c0_54 = arith.constant 0 : index
    %c0_55 = arith.constant 0 : index
    %103 = vector.load %arg13[%c0_54, %c0_55] : memref<1x64xf32, #tpu.memory_space<vmem>>, vector<1x64xf32>
    %104 = vector.broadcast %103 : vector<1x64xf32> to vector<8x64xf32>
    %105 = arith.addf %102, %104 : vector<8x64xf32>
    %106 = vector.extract_strided_slice %105 {offsets = [0, 0], sizes = [8, 32], strides = [1, 1]} : vector<8x64xf32> to vector<8x32xf32>
    %cst_56 = arith.constant dense<0xFF800000> : vector<8xf32>
    %107 = vector.multi_reduction <maximumf>, %106, %cst_56 [1] : vector<8x32xf32> to vector<8xf32>
    %108 = vector.shape_cast %107 : vector<8xf32> to vector<8x1xf32>
    %109 = vector.broadcast %108 : vector<8x1xf32> to vector<8x32xf32>
    %110 = arith.subf %106, %109 : vector<8x32xf32>
    %111 = math.exp %110 : vector<8x32xf32>
    %cst_57 = arith.constant dense<0.000000e+00> : vector<8x32xf32>
    %112 = tpu.matmul %111, %2, %cst_57 {dimension_numbers = #tpu.dot_dimension_numbers<[1], [0], [0], [1], [0, 0, 1, 1], [], []>} : vector<8x32xf32>, vector<32x32xf32>, vector<8x32xf32> -> vector<8x32xf32>
    %113 = tpu.reciprocal %112 {approx = true} : vector<8x32xf32> -> vector<8x32xf32>
    %114 = arith.mulf %111, %113 : vector<8x32xf32>
    %115 = vector.shape_cast %114 : vector<8x32xf32> to vector<1x8x32xf32>
    %116 = vector.extract_strided_slice %105 {offsets = [0, 32], sizes = [8, 32], strides = [1, 1]} : vector<8x64xf32> to vector<8x32xf32>
    %117 = vector.shape_cast %116 : vector<8x32xf32> to vector<1x8x32xf32>
    %cst_58 = arith.constant dense<0.000000e+00> : vector<1x32xf32>
    %118 = vector.multi_reduction <add>, %115, %cst_58 [1] : vector<1x8x32xf32> to vector<1x32xf32>
    %119 = vector.shape_cast %118 : vector<1x32xf32> to vector<1x1x32xf32>
    %120 = vector.broadcast %119 : vector<1x1x32xf32> to vector<1x8x32xf32>
    %121 = arith.mulf %73, %120 : vector<1x8x32xf32>
    %122 = vector.shape_cast %121 : vector<1x8x32xf32> to vector<8x32xf32>
    %cst_59 = arith.constant dense<0.000000e+00> : vector<8x32xf32>
    %123 = tpu.matmul %122, %2, %cst_59 {dimension_numbers = #tpu.dot_dimension_numbers<[1], [0], [0], [1], [0, 0, 1, 1], [], []>} : vector<8x32xf32>, vector<32x32xf32>, vector<8x32xf32> -> vector<8x32xf32>
    %124 = tpu.reciprocal %123 {approx = true} : vector<8x32xf32> -> vector<8x32xf32>
    %125 = vector.shape_cast %124 : vector<8x32xf32> to vector<1x8x32xf32>
    %126 = arith.truncf %115 : vector<1x8x32xf32> to vector<1x8x32xbf16>
    %127 = arith.truncf %117 : vector<1x8x32xf32> to vector<1x8x32xbf16>
    "tpu.trace_start"() <{level = 10 : i32, message = "btc,btd->bcd"}> : () -> ()
    %cst_60 = arith.constant dense<0.000000e+00> : vector<1x32x32xf32>
    %128 = tpu.matmul %126, %127, %cst_60 {dimension_numbers = #tpu.dot_dimension_numbers<[1], [1], [2], [2], [0, 0, 0, 2, 1, 2], [0], [0]>} : vector<1x8x32xbf16>, vector<1x8x32xbf16>, vector<1x32x32xf32> -> vector<1x32x32xf32>
    "tpu.trace_stop"() : () -> ()
    %129 = vector.shape_cast %2 : vector<32x32xf32> to vector<1x32x32xf32>
    %130 = arith.mulf %128, %129 : vector<1x32x32xf32>
    %131 = arith.truncf %130 : vector<1x32x32xf32> to vector<1x32x32xbf16>
    %132 = arith.truncf %73 : vector<1x8x32xf32> to vector<1x8x32xbf16>
    "tpu.trace_start"() <{level = 10 : i32, message = "btc,bcd->btd"}> : () -> ()
    %cst_61 = arith.constant dense<0.000000e+00> : vector<1x8x32xf32>
    %133 = tpu.matmul %132, %131, %cst_61 {dimension_numbers = #tpu.dot_dimension_numbers<[2], [1], [1], [2], [0, 0, 0, 1, 1, 2], [0], [0]>} : vector<1x8x32xbf16>, vector<1x32x32xbf16>, vector<1x8x32xf32> -> vector<1x8x32xf32>
    "tpu.trace_stop"() : () -> ()
    %134 = arith.mulf %133, %125 : vector<1x8x32xf32>
    %135 = vector.shape_cast %134 : vector<1x8x32xf32> to vector<8x32xf32>
    %136 = arith.addf %72, %135 : vector<8x32xf32>
    %c0_62 = arith.constant 0 : index
    %c0_63 = arith.constant 0 : index
    %c0_64 = arith.constant 0 : index
    %137 = vector.load %arg14[%c0_62, %c0_63, %c0_64] : memref<1x8x32xf32, #tpu.memory_space<vmem>>, vector<1x8x32xf32>
    %138 = vector.shape_cast %137 : vector<1x8x32xf32> to vector<8x32xf32>
    %c0_65 = arith.constant 0 : index
    %c0_66 = arith.constant 0 : index
    %139 = vector.load %arg15[%c0_65, %c0_66] : memref<1x32xf32, #tpu.memory_space<vmem>>, vector<1x32xf32>
    %c0_67 = arith.constant 0 : index
    %c0_68 = arith.constant 0 : index
    %140 = vector.load %arg16[%c0_67, %c0_68] : memref<1x32xf32, #tpu.memory_space<vmem>>, vector<1x32xf32>
    %cst_69 = arith.constant dense<0.000000e+00> : vector<8xf32>
    %141 = vector.multi_reduction <add>, %138, %cst_69 [1] : vector<8x32xf32> to vector<8xf32>
    %142 = vector.shape_cast %141 : vector<8xf32> to vector<8x1xf32>
    %cst_70 = arith.constant 3.200000e+01 : f32
    %143 = vector.broadcast %cst_70 : f32 to vector<8x1xf32>
    %144 = arith.divf %142, %143 : vector<8x1xf32>
    %145 = vector.broadcast %144 : vector<8x1xf32> to vector<8x32xf32>
    %146 = arith.subf %138, %145 : vector<8x32xf32>
    %147 = arith.mulf %146, %146 : vector<8x32xf32>
    %cst_71 = arith.constant dense<0.000000e+00> : vector<8xf32>
    %148 = vector.multi_reduction <add>, %147, %cst_71 [1] : vector<8x32xf32> to vector<8xf32>
    %149 = vector.shape_cast %148 : vector<8xf32> to vector<8x1xf32>
    %cst_72 = arith.constant 3.200000e+01 : f32
    %150 = vector.broadcast %cst_72 : f32 to vector<8x1xf32>
    %151 = arith.divf %149, %150 : vector<8x1xf32>
    %152 = vector.broadcast %144 : vector<8x1xf32> to vector<8x32xf32>
    %153 = arith.subf %138, %152 : vector<8x32xf32>
    %cst_73 = arith.constant 9.99999974E-6 : f32
    %154 = vector.broadcast %cst_73 : f32 to vector<8x1xf32>
    %155 = arith.addf %151, %154 : vector<8x1xf32>
    %156 = math.rsqrt %155 : vector<8x1xf32>
    %157 = vector.broadcast %156 : vector<8x1xf32> to vector<8x32xf32>
    %158 = arith.mulf %153, %157 : vector<8x32xf32>
    %159 = vector.broadcast %139 : vector<1x32xf32> to vector<8x32xf32>
    %160 = arith.mulf %158, %159 : vector<8x32xf32>
    %161 = vector.broadcast %140 : vector<1x32xf32> to vector<8x32xf32>
    %162 = arith.addf %160, %161 : vector<8x32xf32>
    %c0_74 = arith.constant 0 : index
    %c0_75 = arith.constant 0 : index
    %163 = vector.load %arg17[%c0_74, %c0_75] : memref<32x64xbf16, #tpu.memory_space<vmem>>, vector<32x64xbf16>
    %164 = arith.truncf %162 : vector<8x32xf32> to vector<8x32xbf16>
    %cst_76 = arith.constant dense<0.000000e+00> : vector<8x64xf32>
    %165 = tpu.matmul %164, %163, %cst_76 {dimension_numbers = #tpu.dot_dimension_numbers<[1], [0], [0], [1], [0, 0, 1, 1], [], []>} : vector<8x32xbf16>, vector<32x64xbf16>, vector<8x64xf32> -> vector<8x64xf32>
    %c0_77 = arith.constant 0 : index
    %c0_78 = arith.constant 0 : index
    %166 = vector.load %arg18[%c0_77, %c0_78] : memref<1x64xf32, #tpu.memory_space<vmem>>, vector<1x64xf32>
    %167 = vector.broadcast %166 : vector<1x64xf32> to vector<8x64xf32>
    %168 = arith.addf %165, %167 : vector<8x64xf32>
    %169 = vector.extract_strided_slice %168 {offsets = [0, 0], sizes = [8, 32], strides = [1, 1]} : vector<8x64xf32> to vector<8x32xf32>
    %cst_79 = arith.constant dense<0xFF800000> : vector<8xf32>
    %170 = vector.multi_reduction <maximumf>, %169, %cst_79 [1] : vector<8x32xf32> to vector<8xf32>
    %171 = vector.shape_cast %170 : vector<8xf32> to vector<8x1xf32>
    %172 = vector.broadcast %171 : vector<8x1xf32> to vector<8x32xf32>
    %173 = arith.subf %169, %172 : vector<8x32xf32>
    %174 = math.exp %173 : vector<8x32xf32>
    %cst_80 = arith.constant dense<0.000000e+00> : vector<8x32xf32>
    %175 = tpu.matmul %174, %2, %cst_80 {dimension_numbers = #tpu.dot_dimension_numbers<[1], [0], [0], [1], [0, 0, 1, 1], [], []>} : vector<8x32xf32>, vector<32x32xf32>, vector<8x32xf32> -> vector<8x32xf32>
    %176 = tpu.reciprocal %175 {approx = true} : vector<8x32xf32> -> vector<8x32xf32>
    %177 = arith.mulf %174, %176 : vector<8x32xf32>
    %178 = vector.shape_cast %177 : vector<8x32xf32> to vector<1x8x32xf32>
    %179 = vector.extract_strided_slice %168 {offsets = [0, 32], sizes = [8, 32], strides = [1, 1]} : vector<8x64xf32> to vector<8x32xf32>
    %180 = vector.shape_cast %179 : vector<8x32xf32> to vector<1x8x32xf32>
    %cst_81 = arith.constant dense<0.000000e+00> : vector<1x32xf32>
    %181 = vector.multi_reduction <add>, %178, %cst_81 [1] : vector<1x8x32xf32> to vector<1x32xf32>
    %182 = vector.shape_cast %181 : vector<1x32xf32> to vector<1x1x32xf32>
    %183 = vector.broadcast %182 : vector<1x1x32xf32> to vector<1x8x32xf32>
    %184 = arith.mulf %73, %183 : vector<1x8x32xf32>
    %185 = vector.shape_cast %184 : vector<1x8x32xf32> to vector<8x32xf32>
    %cst_82 = arith.constant dense<0.000000e+00> : vector<8x32xf32>
    %186 = tpu.matmul %185, %2, %cst_82 {dimension_numbers = #tpu.dot_dimension_numbers<[1], [0], [0], [1], [0, 0, 1, 1], [], []>} : vector<8x32xf32>, vector<32x32xf32>, vector<8x32xf32> -> vector<8x32xf32>
    %187 = tpu.reciprocal %186 {approx = true} : vector<8x32xf32> -> vector<8x32xf32>
    %188 = vector.shape_cast %187 : vector<8x32xf32> to vector<1x8x32xf32>
    %189 = arith.truncf %178 : vector<1x8x32xf32> to vector<1x8x32xbf16>
    %190 = arith.truncf %180 : vector<1x8x32xf32> to vector<1x8x32xbf16>
    "tpu.trace_start"() <{level = 10 : i32, message = "btc,btd->bcd"}> : () -> ()
    %cst_83 = arith.constant dense<0.000000e+00> : vector<1x32x32xf32>
    %191 = tpu.matmul %189, %190, %cst_83 {dimension_numbers = #tpu.dot_dimension_numbers<[1], [1], [2], [2], [0, 0, 0, 2, 1, 2], [0], [0]>} : vector<1x8x32xbf16>, vector<1x8x32xbf16>, vector<1x32x32xf32> -> vector<1x32x32xf32>
    "tpu.trace_stop"() : () -> ()
    %192 = vector.shape_cast %2 : vector<32x32xf32> to vector<1x32x32xf32>
    %193 = arith.mulf %191, %192 : vector<1x32x32xf32>
    %194 = arith.truncf %193 : vector<1x32x32xf32> to vector<1x32x32xbf16>
    %195 = arith.truncf %73 : vector<1x8x32xf32> to vector<1x8x32xbf16>
    "tpu.trace_start"() <{level = 10 : i32, message = "btc,bcd->btd"}> : () -> ()
    %cst_84 = arith.constant dense<0.000000e+00> : vector<1x8x32xf32>
    %196 = tpu.matmul %195, %194, %cst_84 {dimension_numbers = #tpu.dot_dimension_numbers<[2], [1], [1], [2], [0, 0, 0, 1, 1, 2], [0], [0]>} : vector<1x8x32xbf16>, vector<1x32x32xbf16>, vector<1x8x32xf32> -> vector<1x8x32xf32>
    "tpu.trace_stop"() : () -> ()
    %197 = arith.mulf %196, %188 : vector<1x8x32xf32>
    %198 = vector.shape_cast %197 : vector<1x8x32xf32> to vector<8x32xf32>
    %199 = arith.addf %136, %198 : vector<8x32xf32>
    %c0_85 = arith.constant 0 : index
    %c0_86 = arith.constant 0 : index
    %200 = vector.load %arg19[%c0_85, %c0_86] : memref<32x32xbf16, #tpu.memory_space<vmem>>, vector<32x32xbf16>
    %201 = arith.truncf %199 : vector<8x32xf32> to vector<8x32xbf16>
    %cst_87 = arith.constant dense<0.000000e+00> : vector<8x32xf32>
    %202 = tpu.matmul %201, %200, %cst_87 {dimension_numbers = #tpu.dot_dimension_numbers<[1], [0], [0], [1], [0, 0, 1, 1], [], []>} : vector<8x32xbf16>, vector<32x32xbf16>, vector<8x32xf32> -> vector<8x32xf32>
    %203 = arith.addf %1, %202 : vector<8x32xf32>
    %c0_88 = arith.constant 0 : index
    %c0_89 = arith.constant 0 : index
    %204 = vector.load %arg20[%c0_88, %c0_89] : memref<1x32xf32, #tpu.memory_space<vmem>>, vector<1x32xf32>
    %205 = vector.broadcast %204 : vector<1x32xf32> to vector<8x32xf32>
    %206 = arith.addf %203, %205 : vector<8x32xf32>
    %c0_90 = arith.constant 0 : index
    %c0_91 = arith.constant 0 : index
    %207 = vector.load %arg4[%c0_90, %c0_91] : memref<2x128xf32, #tpu.memory_space<vmem>>, vector<2x128xf32>
    %c0_92 = arith.constant 0 : index
    %c0_93 = arith.constant 0 : index
    %208 = vector.load %arg27[%c0_92, %c0_93] : memref<32x128xbf16, #tpu.memory_space<vmem>>, vector<32x128xbf16>
    %209 = arith.truncf %206 : vector<8x32xf32> to vector<8x32xbf16>
    %cst_94 = arith.constant dense<0.000000e+00> : vector<8x128xf32>
    %210 = tpu.matmul %209, %208, %cst_94 {dimension_numbers = #tpu.dot_dimension_numbers<[1], [0], [0], [1], [0, 0, 1, 1], [], []>} : vector<8x32xbf16>, vector<32x128xbf16>, vector<8x128xf32> -> vector<8x128xf32>
    %c0_95 = arith.constant 0 : index
    %c0_96 = arith.constant 0 : index
    %211 = vector.load %arg28[%c0_95, %c0_96] : memref<1x128xf32, #tpu.memory_space<vmem>>, vector<1x128xf32>
    %212 = vector.broadcast %211 : vector<1x128xf32> to vector<8x128xf32>
    %213 = arith.addf %210, %212 : vector<8x128xf32>
    %214 = math.tanh %213 : vector<8x128xf32>
    %cst_97 = arith.constant dense<0.000000e+00> : vector<8x128xf32>
    %215 = tpu.matmul %34, %207, %cst_97 {dimension_numbers = #tpu.dot_dimension_numbers<[1], [0], [0], [1], [0, 0, 1, 1], [], []>} : vector<8x2xf32>, vector<2x128xf32>, vector<8x128xf32> -> vector<8x128xf32>
    %216 = arith.mulf %214, %215 : vector<8x128xf32>
    %c0_98 = arith.constant 0 : index
    %c0_99 = arith.constant 0 : index
    %217 = vector.load %arg29[%c0_98, %c0_99] : memref<128x32xbf16, #tpu.memory_space<vmem>>, vector<128x32xbf16>
    %218 = arith.truncf %216 : vector<8x128xf32> to vector<8x128xbf16>
    %cst_100 = arith.constant dense<0.000000e+00> : vector<8x32xf32>
    %219 = tpu.matmul %218, %217, %cst_100 {dimension_numbers = #tpu.dot_dimension_numbers<[1], [0], [0], [1], [0, 0, 1, 1], [], []>} : vector<8x128xbf16>, vector<128x32xbf16>, vector<8x32xf32> -> vector<8x32xf32>
    %c0_101 = arith.constant 0 : index
    %c0_102 = arith.constant 0 : index
    %220 = vector.load %arg30[%c0_101, %c0_102] : memref<2x32xf32, #tpu.memory_space<vmem>>, vector<2x32xf32>
    %cst_103 = arith.constant dense<0.000000e+00> : vector<8x32xf32>
    %221 = tpu.matmul %34, %220, %cst_103 {dimension_numbers = #tpu.dot_dimension_numbers<[1], [0], [0], [1], [0, 0, 1, 1], [], []>} : vector<8x2xf32>, vector<2x32xf32>, vector<8x32xf32> -> vector<8x32xf32>
    %222 = arith.addf %219, %221 : vector<8x32xf32>
    %c0_104 = arith.constant 0 : index
    %c0_105 = arith.constant 0 : index
    %223 = vector.load %arg31[%c0_104, %c0_105] : memref<1x32xf32, #tpu.memory_space<vmem>>, vector<1x32xf32>
    %c0_106 = arith.constant 0 : index
    %c0_107 = arith.constant 0 : index
    %224 = vector.load %arg32[%c0_106, %c0_107] : memref<1x32xf32, #tpu.memory_space<vmem>>, vector<1x32xf32>
    %cst_108 = arith.constant dense<0.000000e+00> : vector<8xf32>
    %225 = vector.multi_reduction <add>, %222, %cst_108 [1] : vector<8x32xf32> to vector<8xf32>
    %226 = vector.shape_cast %225 : vector<8xf32> to vector<8x1xf32>
    %cst_109 = arith.constant 3.200000e+01 : f32
    %227 = vector.broadcast %cst_109 : f32 to vector<8x1xf32>
    %228 = arith.divf %226, %227 : vector<8x1xf32>
    %229 = vector.broadcast %228 : vector<8x1xf32> to vector<8x32xf32>
    %230 = arith.subf %222, %229 : vector<8x32xf32>
    %231 = arith.mulf %230, %230 : vector<8x32xf32>
    %cst_110 = arith.constant dense<0.000000e+00> : vector<8xf32>
    %232 = vector.multi_reduction <add>, %231, %cst_110 [1] : vector<8x32xf32> to vector<8xf32>
    %233 = vector.shape_cast %232 : vector<8xf32> to vector<8x1xf32>
    %cst_111 = arith.constant 3.200000e+01 : f32
    %234 = vector.broadcast %cst_111 : f32 to vector<8x1xf32>
    %235 = arith.divf %233, %234 : vector<8x1xf32>
    %236 = vector.broadcast %228 : vector<8x1xf32> to vector<8x32xf32>
    %237 = arith.subf %222, %236 : vector<8x32xf32>
    %cst_112 = arith.constant 9.99999974E-6 : f32
    %238 = vector.broadcast %cst_112 : f32 to vector<8x1xf32>
    %239 = arith.addf %235, %238 : vector<8x1xf32>
    %240 = math.rsqrt %239 : vector<8x1xf32>
    %241 = vector.broadcast %240 : vector<8x1xf32> to vector<8x32xf32>
    %242 = arith.mulf %237, %241 : vector<8x32xf32>
    %243 = vector.broadcast %223 : vector<1x32xf32> to vector<8x32xf32>
    %244 = arith.mulf %242, %243 : vector<8x32xf32>
    %245 = vector.broadcast %224 : vector<1x32xf32> to vector<8x32xf32>
    %246 = arith.addf %244, %245 : vector<8x32xf32>
    %247 = arith.addf %206, %246 : vector<8x32xf32>
    %248 = vector.shape_cast %247 : vector<8x32xf32> to vector<1x8x32xf32>
    %c0_113 = arith.constant 0 : index
    %c0_114 = arith.constant 0 : index
    %c0_115 = arith.constant 0 : index
    %249 = vector.load %arg33[%c0_113, %c0_114, %c0_115] : memref<1x8x32xf32, #tpu.memory_space<vmem>>, vector<1x8x32xf32>
    tpu.vector_store %arg33[%c0_113, %c0_114, %c0_115], %248 {strides = array<i32>} : memref<1x8x32xf32, #tpu.memory_space<vmem>>, vector<1x8x32xf32>,
    return
  }
  func.func @transform_0(%arg0: i32) -> (i32, i32, i32) {
    %c0_i32 = arith.constant 0 : i32
    %c0_i32_0 = arith.constant 0 : i32
    %c0_i32_1 = arith.constant 0 : i32
    return %arg0, %c0_i32, %c0_i32_0 : i32, i32, i32
  }
  func.func @transform_1(%arg0: i32) -> (i32, i32, i32) {
    %c0_i32 = arith.constant 0 : i32
    %c0_i32_0 = arith.constant 0 : i32
    %c0_i32_1 = arith.constant 0 : i32
    return %arg0, %c0_i32, %c0_i32_0 : i32, i32, i32
  }
  func.func @transform_2(%arg0: i32) -> (i32, i32) {
    %c0_i32 = arith.constant 0 : i32
    %c0_i32_0 = arith.constant 0 : i32
    %c0_i32_1 = arith.constant 0 : i32
    return %c0_i32, %c0_i32_0 : i32, i32
  }
  func.func @transform_3(%arg0: i32) -> (i32, i32) {
    %c0_i32 = arith.constant 0 : i32
    %c0_i32_0 = arith.constant 0 : i32
    %c0_i32_1 = arith.constant 0 : i32
    return %c0_i32, %c0_i32_0 : i32, i32
  }
  func.func @transform_4(%arg0: i32) -> (i32, i32) {
    %c0_i32 = arith.constant 0 : i32
    %c0_i32_0 = arith.constant 0 : i32
    %c0_i32_1 = arith.constant 0 : i32
    return %c0_i32, %c0_i32_0 : i32, i32
  }
  func.func @transform_5(%arg0: i32) -> (i32, i32) {
    %c0_i32 = arith.constant 0 : i32
    %c0_i32_0 = arith.constant 0 : i32
    %c0_i32_1 = arith.constant 0 : i32
    return %c0_i32, %c0_i32_0 : i32, i32
  }
  func.func @transform_6(%arg0: i32) -> (i32, i32) {
    %c0_i32 = arith.constant 0 : i32
    %c0_i32_0 = arith.constant 0 : i32
    %c0_i32_1 = arith.constant 0 : i32
    return %c0_i32, %c0_i32_0 : i32, i32
  }
  func.func @transform_7(%arg0: i32) -> (i32, i32) {
    %c0_i32 = arith.constant 0 : i32
    %c0_i32_0 = arith.constant 0 : i32
    %c0_i32_1 = arith.constant 0 : i32
    return %c0_i32, %c0_i32_0 : i32, i32
  }
  func.func @transform_8(%arg0: i32) -> (i32, i32, i32) {
    %c0_i32 = arith.constant 0 : i32
    %c0_i32_0 = arith.constant 0 : i32
    %c0_i32_1 = arith.constant 0 : i32
    return %arg0, %c0_i32, %c0_i32_0 : i32, i32, i32
  }
  func.func @transform_9(%arg0: i32) -> (i32, i32) {
    %c0_i32 = arith.constant 0 : i32
    %c0_i32_0 = arith.constant 0 : i32
    %c0_i32_1 = arith.constant 0 : i32
    return %c0_i32, %c0_i32_0 : i32, i32
  }
  func.func @transform_10(%arg0: i32) -> (i32, i32) {
    %c0_i32 = arith.constant 0 : i32
    %c0_i32_0 = arith.constant 0 : i32
    %c0_i32_1 = arith.constant 0 : i32
    return %c0_i32, %c0_i32_0 : i32, i32
  }
  func.func @transform_11(%arg0: i32) -> (i32, i32) {
    %c0_i32 = arith.constant 0 : i32
    %c0_i32_0 = arith.constant 0 : i32
    %c0_i32_1 = arith.constant 0 : i32
    return %c0_i32, %c0_i32_0 : i32, i32
  }
  func.func @transform_12(%arg0: i32) -> (i32, i32) {
    %c0_i32 = arith.constant 0 : i32
    %c0_i32_0 = arith.constant 0 : i32
    %c0_i32_1 = arith.constant 0 : i32
    return %c0_i32, %c0_i32_0 : i32, i32
  }
  func.func @transform_13(%arg0: i32) -> (i32, i32, i32) {
    %c0_i32 = arith.constant 0 : i32
    %c0_i32_0 = arith.constant 0 : i32
    %c0_i32_1 = arith.constant 0 : i32
    return %arg0, %c0_i32, %c0_i32_0 : i32, i32, i32
  }
  func.func @transform_14(%arg0: i32) -> (i32, i32) {
    %c0_i32 = arith.constant 0 : i32
    %c0_i32_0 = arith.constant 0 : i32
    %c0_i32_1 = arith.constant 0 : i32
    return %c0_i32, %c0_i32_0 : i32, i32
  }
  func.func @transform_15(%arg0: i32) -> (i32, i32) {
    %c0_i32 = arith.constant 0 : i32
    %c0_i32_0 = arith.constant 0 : i32
    %c0_i32_1 = arith.constant 0 : i32
    return %c0_i32, %c0_i32_0 : i32, i32
  }
  func.func @transform_16(%arg0: i32) -> (i32, i32) {
    %c0_i32 = arith.constant 0 : i32
    %c0_i32_0 = arith.constant 0 : i32
    %c0_i32_1 = arith.constant 0 : i32
    return %c0_i32, %c0_i32_0 : i32, i32
  }
  func.func @transform_17(%arg0: i32) -> (i32, i32) {
    %c0_i32 = arith.constant 0 : i32
    %c0_i32_0 = arith.constant 0 : i32
    %c0_i32_1 = arith.constant 0 : i32
    return %c0_i32, %c0_i32_0 : i32, i32
  }
  func.func @transform_18(%arg0: i32) -> (i32, i32) {
    %c0_i32 = arith.constant 0 : i32
    %c0_i32_0 = arith.constant 0 : i32
    %c0_i32_1 = arith.constant 0 : i32
    return %c0_i32, %c0_i32_0 : i32, i32
  }
  func.func @transform_19(%arg0: i32) -> (i32, i32) {
    %c0_i32 = arith.constant 0 : i32
    %c0_i32_0 = arith.constant 0 : i32
    %c0_i32_1 = arith.constant 0 : i32
    return %c0_i32, %c0_i32_0 : i32, i32
  }
  func.func @transform_20(%arg0: i32) -> (i32, i32) {
    %c0_i32 = arith.constant 0 : i32
    %c0_i32_0 = arith.constant 0 : i32
    %c0_i32_1 = arith.constant 0 : i32
    return %c0_i32, %c0_i32_0 : i32, i32
  }
  func.func @transform_21(%arg0: i32) -> (i32, i32) {
    %c0_i32 = arith.constant 0 : i32
    %c0_i32_0 = arith.constant 0 : i32
    %c0_i32_1 = arith.constant 0 : i32
    return %c0_i32, %c0_i32_0 : i32, i32
  }
  func.func @transform_22(%arg0: i32) -> (i32, i32) {
    %c0_i32 = arith.constant 0 : i32
    %c0_i32_0 = arith.constant 0 : i32
    %c0_i32_1 = arith.constant 0 : i32
    return %c0_i32, %c0_i32_0 : i32, i32
  }
  func.func @transform_23(%arg0: i32) -> (i32, i32) {
    %c0_i32 = arith.constant 0 : i32
    %c0_i32_0 = arith.constant 0 : i32
    %c0_i32_1 = arith.constant 0 : i32
    return %c0_i32, %c0_i32_0 : i32, i32
  }
  func.func @transform_24(%arg0: i32) -> (i32, i32) {
    %c0_i32 = arith.constant 0 : i32
    %c0_i32_0 = arith.constant 0 : i32
    %c0_i32_1 = arith.constant 0 : i32
    return %c0_i32, %c0_i32_0 : i32, i32
  }
  func.func @transform_25(%arg0: i32) -> (i32, i32) {
    %c0_i32 = arith.constant 0 : i32
    %c0_i32_0 = arith.constant 0 : i32
    %c0_i32_1 = arith.constant 0 : i32
    return %c0_i32, %c0_i32_0 : i32, i32
  }
  func.func @transform_26(%arg0: i32) -> (i32, i32) {
    %c0_i32 = arith.constant 0 : i32
    %c0_i32_0 = arith.constant 0 : i32
    %c0_i32_1 = arith.constant 0 : i32
    return %c0_i32, %c0_i32_0 : i32, i32
  }
  func.func @transform_27(%arg0: i32) -> (i32, i32) {
    %c0_i32 = arith.constant 0 : i32
    %c0_i32_0 = arith.constant 0 : i32
    %c0_i32_1 = arith.constant 0 : i32
    return %c0_i32, %c0_i32_0 : i32, i32
  }
  func.func @transform_28(%arg0: i32) -> (i32, i32) {
    %c0_i32 = arith.constant 0 : i32
    %c0_i32_0 = arith.constant 0 : i32
    %c0_i32_1 = arith.constant 0 : i32
    return %c0_i32, %c0_i32_0 : i32, i32
  }
  func.func @transform_29(%arg0: i32) -> (i32, i32) {
    %c0_i32 = arith.constant 0 : i32
    %c0_i32_0 = arith.constant 0 : i32
    %c0_i32_1 = arith.constant 0 : i32
    return %c0_i32, %c0_i32_0 : i32, i32
  }
  func.func @transform_30(%arg0: i32) -> (i32, i32) {
    %c0_i32 = arith.constant 0 : i32
    %c0_i32_0 = arith.constant 0 : i32
    %c0_i32_1 = arith.constant 0 : i32
    return %c0_i32, %c0_i32_0 : i32, i32
  }
  func.func @transform_31(%arg0: i32) -> (i32, i32) {
    %c0_i32 = arith.constant 0 : i32
    %c0_i32_0 = arith.constant 0 : i32
    %c0_i32_1 = arith.constant 0 : i32
    return %c0_i32, %c0_i32_0 : i32, i32
  }
  func.func @transform_32(%arg0: i32) -> (i32, i32, i32) {
    %c0_i32 = arith.constant 0 : i32
    %c0_i32_0 = arith.constant 0 : i32
    %c0_i32_1 = arith.constant 0 : i32
    return %arg0, %c0_i32, %c0_i32_0 : i32, i32, i32
  }
}

module attributes {stable_mosaic.version = 11 : i64} {
  func.func @_self_moe_kernel(%arg0: i32, %arg1: memref<1x8x32xf32, #tpu.memory_space<vmem>>, %arg2: memref<1x8x2xf32, #tpu.memory_space<vmem>>, %arg3: memref<32x32xf32, #tpu.memory_space<vmem>>, %arg4: memref<2x128xf32, #tpu.memory_space<vmem>>, %arg5: memref<1x32xf32, #tpu.memory_space<vmem>>, %arg6: memref<1x32xf32, #tpu.memory_space<vmem>>, %arg7: memref<32x96xbf16, #tpu.memory_space<vmem>>, %arg8: memref<1x96xf32, #tpu.memory_space<vmem>>, %arg9: memref<32x32xbf16, #tpu.memory_space<vmem>>, %arg10: memref<1x32xf32, #tpu.memory_space<vmem>>, %arg11: memref<2x64xbf16, #tpu.memory_space<vmem>>, %arg12: memref<1x64xf32, #tpu.memory_space<vmem>>, %arg13: memref<64x64xbf16, #tpu.memory_space<vmem>>, %arg14: memref<1x64xf32, #tpu.memory_space<vmem>>, %arg15: memref<64x2xbf16, #tpu.memory_space<vmem>>, %arg16: memref<1x2xf32, #tpu.memory_space<vmem>>, %arg17: memref<32x128xbf16, #tpu.memory_space<vmem>>, %arg18: memref<1x128xf32, #tpu.memory_space<vmem>>, %arg19: memref<128x32xbf16, #tpu.memory_space<vmem>>, %arg20: memref<2x32xf32, #tpu.memory_space<vmem>>, %arg21: memref<1x32xf32, #tpu.memory_space<vmem>>, %arg22: memref<1x32xf32, #tpu.memory_space<vmem>>, %arg23: memref<1x8x32xf32, #tpu.memory_space<vmem>>) attributes {dimension_semantics = [#tpu.dimension_semantics<parallel>], iteration_bounds = array<i64: 2>, scalar_prefetch = 0 : i64, scratch_operands = 0 : i64, tpu.core_type = #tpu.core_type<tc>, window_params = [{transform_indices = @transform_0, window_bounds = array<i64: 1, 8, 32>}, {transform_indices = @transform_1, window_bounds = array<i64: 1, 8, 2>}, {pipeline_mode = #tpu.pipeline_mode<synchronous>, transform_indices = @transform_2, window_bounds = array<i64: 32, 32>}, {pipeline_mode = #tpu.pipeline_mode<synchronous>, transform_indices = @transform_3, window_bounds = array<i64: 2, 128>}, {pipeline_mode = #tpu.pipeline_mode<synchronous>, transform_indices = @transform_4, window_bounds = array<i64: 1, 32>}, {pipeline_mode = #tpu.pipeline_mode<synchronous>, transform_indices = @transform_5, window_bounds = array<i64: 1, 32>}, {pipeline_mode = #tpu.pipeline_mode<synchronous>, transform_indices = @transform_6, window_bounds = array<i64: 32, 96>}, {pipeline_mode = #tpu.pipeline_mode<synchronous>, transform_indices = @transform_7, window_bounds = array<i64: 1, 96>}, {pipeline_mode = #tpu.pipeline_mode<synchronous>, transform_indices = @transform_8, window_bounds = array<i64: 32, 32>}, {pipeline_mode = #tpu.pipeline_mode<synchronous>, transform_indices = @transform_9, window_bounds = array<i64: 1, 32>}, {pipeline_mode = #tpu.pipeline_mode<synchronous>, transform_indices = @transform_10, window_bounds = array<i64: 2, 64>}, {pipeline_mode = #tpu.pipeline_mode<synchronous>, transform_indices = @transform_11, window_bounds = array<i64: 1, 64>}, {pipeline_mode = #tpu.pipeline_mode<synchronous>, transform_indices = @transform_12, window_bounds = array<i64: 64, 64>}, {pipeline_mode = #tpu.pipeline_mode<synchronous>, transform_indices = @transform_13, window_bounds = array<i64: 1, 64>}, {pipeline_mode = #tpu.pipeline_mode<synchronous>, transform_indices = @transform_14, window_bounds = array<i64: 64, 2>}, {pipeline_mode = #tpu.pipeline_mode<synchronous>, transform_indices = @transform_15, window_bounds = array<i64: 1, 2>}, {pipeline_mode = #tpu.pipeline_mode<synchronous>, transform_indices = @transform_16, window_bounds = array<i64: 32, 128>}, {pipeline_mode = #tpu.pipeline_mode<synchronous>, transform_indices = @transform_17, window_bounds = array<i64: 1, 128>}, {pipeline_mode = #tpu.pipeline_mode<synchronous>, transform_indices = @transform_18, window_bounds = array<i64: 128, 32>}, {pipeline_mode = #tpu.pipeline_mode<synchronous>, transform_indices = @transform_19, window_bounds = array<i64: 2, 32>}, {pipeline_mode = #tpu.pipeline_mode<synchronous>, transform_indices = @transform_20, window_bounds = array<i64: 1, 32>}, {pipeline_mode = #tpu.pipeline_mode<synchronous>, transform_indices = @transform_21, window_bounds = array<i64: 1, 32>}, {transform_indices = @transform_22, window_bounds = array<i64: 1, 8, 32>}]} {
    %c0 = arith.constant 0 : index
    %c0_0 = arith.constant 0 : index
    %c0_1 = arith.constant 0 : index
    %0 = vector.load %arg1[%c0, %c0_0, %c0_1] : memref<1x8x32xf32, #tpu.memory_space<vmem>>, vector<1x8x32xf32>
    %1 = vector.shape_cast %0 : vector<1x8x32xf32> to vector<8x32xf32>
    %c0_2 = arith.constant 0 : index
    %c0_3 = arith.constant 0 : index
    %2 = vector.load %arg3[%c0_2, %c0_3] : memref<32x32xf32, #tpu.memory_space<vmem>>, vector<32x32xf32>
    %c0_4 = arith.constant 0 : index
    %c0_5 = arith.constant 0 : index
    %c0_6 = arith.constant 0 : index
    %3 = vector.load %arg2[%c0_4, %c0_5, %c0_6] : memref<1x8x2xf32, #tpu.memory_space<vmem>>, vector<1x8x2xf32>
    %4 = vector.shape_cast %3 : vector<1x8x2xf32> to vector<8x2xf32>
    %c0_7 = arith.constant 0 : index
    %c0_8 = arith.constant 0 : index
    %5 = vector.load %arg11[%c0_7, %c0_8] : memref<2x64xbf16, #tpu.memory_space<vmem>>, vector<2x64xbf16>
    %6 = arith.truncf %4 : vector<8x2xf32> to vector<8x2xbf16>
    %cst = arith.constant dense<0.000000e+00> : vector<8x64xf32>
    %7 = tpu.matmul %6, %5, %cst {dimension_numbers = #tpu.dot_dimension_numbers<[1], [0], [0], [1], [0, 0, 1, 1], [], []>} : vector<8x2xbf16>, vector<2x64xbf16>, vector<8x64xf32> -> vector<8x64xf32>
    %c0_9 = arith.constant 0 : index
    %c0_10 = arith.constant 0 : index
    %8 = vector.load %arg12[%c0_9, %c0_10] : memref<1x64xf32, #tpu.memory_space<vmem>>, vector<1x64xf32>
    %9 = vector.broadcast %8 : vector<1x64xf32> to vector<8x64xf32>
    %10 = arith.addf %7, %9 : vector<8x64xf32>
    %11 = math.tanh %10 : vector<8x64xf32>
    %c0_11 = arith.constant 0 : index
    %c0_12 = arith.constant 0 : index
    %12 = vector.load %arg13[%c0_11, %c0_12] : memref<64x64xbf16, #tpu.memory_space<vmem>>, vector<64x64xbf16>
    %13 = arith.truncf %11 : vector<8x64xf32> to vector<8x64xbf16>
    %cst_13 = arith.constant dense<0.000000e+00> : vector<8x64xf32>
    %14 = tpu.matmul %13, %12, %cst_13 {dimension_numbers = #tpu.dot_dimension_numbers<[1], [0], [0], [1], [0, 0, 1, 1], [], []>} : vector<8x64xbf16>, vector<64x64xbf16>, vector<8x64xf32> -> vector<8x64xf32>
    %c0_14 = arith.constant 0 : index
    %c0_15 = arith.constant 0 : index
    %15 = vector.load %arg14[%c0_14, %c0_15] : memref<1x64xf32, #tpu.memory_space<vmem>>, vector<1x64xf32>
    %16 = vector.broadcast %15 : vector<1x64xf32> to vector<8x64xf32>
    %17 = arith.addf %14, %16 : vector<8x64xf32>
    %18 = math.tanh %17 : vector<8x64xf32>
    %c0_16 = arith.constant 0 : index
    %c0_17 = arith.constant 0 : index
    %19 = vector.load %arg15[%c0_16, %c0_17] : memref<64x2xbf16, #tpu.memory_space<vmem>>, vector<64x2xbf16>
    %20 = arith.truncf %18 : vector<8x64xf32> to vector<8x64xbf16>
    %cst_18 = arith.constant dense<0.000000e+00> : vector<8x2xf32>
    %21 = tpu.matmul %20, %19, %cst_18 {dimension_numbers = #tpu.dot_dimension_numbers<[1], [0], [0], [1], [0, 0, 1, 1], [], []>} : vector<8x64xbf16>, vector<64x2xbf16>, vector<8x2xf32> -> vector<8x2xf32>
    %c0_19 = arith.constant 0 : index
    %c0_20 = arith.constant 0 : index
    %22 = vector.load %arg16[%c0_19, %c0_20] : memref<1x2xf32, #tpu.memory_space<vmem>>, vector<1x2xf32>
    %23 = vector.broadcast %22 : vector<1x2xf32> to vector<8x2xf32>
    %24 = arith.addf %21, %23 : vector<8x2xf32>
    %cst_21 = arith.constant dense<0xFF800000> : vector<8xf32>
    %25 = vector.multi_reduction <maximumf>, %24, %cst_21 [1] : vector<8x2xf32> to vector<8xf32>
    %26 = vector.shape_cast %25 : vector<8xf32> to vector<8x1xf32>
    %27 = vector.broadcast %26 : vector<8x1xf32> to vector<8x2xf32>
    %28 = arith.subf %24, %27 : vector<8x2xf32>
    %29 = math.exp %28 : vector<8x2xf32>
    %cst_22 = arith.constant dense<0.000000e+00> : vector<8xf32>
    %30 = vector.multi_reduction <add>, %29, %cst_22 [1] : vector<8x2xf32> to vector<8xf32>
    %31 = vector.shape_cast %30 : vector<8xf32> to vector<8x1xf32>
    %32 = tpu.reciprocal %31 {approx = true} : vector<8x1xf32> -> vector<8x1xf32>
    %33 = vector.broadcast %32 : vector<8x1xf32> to vector<8x2xf32>
    %34 = arith.mulf %29, %33 : vector<8x2xf32>
    %c0_23 = arith.constant 0 : index
    %c0_24 = arith.constant 0 : index
    %35 = vector.load %arg5[%c0_23, %c0_24] : memref<1x32xf32, #tpu.memory_space<vmem>>, vector<1x32xf32>
    %c0_25 = arith.constant 0 : index
    %c0_26 = arith.constant 0 : index
    %36 = vector.load %arg6[%c0_25, %c0_26] : memref<1x32xf32, #tpu.memory_space<vmem>>, vector<1x32xf32>
    %cst_27 = arith.constant dense<0.000000e+00> : vector<8xf32>
    %37 = vector.multi_reduction <add>, %1, %cst_27 [1] : vector<8x32xf32> to vector<8xf32>
    %38 = vector.shape_cast %37 : vector<8xf32> to vector<8x1xf32>
    %cst_28 = arith.constant 3.200000e+01 : f32
    %39 = vector.broadcast %cst_28 : f32 to vector<8x1xf32>
    %40 = arith.divf %38, %39 : vector<8x1xf32>
    %41 = vector.broadcast %40 : vector<8x1xf32> to vector<8x32xf32>
    %42 = arith.subf %1, %41 : vector<8x32xf32>
    %43 = arith.mulf %42, %42 : vector<8x32xf32>
    %cst_29 = arith.constant dense<0.000000e+00> : vector<8xf32>
    %44 = vector.multi_reduction <add>, %43, %cst_29 [1] : vector<8x32xf32> to vector<8xf32>
    %45 = vector.shape_cast %44 : vector<8xf32> to vector<8x1xf32>
    %cst_30 = arith.constant 3.200000e+01 : f32
    %46 = vector.broadcast %cst_30 : f32 to vector<8x1xf32>
    %47 = arith.divf %45, %46 : vector<8x1xf32>
    %48 = vector.broadcast %40 : vector<8x1xf32> to vector<8x32xf32>
    %49 = arith.subf %1, %48 : vector<8x32xf32>
    %cst_31 = arith.constant 9.99999974E-6 : f32
    %50 = vector.broadcast %cst_31 : f32 to vector<8x1xf32>
    %51 = arith.addf %47, %50 : vector<8x1xf32>
    %52 = math.rsqrt %51 : vector<8x1xf32>
    %53 = vector.broadcast %52 : vector<8x1xf32> to vector<8x32xf32>
    %54 = arith.mulf %49, %53 : vector<8x32xf32>
    %55 = vector.broadcast %35 : vector<1x32xf32> to vector<8x32xf32>
    %56 = arith.mulf %54, %55 : vector<8x32xf32>
    %57 = vector.broadcast %36 : vector<1x32xf32> to vector<8x32xf32>
    %58 = arith.addf %56, %57 : vector<8x32xf32>
    %c0_32 = arith.constant 0 : index
    %c0_33 = arith.constant 0 : index
    %59 = vector.load %arg7[%c0_32, %c0_33] : memref<32x96xbf16, #tpu.memory_space<vmem>>, vector<32x96xbf16>
    %60 = arith.truncf %58 : vector<8x32xf32> to vector<8x32xbf16>
    %cst_34 = arith.constant dense<0.000000e+00> : vector<8x96xf32>
    %61 = tpu.matmul %60, %59, %cst_34 {dimension_numbers = #tpu.dot_dimension_numbers<[1], [0], [0], [1], [0, 0, 1, 1], [], []>} : vector<8x32xbf16>, vector<32x96xbf16>, vector<8x96xf32> -> vector<8x96xf32>
    %c0_35 = arith.constant 0 : index
    %c0_36 = arith.constant 0 : index
    %62 = vector.load %arg8[%c0_35, %c0_36] : memref<1x96xf32, #tpu.memory_space<vmem>>, vector<1x96xf32>
    %63 = vector.broadcast %62 : vector<1x96xf32> to vector<8x96xf32>
    %64 = arith.addf %61, %63 : vector<8x96xf32>
    %65 = vector.extract_strided_slice %64 {offsets = [0, 0], sizes = [8, 32], strides = [1, 1]} : vector<8x96xf32> to vector<8x32xf32>
    %cst_37 = arith.constant dense<0xFF800000> : vector<8xf32>
    %66 = vector.multi_reduction <maximumf>, %65, %cst_37 [1] : vector<8x32xf32> to vector<8xf32>
    %67 = vector.shape_cast %66 : vector<8xf32> to vector<8x1xf32>
    %68 = vector.broadcast %67 : vector<8x1xf32> to vector<8x32xf32>
    %69 = arith.subf %65, %68 : vector<8x32xf32>
    %70 = math.exp %69 : vector<8x32xf32>
    %cst_38 = arith.constant dense<0.000000e+00> : vector<8x32xf32>
    %71 = tpu.matmul %70, %2, %cst_38 {dimension_numbers = #tpu.dot_dimension_numbers<[1], [0], [0], [1], [0, 0, 1, 1], [], []>} : vector<8x32xf32>, vector<32x32xf32>, vector<8x32xf32> -> vector<8x32xf32>
    %72 = tpu.reciprocal %71 {approx = true} : vector<8x32xf32> -> vector<8x32xf32>
    %73 = arith.mulf %70, %72 : vector<8x32xf32>
    %74 = vector.extract_strided_slice %64 {offsets = [0, 32], sizes = [8, 32], strides = [1, 1]} : vector<8x96xf32> to vector<8x32xf32>
    %cst_39 = arith.constant dense<0xFF800000> : vector<8xf32>
    %75 = vector.multi_reduction <maximumf>, %74, %cst_39 [1] : vector<8x32xf32> to vector<8xf32>
    %76 = vector.shape_cast %75 : vector<8xf32> to vector<8x1xf32>
    %77 = vector.broadcast %76 : vector<8x1xf32> to vector<8x32xf32>
    %78 = arith.subf %74, %77 : vector<8x32xf32>
    %79 = math.exp %78 : vector<8x32xf32>
    %cst_40 = arith.constant dense<0.000000e+00> : vector<8x32xf32>
    %80 = tpu.matmul %79, %2, %cst_40 {dimension_numbers = #tpu.dot_dimension_numbers<[1], [0], [0], [1], [0, 0, 1, 1], [], []>} : vector<8x32xf32>, vector<32x32xf32>, vector<8x32xf32> -> vector<8x32xf32>
    %81 = tpu.reciprocal %80 {approx = true} : vector<8x32xf32> -> vector<8x32xf32>
    %82 = arith.mulf %79, %81 : vector<8x32xf32>
    %83 = vector.extract_strided_slice %64 {offsets = [0, 64], sizes = [8, 32], strides = [1, 1]} : vector<8x96xf32> to vector<8x32xf32>
    %84 = vector.shape_cast %73 : vector<8x32xf32> to vector<1x8x32xf32>
    %85 = vector.shape_cast %82 : vector<8x32xf32> to vector<1x8x32xf32>
    %86 = vector.shape_cast %83 : vector<8x32xf32> to vector<1x8x32xf32>
    %cst_41 = arith.constant dense<0.000000e+00> : vector<1x32xf32>
    %87 = vector.multi_reduction <add>, %85, %cst_41 [1] : vector<1x8x32xf32> to vector<1x32xf32>
    %88 = vector.shape_cast %87 : vector<1x32xf32> to vector<1x1x32xf32>
    %89 = vector.broadcast %88 : vector<1x1x32xf32> to vector<1x8x32xf32>
    %90 = arith.mulf %84, %89 : vector<1x8x32xf32>
    %91 = vector.shape_cast %90 : vector<1x8x32xf32> to vector<8x32xf32>
    %cst_42 = arith.constant dense<0.000000e+00> : vector<8x32xf32>
    %92 = tpu.matmul %91, %2, %cst_42 {dimension_numbers = #tpu.dot_dimension_numbers<[1], [0], [0], [1], [0, 0, 1, 1], [], []>} : vector<8x32xf32>, vector<32x32xf32>, vector<8x32xf32> -> vector<8x32xf32>
    %93 = tpu.reciprocal %92 {approx = true} : vector<8x32xf32> -> vector<8x32xf32>
    %94 = vector.shape_cast %93 : vector<8x32xf32> to vector<1x8x32xf32>
    %95 = arith.truncf %85 : vector<1x8x32xf32> to vector<1x8x32xbf16>
    %96 = arith.truncf %86 : vector<1x8x32xf32> to vector<1x8x32xbf16>
    "tpu.trace_start"() <{level = 10 : i32, message = "btc,btd->bcd"}> : () -> ()
    %cst_43 = arith.constant dense<0.000000e+00> : vector<1x32x32xf32>
    %97 = tpu.matmul %95, %96, %cst_43 {dimension_numbers = #tpu.dot_dimension_numbers<[1], [1], [2], [2], [0, 0, 0, 2, 1, 2], [0], [0]>} : vector<1x8x32xbf16>, vector<1x8x32xbf16>, vector<1x32x32xf32> -> vector<1x32x32xf32>
    "tpu.trace_stop"() : () -> ()
    %98 = vector.shape_cast %2 : vector<32x32xf32> to vector<1x32x32xf32>
    %99 = arith.mulf %97, %98 : vector<1x32x32xf32>
    %100 = arith.truncf %99 : vector<1x32x32xf32> to vector<1x32x32xbf16>
    %101 = arith.truncf %84 : vector<1x8x32xf32> to vector<1x8x32xbf16>
    "tpu.trace_start"() <{level = 10 : i32, message = "btc,bcd->btd"}> : () -> ()
    %cst_44 = arith.constant dense<0.000000e+00> : vector<1x8x32xf32>
    %102 = tpu.matmul %101, %100, %cst_44 {dimension_numbers = #tpu.dot_dimension_numbers<[2], [1], [1], [2], [0, 0, 0, 1, 1, 2], [0], [0]>} : vector<1x8x32xbf16>, vector<1x32x32xbf16>, vector<1x8x32xf32> -> vector<1x8x32xf32>
    "tpu.trace_stop"() : () -> ()
    %103 = arith.mulf %102, %94 : vector<1x8x32xf32>
    %104 = vector.shape_cast %103 : vector<1x8x32xf32> to vector<8x32xf32>
    %105 = arith.addf %73, %104 : vector<8x32xf32>
    %c0_45 = arith.constant 0 : index
    %c0_46 = arith.constant 0 : index
    %106 = vector.load %arg9[%c0_45, %c0_46] : memref<32x32xbf16, #tpu.memory_space<vmem>>, vector<32x32xbf16>
    %107 = arith.truncf %105 : vector<8x32xf32> to vector<8x32xbf16>
    %cst_47 = arith.constant dense<0.000000e+00> : vector<8x32xf32>
    %108 = tpu.matmul %107, %106, %cst_47 {dimension_numbers = #tpu.dot_dimension_numbers<[1], [0], [0], [1], [0, 0, 1, 1], [], []>} : vector<8x32xbf16>, vector<32x32xbf16>, vector<8x32xf32> -> vector<8x32xf32>
    %109 = arith.addf %1, %108 : vector<8x32xf32>
    %c0_48 = arith.constant 0 : index
    %c0_49 = arith.constant 0 : index
    %110 = vector.load %arg10[%c0_48, %c0_49] : memref<1x32xf32, #tpu.memory_space<vmem>>, vector<1x32xf32>
    %111 = vector.broadcast %110 : vector<1x32xf32> to vector<8x32xf32>
    %112 = arith.addf %109, %111 : vector<8x32xf32>
    %c0_50 = arith.constant 0 : index
    %c0_51 = arith.constant 0 : index
    %113 = vector.load %arg4[%c0_50, %c0_51] : memref<2x128xf32, #tpu.memory_space<vmem>>, vector<2x128xf32>
    %c0_52 = arith.constant 0 : index
    %c0_53 = arith.constant 0 : index
    %114 = vector.load %arg17[%c0_52, %c0_53] : memref<32x128xbf16, #tpu.memory_space<vmem>>, vector<32x128xbf16>
    %115 = arith.truncf %112 : vector<8x32xf32> to vector<8x32xbf16>
    %cst_54 = arith.constant dense<0.000000e+00> : vector<8x128xf32>
    %116 = tpu.matmul %115, %114, %cst_54 {dimension_numbers = #tpu.dot_dimension_numbers<[1], [0], [0], [1], [0, 0, 1, 1], [], []>} : vector<8x32xbf16>, vector<32x128xbf16>, vector<8x128xf32> -> vector<8x128xf32>
    %c0_55 = arith.constant 0 : index
    %c0_56 = arith.constant 0 : index
    %117 = vector.load %arg18[%c0_55, %c0_56] : memref<1x128xf32, #tpu.memory_space<vmem>>, vector<1x128xf32>
    %118 = vector.broadcast %117 : vector<1x128xf32> to vector<8x128xf32>
    %119 = arith.addf %116, %118 : vector<8x128xf32>
    %120 = math.tanh %119 : vector<8x128xf32>
    %cst_57 = arith.constant dense<0.000000e+00> : vector<8x128xf32>
    %121 = tpu.matmul %34, %113, %cst_57 {dimension_numbers = #tpu.dot_dimension_numbers<[1], [0], [0], [1], [0, 0, 1, 1], [], []>} : vector<8x2xf32>, vector<2x128xf32>, vector<8x128xf32> -> vector<8x128xf32>
    %122 = arith.mulf %120, %121 : vector<8x128xf32>
    %c0_58 = arith.constant 0 : index
    %c0_59 = arith.constant 0 : index
    %123 = vector.load %arg19[%c0_58, %c0_59] : memref<128x32xbf16, #tpu.memory_space<vmem>>, vector<128x32xbf16>
    %124 = arith.truncf %122 : vector<8x128xf32> to vector<8x128xbf16>
    %cst_60 = arith.constant dense<0.000000e+00> : vector<8x32xf32>
    %125 = tpu.matmul %124, %123, %cst_60 {dimension_numbers = #tpu.dot_dimension_numbers<[1], [0], [0], [1], [0, 0, 1, 1], [], []>} : vector<8x128xbf16>, vector<128x32xbf16>, vector<8x32xf32> -> vector<8x32xf32>
    %c0_61 = arith.constant 0 : index
    %c0_62 = arith.constant 0 : index
    %126 = vector.load %arg20[%c0_61, %c0_62] : memref<2x32xf32, #tpu.memory_space<vmem>>, vector<2x32xf32>
    %cst_63 = arith.constant dense<0.000000e+00> : vector<8x32xf32>
    %127 = tpu.matmul %34, %126, %cst_63 {dimension_numbers = #tpu.dot_dimension_numbers<[1], [0], [0], [1], [0, 0, 1, 1], [], []>} : vector<8x2xf32>, vector<2x32xf32>, vector<8x32xf32> -> vector<8x32xf32>
    %128 = arith.addf %125, %127 : vector<8x32xf32>
    %c0_64 = arith.constant 0 : index
    %c0_65 = arith.constant 0 : index
    %129 = vector.load %arg21[%c0_64, %c0_65] : memref<1x32xf32, #tpu.memory_space<vmem>>, vector<1x32xf32>
    %c0_66 = arith.constant 0 : index
    %c0_67 = arith.constant 0 : index
    %130 = vector.load %arg22[%c0_66, %c0_67] : memref<1x32xf32, #tpu.memory_space<vmem>>, vector<1x32xf32>
    %cst_68 = arith.constant dense<0.000000e+00> : vector<8xf32>
    %131 = vector.multi_reduction <add>, %128, %cst_68 [1] : vector<8x32xf32> to vector<8xf32>
    %132 = vector.shape_cast %131 : vector<8xf32> to vector<8x1xf32>
    %cst_69 = arith.constant 3.200000e+01 : f32
    %133 = vector.broadcast %cst_69 : f32 to vector<8x1xf32>
    %134 = arith.divf %132, %133 : vector<8x1xf32>
    %135 = vector.broadcast %134 : vector<8x1xf32> to vector<8x32xf32>
    %136 = arith.subf %128, %135 : vector<8x32xf32>
    %137 = arith.mulf %136, %136 : vector<8x32xf32>
    %cst_70 = arith.constant dense<0.000000e+00> : vector<8xf32>
    %138 = vector.multi_reduction <add>, %137, %cst_70 [1] : vector<8x32xf32> to vector<8xf32>
    %139 = vector.shape_cast %138 : vector<8xf32> to vector<8x1xf32>
    %cst_71 = arith.constant 3.200000e+01 : f32
    %140 = vector.broadcast %cst_71 : f32 to vector<8x1xf32>
    %141 = arith.divf %139, %140 : vector<8x1xf32>
    %142 = vector.broadcast %134 : vector<8x1xf32> to vector<8x32xf32>
    %143 = arith.subf %128, %142 : vector<8x32xf32>
    %cst_72 = arith.constant 9.99999974E-6 : f32
    %144 = vector.broadcast %cst_72 : f32 to vector<8x1xf32>
    %145 = arith.addf %141, %144 : vector<8x1xf32>
    %146 = math.rsqrt %145 : vector<8x1xf32>
    %147 = vector.broadcast %146 : vector<8x1xf32> to vector<8x32xf32>
    %148 = arith.mulf %143, %147 : vector<8x32xf32>
    %149 = vector.broadcast %129 : vector<1x32xf32> to vector<8x32xf32>
    %150 = arith.mulf %148, %149 : vector<8x32xf32>
    %151 = vector.broadcast %130 : vector<1x32xf32> to vector<8x32xf32>
    %152 = arith.addf %150, %151 : vector<8x32xf32>
    %153 = arith.addf %112, %152 : vector<8x32xf32>
    %154 = vector.shape_cast %153 : vector<8x32xf32> to vector<1x8x32xf32>
    %c0_73 = arith.constant 0 : index
    %c0_74 = arith.constant 0 : index
    %c0_75 = arith.constant 0 : index
    %155 = vector.load %arg23[%c0_73, %c0_74, %c0_75] : memref<1x8x32xf32, #tpu.memory_space<vmem>>, vector<1x8x32xf32>
    tpu.vector_store %arg23[%c0_73, %c0_74, %c0_75], %154 {strides = array<i32>} : memref<1x8x32xf32, #tpu.memory_space<vmem>>, vector<1x8x32xf32>,
    return
  }
  func.func @transform_0(%arg0: i32) -> (i32, i32, i32) {
    %c0_i32 = arith.constant 0 : i32
    %c0_i32_0 = arith.constant 0 : i32
    %c0_i32_1 = arith.constant 0 : i32
    return %arg0, %c0_i32, %c0_i32_0 : i32, i32, i32
  }
  func.func @transform_1(%arg0: i32) -> (i32, i32, i32) {
    %c0_i32 = arith.constant 0 : i32
    %c0_i32_0 = arith.constant 0 : i32
    %c0_i32_1 = arith.constant 0 : i32
    return %arg0, %c0_i32, %c0_i32_0 : i32, i32, i32
  }
  func.func @transform_2(%arg0: i32) -> (i32, i32) {
    %c0_i32 = arith.constant 0 : i32
    %c0_i32_0 = arith.constant 0 : i32
    %c0_i32_1 = arith.constant 0 : i32
    return %c0_i32, %c0_i32_0 : i32, i32
  }
  func.func @transform_3(%arg0: i32) -> (i32, i32) {
    %c0_i32 = arith.constant 0 : i32
    %c0_i32_0 = arith.constant 0 : i32
    %c0_i32_1 = arith.constant 0 : i32
    return %c0_i32, %c0_i32_0 : i32, i32
  }
  func.func @transform_4(%arg0: i32) -> (i32, i32) {
    %c0_i32 = arith.constant 0 : i32
    %c0_i32_0 = arith.constant 0 : i32
    %c0_i32_1 = arith.constant 0 : i32
    return %c0_i32, %c0_i32_0 : i32, i32
  }
  func.func @transform_5(%arg0: i32) -> (i32, i32) {
    %c0_i32 = arith.constant 0 : i32
    %c0_i32_0 = arith.constant 0 : i32
    %c0_i32_1 = arith.constant 0 : i32
    return %c0_i32, %c0_i32_0 : i32, i32
  }
  func.func @transform_6(%arg0: i32) -> (i32, i32) {
    %c0_i32 = arith.constant 0 : i32
    %c0_i32_0 = arith.constant 0 : i32
    %c0_i32_1 = arith.constant 0 : i32
    return %c0_i32, %c0_i32_0 : i32, i32
  }
  func.func @transform_7(%arg0: i32) -> (i32, i32) {
    %c0_i32 = arith.constant 0 : i32
    %c0_i32_0 = arith.constant 0 : i32
    %c0_i32_1 = arith.constant 0 : i32
    return %c0_i32, %c0_i32_0 : i32, i32
  }
  func.func @transform_8(%arg0: i32) -> (i32, i32) {
    %c0_i32 = arith.constant 0 : i32
    %c0_i32_0 = arith.constant 0 : i32
    %c0_i32_1 = arith.constant 0 : i32
    return %c0_i32, %c0_i32_0 : i32, i32
  }
  func.func @transform_9(%arg0: i32) -> (i32, i32) {
    %c0_i32 = arith.constant 0 : i32
    %c0_i32_0 = arith.constant 0 : i32
    %c0_i32_1 = arith.constant 0 : i32
    return %c0_i32, %c0_i32_0 : i32, i32
  }
  func.func @transform_10(%arg0: i32) -> (i32, i32) {
    %c0_i32 = arith.constant 0 : i32
    %c0_i32_0 = arith.constant 0 : i32
    %c0_i32_1 = arith.constant 0 : i32
    return %c0_i32, %c0_i32_0 : i32, i32
  }
  func.func @transform_11(%arg0: i32) -> (i32, i32) {
    %c0_i32 = arith.constant 0 : i32
    %c0_i32_0 = arith.constant 0 : i32
    %c0_i32_1 = arith.constant 0 : i32
    return %c0_i32, %c0_i32_0 : i32, i32
  }
  func.func @transform_12(%arg0: i32) -> (i32, i32) {
    %c0_i32 = arith.constant 0 : i32
    %c0_i32_0 = arith.constant 0 : i32
    %c0_i32_1 = arith.constant 0 : i32
    return %c0_i32, %c0_i32_0 : i32, i32
  }
  func.func @transform_13(%arg0: i32) -> (i32, i32) {
    %c0_i32 = arith.constant 0 : i32
    %c0_i32_0 = arith.constant 0 : i32
    %c0_i32_1 = arith.constant 0 : i32
    return %c0_i32, %c0_i32_0 : i32, i32
  }
  func.func @transform_14(%arg0: i32) -> (i32, i32) {
    %c0_i32 = arith.constant 0 : i32
    %c0_i32_0 = arith.constant 0 : i32
    %c0_i32_1 = arith.constant 0 : i32
    return %c0_i32, %c0_i32_0 : i32, i32
  }
  func.func @transform_15(%arg0: i32) -> (i32, i32) {
    %c0_i32 = arith.constant 0 : i32
    %c0_i32_0 = arith.constant 0 : i32
    %c0_i32_1 = arith.constant 0 : i32
    return %c0_i32, %c0_i32_0 : i32, i32
  }
  func.func @transform_16(%arg0: i32) -> (i32, i32) {
    %c0_i32 = arith.constant 0 : i32
    %c0_i32_0 = arith.constant 0 : i32
    %c0_i32_1 = arith.constant 0 : i32
    return %c0_i32, %c0_i32_0 : i32, i32
  }
  func.func @transform_17(%arg0: i32) -> (i32, i32) {
    %c0_i32 = arith.constant 0 : i32
    %c0_i32_0 = arith.constant 0 : i32
    %c0_i32_1 = arith.constant 0 : i32
    return %c0_i32, %c0_i32_0 : i32, i32
  }
  func.func @transform_18(%arg0: i32) -> (i32, i32) {
    %c0_i32 = arith.constant 0 : i32
    %c0_i32_0 = arith.constant 0 : i32
    %c0_i32_1 = arith.constant 0 : i32
    return %c0_i32, %c0_i32_0 : i32, i32
  }
  func.func @transform_19(%arg0: i32) -> (i32, i32) {
    %c0_i32 = arith.constant 0 : i32
    %c0_i32_0 = arith.constant 0 : i32
    %c0_i32_1 = arith.constant 0 : i32
    return %c0_i32, %c0_i32_0 : i32, i32
  }
  func.func @transform_20(%arg0: i32) -> (i32, i32) {
    %c0_i32 = arith.constant 0 : i32
    %c0_i32_0 = arith.constant 0 : i32
    %c0_i32_1 = arith.constant 0 : i32
    return %c0_i32, %c0_i32_0 : i32, i32
  }
  func.func @transform_21(%arg0: i32) -> (i32, i32) {
    %c0_i32 = arith.constant 0 : i32
    %c0_i32_0 = arith.constant 0 : i32
    %c0_i32_1 = arith.constant 0 : i32
    return %c0_i32, %c0_i32_0 : i32, i32
  }
  func.func @transform_22(%arg0: i32) -> (i32, i32, i32) {
    %c0_i32 = arith.constant 0 : i32
    %c0_i32_0 = arith.constant 0 : i32
    %c0_i32_1 = arith.constant 0 : i32
    return %arg0, %c0_i32, %c0_i32_0 : i32, i32, i32
  }
}

</mosaic_0001>

<bundles_post_ra>
// kernel: _lambda_.3
= control target key start
LH: loop header
LB: loop body
LE: loop exit
PB: predicated region body
PF: predicated region fallthrough
CT: control target
= control target key end

     0   :  { %s2803_s0 = inlined_call_operand.vmem [shape: f32[2,8,32], index: 0, kind: input, shape index: {}]   ;;  %s2804_s1 = inlined_call_operand.vmem [shape: f32[2,8,2], index: 1, kind: input, shape index: {}]   ;;  %s2805_s2 = inlined_call_operand.vmem [shape: f32[32,32], index: 2, kind: input, shape index: {}]   ;;  %s2806_s3 = inlined_call_operand.vmem [shape: f32[2,128], index: 3, kind: input, shape index: {}]   ;;  %s2807_s4 = inlined_call_operand.vmem [shape: f32[1,32], index: 4, kind: input, shape index: {}]   ;;  %s2808_s5 = inlined_call_operand.vmem [shape: f32[1,32], index: 5, kind: input, shape index: {}]   ;;  %s2809_s6 = inlined_call_operand.vmem [shape: bf16[32,96], index: 6, kind: input, shape index: {}]   ;;  %s2810_s7 = inlined_call_operand.vmem [shape: f32[1,96], index: 7, kind: input, shape index: {}]   ;;  %s2811_s8 = inlined_call_operand.vmem [shape: bf16[32,32], index: 8, kind: input, shape index: {}]   ;;  %s2812_s9 = inlined_call_operand.vmem [shape: f32[1,32], index: 9, kind: input, shape index: {}]   ;;  %s2813_s10 = inlined_call_operand.vmem [shape: bf16[2,64], index: 10, kind: input, shape index: {}]   ;;  %s2814_s11 = inlined_call_operand.vmem [shape: f32[1,64], index: 11, kind: input, shape index: {}]   ;;  %s2815_s12 = inlined_call_operand.vmem [shape: bf16[64,64], index: 12, kind: input, shape index: {}]   ;;  %s2816_s13 = inlined_call_operand.vmem [shape: f32[1,64], index: 13, kind: input, shape index: {}]   ;;  %s2817_s14 = inlined_call_operand.vmem [shape: bf16[64,2], index: 14, kind: input, shape index: {}]   ;;  %s2818_s15 = inlined_call_operand.vmem [shape: f32[1,2], index: 15, kind: input, shape index: {}]   ;;  %s2819_s16 = inlined_call_operand.vmem [shape: bf16[32,128], index: 16, kind: input, shape index: {}]   ;;  %s2820_s17 = inlined_call_operand.vmem [shape: f32[1,128], index: 17, kind: input, shape index: {}]   ;;  %s2821_s18 = inlined_call_operand.vmem [shape: bf16[128,32], index: 18, kind: input, shape index: {}]   ;;  %s2822_s19 = inlined_call_operand.vmem [shape: f32[2,32], index: 19, kind: input, shape index: {}]   ;;  %s2823_s20 = inlined_call_operand.vmem [shape: f32[1,32], index: 20, kind: input, shape index: {}]   ;;  %s2824_s21 = inlined_call_operand.vmem [shape: f32[1,32], index: 21, kind: input, shape index: {}]   ;;  %s2825_s22 = inlined_call_operand.hbm [shape: f32[2,8,32], index: 22, kind: output, shape index: {}]  }
   0x1   :  { %2831 = sst [smem:[#allocation8_spill]] %s2803_s0 }
   0x2   :  { %2832 = sst [smem:[#allocation9_spill]] %s2804_s1 }
   0x3   :  { %2833 = sst [smem:[#allocation10_spill]] %s2805_s2 }
   0x4   :  { %2834 = sst [smem:[#allocation11_spill]] %s2806_s3 }
   0x5   :  { %2835 = sst [smem:[#allocation12_spill]] %s2807_s4 }
   0x6   :  { %2836 = sst [smem:[#allocation13_spill]] %s2808_s5 }
   0x7   :  { %2837 = sst [smem:[#allocation14_spill]] %s2809_s6 }
   0x8   :  { %2838 = sst [smem:[#allocation15_spill]] %s2810_s7 }
   0x9   :  { %2839 = sst [smem:[#allocation16_spill]] %s2811_s8 }
   0xa   :  { %2840 = sst [smem:[#allocation17_spill]] %s2812_s9 }
   0xb   :  { %2841 = sst [smem:[#allocation18_spill]] %s2813_s10 }
   0xc   :  { %2842 = sst [smem:[#allocation19_spill]] %s2814_s11 }
   0xd   :  { %27 = vsyncpa [#allocation3], 0 }
   0xe   :  { %29 = vsyncpa [#allocation3 + $0x1], 0  ;;  %s2461_s3 = smov 0   ;;  %s2463_s28 = smov 0  }
   0xf   :  { %s2465_s29 = smov 0   ;;  %s2467_s30 = smov 0  }
  0x10 LB: > { %2843 = sst [smem:[#allocation5_spill]] %s2334_s29  ;;  %s2482_s4 = sadd.s32 4294967295, %s2338_s30   ;;  %s2338_s30 = sphi %s2467_s30, %s2861_s30   ;;  %s2334_s29 = sphi %s2465_s29, %s2863_s29   ;;  %s2330_s28 = sphi %s2463_s28, %s2865_s28   ;;  %s2326_s3 = sphi %s2461_s3, %s2864_s3  }
  0x11   : > { %s1941_s0 = sadd.s32 4294967294, %s2338_s30   ;;  %s2486_s23 = sadd.s32 1, %s2338_s30  }
  0x12   : > { %2844 = sst [smem:[#allocation6_spill]] %s2486_s23  ;;  %s514_s1 = sadd.s32 1, %s2334_s29 }
  0x13   : > { %s511_s5 = ssub.s32 %s2338_s30, %s2486_s23  ;;  %p524_p0 = scmp.ne.s32.totalorder %s2334_s29, %s2330_s28 }
  0x14   : > { %p512_p1 = scmp.eq.s32.totalorder %s511_s5, 0  ;;  %p525_p2 = scmp.eq.s32.totalorder %s2482_s4, 1 }
  0x15   : > { %p530_p3 = scmp.ne.s32.totalorder %s2330_s28, %s2326_s3  ;;  %p531_p4 = scmp.eq.s32.totalorder %s1941_s0, 1 }
  0x16   : > { %s2497_s24 = scalar_select %p512_p1, %s2334_s29, %s514_s1  }
  0x17   : > { %p2499_p5 = por %p525_p2, %p524_p0  ;;  %p2503_p6 = por %p531_p4, %p530_p3 }
  0x18   : > { %2845 = sst [smem:[#allocation7_spill]] %s2497_s24  ;;  %p1944_p7 = scmp.ge.s32.totalorder %s2338_s30, 1 }
  0x19   : > { %p623_p8 = scmp.lt.s32.totalorder %s2338_s30, 3 }
  0x1b   : > { %p624_p9 = pnand %p1944_p7, %p623_p8 }
  0x1c   : > { %s2848_s10 = sld [smem:[#allocation18_spill]] (!%p624_p9)  ;;  %p688_p10 = scmp.lt.s32.totalorder (!%p624_p9), %s2482_s4, 1 }
  0x1d   : > { %627 = sbr.rel (%p624_p9) target bundleno = 2820 (0xb04), region = 108  ;;  %s2849_s26 = sld [smem:[#allocation8_spill]] (!%p624_p9) }
  0x1e   : > { %s2850_s29 = sld [smem:[#allocation9_spill]] (!%p624_p9)  ;;  %s2342_s1 = smov (!%p624_p9), 96  }
  0x1f   : > { %s2851_s11 = sld [smem:[#allocation19_spill]] (!%p624_p9) }
  0x20   : > { %s2853_s24 = sld [smem:[#allocation14_spill]] (!%p624_p9) }
  0x21   : > { %s2855_s7 = sld [smem:[#allocation15_spill]] (!%p624_p9) }
  0x22   : > { %v703_v0 = vld [vmem:[%s2848_s10] sm:$0x1]  ;;  %vm716_vm0 = vcmask 1040384   ;;  %v2340_v1 = vmov 0.0   ;;  %vm2341_vm1 = vmmov 0   ;;  %s689_s27 = scalar_select %p688_p10, %s2482_s4, 1 }
  0x23   : > { %2055 = vmatprep.subr.bf16.mxu0 %v2340_v1  ;;  %v718_v2 = vsel %vm716_vm0, %v703_v0, 0  ;;  %2057 = vmatprep.mubr.msk.bf16.mxu0 %vm2341_vm1, %v2340_v1  ;;  %vm942_vm2 = vcmask 261120   ;;  %vm712_vm3 = vcmask 15360   ;;  %v2232_v7 = vld [vmem:[%s2815_s12 + $0x18] sm:$0xff]   ;;  %v2233_v8 = vld [vmem:[%s2815_s12 + $0x10] sm:$0xff]   ;;  %v2234_v9 = vld [vmem:[%s2815_s12 + $0x8] sm:$0xff]  }
  0x24   : > { %2056 = vmatpush3.bf16.msra.mxu0 %v718_v2  ;;  %2061 = vmatprep.subr.bf16.mxu1 %v2340_v1  ;;  %s1946_s0 = sshll.u32 %s689_s27, 3  ;;  %v2235_v10 = vld [vmem:[%s2815_s12] sm:$0xff]   ;;  %vm801_vm4 = vcmask 523264   ;;  %v2236_v24 = vld [vmem:[%s2817_s14 + $0x18] sm:$0xff]   ;;  %v2237_v25 = vld [vmem:[%s2817_s14 + $0x10] sm:$0xff]   ;;  %s2852_s10 = sld [smem:[#allocation12_spill]] }
  0x25   : > { %2069 = vmatprep.mubr.msk.bf16.mxu1 %vm2341_vm1, %v2340_v1  ;;  %2093 = vmatprep.subr.mxu0 %v2340_v1  ;;  %s691_s2 = scalar_lea.vmem %s2849_s26, %s1946_s0  ;;  %s695_s23 = scalar_lea.vmem %s2850_s29, %s1946_s0  ;;  %v1948_v16 = vld [vmem:[%s2851_s11] ss:$0 sm:$0xff]  ;;  %v2238_v26 = vld [vmem:[%s2817_s14 + $0x8] sm:$0xff]   ;;  %vm1119_vm5 = vcmask 523520   ;;  %vm1325_vm6 = vcmask 1043456   ;;  %vm1318_vm7 = vcmask 64512  }
  0x26   : > { %v2527_v3 = vld [vmem:[%s691_s2] sm:$0xff]  ;;  %2062 = vmatpush3.bf16.msra.mxu1 %v2232_v7  ;;  %v2240_v41 = vld [vmem:[%s2853_s24 + $0x8] sm:$0xff]   ;;  %s2854_s26 = sld [smem:[#allocation13_spill]]  ;;  %vm1571_vm8 = vcmask 1041408   ;;  %s1997_s27 = sshll.u32 %s2482_s4, 7 }
  0x27   : > { %v702_v4 = vld [vmem:[%s695_s23] sm:$0xff]  ;;  %v943_v6 = vsel %vm942_vm2, %v2527_v3, 0.0  ;;  %2063 = vmatprep.subr.bf16.mxu1 %v2340_v1  ;;  %s2856_s29 = sld [smem:[#allocation10_spill]]  ;;  %s2345_s2 = smov [#allocation2]  }
  0x28   : > { %v704_v5 = vpack.c.bf16 %v702_v4, %v702_v4  ;;  %944 = vadd.xlane.f32.xlu0 %v943_v6  ;;  %v2239_v27 = vld [vmem:[%s2817_s14] sm:$0xff]   ;;  %s2858_s8 = sld [smem:[#allocation16_spill]]  ;;  %s2282_s4 = sshll.u32 %s2345_s2, 4  ;;  %s2283_s4 = int_to_ptr.vmem [resolvable:$false] %s2282_s4 }
  0x29   : > { %v1950_v31 = vld [vmem:[%s2816_s13] ss:$0 sm:$0xff]  ;;  %s2859_s5 = sld [smem:[#allocation11_spill]] }
  0x2a   : > { %2058 = vmatmul.mubr.msk.bf16.vlgmr.msra.gmra.mxu0 %vm712_vm3, %v704_v5  ;;  %2064 = vmatpush3.bf16.msra.mxu1 %v2233_v8  ;;  %v1962_v39 = vld [vmem:[%s2852_s10] ss:$0 sm:$0xff]  ;;  %s2343_s10 = smov 32   ;;  %s2860_s9 = sld [smem:[#allocation17_spill]] }
  0x2b   : > { %2101 = vmatprep.mubr.msk.f32.mxu0 %vm2341_vm1, %v2340_v1  ;;  %2065 = vmatprep.subr.bf16.mxu1 %v2340_v1  ;;  %v2241_v45 = vld [vmem:[%s2853_s24] sm:$0xff]  }
  0x2c   : > { %v1963_v44 = vld [vmem:[%s2854_s26] ss:$0 sm:$0xff] }
  0x2d   : > { %v1964_v52 = vld [vmem:[%s2855_s7] ss:$0 sm:$0xff]  ;;  %s2857_s23 = smov %s2856_s29  ;;  %v2609_v59 = vld [vmem:[%s2856_s29 + $0x18] sm:$0xff]  ;;  %s2344_s29 = smov 64  }
  0x2e   : > { %2066 = vmatpush3.bf16.msra.mxu1 %v2234_v9  ;;  %v2614_v60 = vld [vmem:[%s2857_s23 + $0x10] sm:$0xff]  ;;  %2094 = vmatpush3.msra.mxu0 %v2609_v59  ;;  %v2622_v61 = vld [vmem:[%s2857_s23 + $0x8] sm:$0xff]  ;;  %v2631_v62 = vld [vmem:[%s2857_s23] sm:$0xff] }
  0x2f   : > { %2067 = vmatprep.subr.bf16.mxu1 %v2340_v1  ;;  %2095 = vmatprep.subr.mxu0 %v2340_v1 }
  0x30   : > { %2096 = vmatpush3.msra.mxu0 %v2614_v60 }
  0x31   : > { %2097 = vmatprep.subr.mxu0 %v2340_v1 }
  0x32   : > { %2068 = vmatpush3.bf16.msra.mxu1 %v2235_v10  ;;  %2098 = vmatpush3.msra.mxu0 %v2622_v61 }
  0x33   : > { %2073 = vmatprep.subr.bf16.mxu1 %v2340_v1  ;;  %2099 = vmatprep.subr.mxu0 %v2340_v1 }
  0x34   : > { %2100 = vmatpush3.msra.mxu0 %v2631_v62 }
  0x35   : > { %2115 = vmatprep.subr.mxu0 %v2340_v1 }
  0xb1   : > { %v945_v11 = vpop.xlane.xlu0 %944 }
  0xb2   : > { %v947_v12 = vmul.f32 0.03125, %v945_v11 }
  0xb4   : > { %v948_v13 = vsub.f32 %v2527_v3, %v947_v12 }
  0xb6   : > { %v949_v14 = vmul.f32 %v948_v13, %v948_v13 }
  0xb8   : > { %v950_v15 = vsel %vm942_vm2, %v949_v14, 0.0 }
  0xb9   : > { %951 = vadd.xlane.f32.xlu0 %v950_v15 }
  0xea   : > { %v754_v17 = vpop.f32.mrf.mxu0 }
  0xeb   : > { %v755_v18 = vadd.f32 %v1948_v16, %v754_v17 }
  0xec   : > { %v2059_v19 = vpop.f32.mrf.mxu0 }
  0xed   : > { %2254 = vtanh.f32 %v755_v18 }
  0xee   : > { %v757_v20 = vpop.f32.mrf.mxu0 }
  0xf0   : > { %v2060_v21 = vpop.f32.mrf.mxu0 }
  0xfa   : > { %v2255_v22 = vpop.eup %2254 }
  0xfb   : > { %v769_v23 = vpack.c.bf16 %v2255_v22, %v2255_v22 }
  0xfd   : > { %2070 = vmatmul.mubr.msk.bf16.vlgmr.msra.gmra.mxu1 %vm801_vm4, %v769_v23 }
  0xfe   : > { %2081 = vmatprep.mubr.msk.bf16.mxu1 %vm2341_vm1, %v2340_v1  ;;  %2074 = vmatpush3.bf16.msra.mxu1 %v2236_v24 }
  0xff   : > { %2075 = vmatprep.subr.bf16.mxu1 %v2340_v1 }
 0x102   : > { %2076 = vmatpush3.bf16.msra.mxu1 %v2237_v25 }
 0x103   : > { %2077 = vmatprep.subr.bf16.mxu1 %v2340_v1 }
 0x106   : > { %2078 = vmatpush3.bf16.msra.mxu1 %v2238_v26 }
 0x107   : > { %2079 = vmatprep.subr.bf16.mxu1 %v2340_v1 }
 0x10a   : > { %2080 = vmatpush3.bf16.msra.mxu1 %v2239_v27 }
 0x10b   : > { %2085 = vmatprep.subr.bf16.mxu1 %v2340_v1 }
 0x142   : > { %v952_v28 = vpop.xlane.xlu0 %951 }
 0x143   : > { %v953_v29 = vmul.f32 0.03125, %v952_v28 }
 0x145   : > { %v954_v30 = vadd.f32 1e-05, %v953_v29 }
 0x147   : > { %2256 = vrsqrt.f32 %v954_v30 }
 0x154   : > { %v2257_v37 = vpop.eup %2256 }
 0x155   : > { %v956_v38 = vmul.f32 %v2257_v37, %v948_v13 }
 0x157   : > { %v963_v43 = vmul.f32 %v1962_v39, %v956_v38 }
 0x159   : > { %v970_v46 = vadd.f32 %v1963_v44, %v963_v43  ;;  %v2242_v44 = vld [vmem:[%s2858_s8 + $0x8] sm:$0xff]  }
 0x15b   : > { %v975_v47 = vpack.c.bf16 %v970_v46, %v970_v46 }
 0x1bd   : > { %v839_v32 = vpop.f32.mrf.mxu1 }
 0x1be   : > { %v840_v33 = vadd.f32 %v1950_v31, %v839_v32  ;;  %v1956_v31 = vld [vmem:[%s2818_s15] ss:$0 sm:$0xff] }
 0x1bf   : > { %v2071_v34 = vpop.f32.mrf.mxu1 }
 0x1c0   : > { %2258 = vtanh.f32 %v840_v33 }
 0x1c1   : > { %v842_v35 = vpop.f32.mrf.mxu1 }
 0x1c3   : > { %v2072_v36 = vpop.f32.mrf.mxu1 }
 0x1cd   : > { %v2259_v40 = vpop.eup %2258 }
 0x1ce   : > { %v854_v42 = vpack.c.bf16 %v2259_v40, %v2259_v40 }
 0x1d0   : > { %2082 = vmatmul.mubr.msk.bf16.vlgmr.msra.gmra.mxu1 %vm801_vm4, %v854_v42 }
 0x1d1   : > { %2086 = vmatpush3.bf16.msra.mxu1 %v2240_v41  ;;  %2089 = vmatprep.mubr.msk.bf16.mxu1 %vm2341_vm1, %v2340_v1 }
 0x1d2   : > { %2087 = vmatprep.subr.bf16.mxu1 %v2340_v1 }
 0x1d5   : > { %2088 = vmatpush3.bf16.msra.mxu1 %v2241_v45 }
 0x1d6   : > { %2104 = vmatprep.subr.mxu1 %v2340_v1 }
 0x1d8   : > { %2090 = vmatmul.mubr.msk.bf16.vlgmr.msra.gmra.mxu1 %vm942_vm2, %v975_v47 }
 0x1d9   : > { %2112 = vmatprep.mubr.msk.f32.mxu1 %vm2341_vm1, %v2340_v1  ;;  %2105 = vmatpush3.msra.mxu1 %v2609_v59 }
 0x1da   : > { %2106 = vmatprep.subr.mxu1 %v2340_v1 }
 0x1db   : > { %2107 = vmatpush3.msra.mxu1 %v2614_v60 }
 0x1dc   : > { %2108 = vmatprep.subr.mxu1 %v2340_v1 }
 0x1dd   : > { %2109 = vmatpush3.msra.mxu1 %v2622_v61 }
 0x1de   : > { %2110 = vmatprep.subr.mxu1 %v2340_v1 }
 0x1df   : > { %2111 = vmatpush3.msra.mxu1 %v2631_v62 }
 0x290   : > { %v2597_v48 = vpop.f32.mrf.mxu1 }
 0x291   : > { %v924_v35 = vadd.f32 %v1956_v31, %v2597_v48  ;;  %v1978_v31 = vld [vmem:[%s2820_s17] ss:$0 sm:$0xff] }
 0x292   : > { %v2083_v49 = vpop.f32.mrf.mxu1 }
 0x293   : > { %v929_v36 = vsel %vm712_vm3, %v924_v35, -inf }
 0x294   : > { %v926_v50 = vpop.f32.mrf.mxu1 }
 0x296   : > { %v2084_v51 = vpop.f32.mrf.mxu1 }
 0x298   : > { %v1032_v53 = vpop.f32.mrf.mxu1 }
 0x299   : > { %v2602_v54 = vadd.f32 %v1964_v52, %v1032_v53 }
 0x29a   : > { %v2091_v55 = vpop.f32.mrf.mxu1 }
 0x29b   : > { %v1120_v56 = vsel %vm1119_vm5, %v2602_v54, -inf  ;;  %v1038_v5 = vsel %vm942_vm2, %v2602_v54, -inf  ;;  %v1294_v22 = vpack.c.bf16 %v2602_v54, %v2602_v54 }
 0x29c   : > { %1121 = vmax.xlane.f32.xlu1 %v1120_v56  ;;  %v1035_v57 = vpop.f32.mrf.mxu1 }
 0x29e   : > { %v2092_v58 = vpop.f32.mrf.mxu1 }
 0x29f   : > { %v2243_v58 = vld [vmem:[%s2858_s8] sm:$0xff]  }
 0x325   : > { %v1122_v63 = vpop.xlane.xlu1 %1121 }
 0x326   : > { %v1123_v0 = vsub.f32 %v2602_v54, %v1122_v63 }
 0x328   : > { %v1124_v2 = vmul.f32 1.442695, %v1123_v0 }
 0x32a   : > { %2260 = vpow2.f32 %v1124_v2 }
 0x337   : > { %v2261_v4 = vpop.eup %2260 }
 0x338   : > { %1127 = vrot.lane.b32.xlu1 %v2261_v4, %s2342_s1 }
 0x35c   : > { %1039 = vmax.xlane.f32.xlu1 %v1038_v5 }
 0x3aa   : > { %v1128_v6 = vpop.permute.xlu1 %1127 }
 0x3ab   : > { %2113 = vmatmul.mubr.msk.f32.vlgmr.msra.gmra.mxu1 %vm942_vm2, %v1128_v6  ;;  %v1499_v6 = vld [vmem:[%s2859_s5] sm:$0x3] }
 0x3e5   : > { %v1040_v7 = vpop.xlane.xlu1 %1039 }
 0x3e6   : > { %v1041_v8 = vsub.f32 %v2602_v54, %v1040_v7 }
 0x3e8   : > { %v1042_v9 = vmul.f32 1.442695, %v1041_v8 }
 0x3ea   : > { %2262 = vpow2.f32 %v1042_v9 }
 0x3f7   : > { %v2263_v10 = vpop.eup %2262 }
 0x3f8   : > { %2102 = vmatmul.mubr.msk.f32.vlgmr.msra.gmra.mxu0 %vm942_vm2, %v2263_v10 }
 0x3f9   : > { %2116 = vmatpush3.msra.mxu0 %v2609_v59  ;;  %2123 = vmatprep.mubr.msk.f32.mxu0 %vm2341_vm1, %v2340_v1 }
 0x3fa   : > { %2117 = vmatprep.subr.mxu0 %v2340_v1 }
 0x3fb   : > { %2118 = vmatpush3.msra.mxu0 %v2614_v60 }
 0x3fc   : > { %2119 = vmatprep.subr.mxu0 %v2340_v1 }
 0x3fd   : > { %2120 = vmatpush3.msra.mxu0 %v2622_v61 }
 0x3fe   : > { %2121 = vmatprep.subr.mxu0 %v2340_v1 }
 0x3ff   : > { %2122 = vmatpush3.msra.mxu0 %v2631_v62 }
 0x400   : > { %2132 = vmatprep.subr.bf16.mxu0 %v2340_v1 }
 0x46b   : > { %v1197_v11 = vpop.f32.mrf.mxu1 }
 0x46c   : > { %2264 = vrcp.f32 %v1197_v11  ;;  %v2245_v11 = vld [vmem:[%s2819_s16] sm:$0xff]  }
 0x46d   : > { %v2114_v12 = vpop.f32.mrf.mxu1 }
 0x479   : > { %v2265_v13 = vpop.eup %2264 }
 0x47a   : > { %1203 = vrot.lane.b32.xlu0 %v2265_v13, %s2343_s10  ;;  %v1977_v13 = vld [vmem:[%s2860_s9] ss:$0 sm:$0xff]  ;;  %s1868_s9 = scalar_lea.hbm %s2825_s22, %s1997_s27 }
 0x4b8   : > { %v1113_v14 = vpop.f32.mrf.mxu0 }
 0x4b9   : > { %2266 = vrcp.f32 %v1113_v14 }
 0x4ba   : > { %v2103_v15 = vpop.f32.mrf.mxu0 }
 0x4c6   : > { %v2267_v30 = vpop.eup %2266 }
 0x4c7   : > { %v1118_v32 = vmul.f32 %v2267_v30, %v2263_v10  ;;  %v1663_v10 = vld [vmem:[%s2822_s19] sm:$0x3] }
 0x4c8   : > { %v2253_v30 = vld [vmem:[%s2821_s18] sm:$0xff]  }
 0x4c9   : > { %v1384_v57 = vpack.c.bf16 %v1118_v32, %v1118_v32 }
 0x4ec   : > { %v1204_v16 = vpop.permute.xlu0 %1203 }
 0x4ed   : > { %v1206_v17 = vmul.f32 %v2261_v4, %v1204_v16 }
 0x4ef   : > { %v1207_v18 = vsel %vm1119_vm5, %v1206_v17, 0.0  ;;  %v1293_v19 = vpack.c.bf16 %v1206_v17, %v1206_v17 }
 0x4f0   : > { %v1208_v20 = vrot.slane %v1207_v18, 4 }
 0x4f1   : > { %1296 = vrot.lane.b32.xlu0 %v1293_v19, %s2342_s1 }
 0x4f2   : > { %v1209_v21 = vadd.f32 %v1208_v20, %v1207_v18  ;;  %v2246_v18 = vld [vmem:[%s2821_s18 + $0x38] sm:$0xff]  }
 0x4f4   : > { %v1210_v23 = vrot.slane %v1209_v21, 2 }
 0x4f5   : > { %1316 = vrot.lane.b32.xlu0 %v1294_v22, %s2344_s29  ;;  %s685_s29 = sand.u32 1, %s2330_s28  }
 0x4f6   : > { %v1211_v24 = vadd.f32 %v1210_v23, %v1209_v21  ;;  %s1945_s0 = sshll.u32 %s685_s29, 3  ;;  %s1857_s5 = scalar_lea.sflag [#allocation3], %s685_s29 }
 0x4f8   : > { %v1212_v25 = vrot.slane %v1211_v24, 1 }
 0x4fa   : > { %v1213_v26 = vadd.f32 %v1212_v25, %v1211_v24  ;;  %v2248_v24 = vld [vmem:[%s2821_s18 + $0x28] sm:$0xff]  }
 0x4fc   : > { %1215 = vrot.lane.b32.xlu1 %v1213_v26, %s2342_s1  ;;  %v2249_v26 = vld [vmem:[%s2821_s18 + $0x20] sm:$0xff]   ;;  %s687_s1 = scalar_lea.vmem [#allocation2], %s1945_s0  ;;  %s2284_s0 = scalar_lea.vmem %s2283_s4, 256 }
 0x4fd   : > { %s1870_s10 = sshll.u32 %s687_s1, 4  ;;  %s1871_s10 = int_to_ptr.vmem [resolvable:$true] %s1870_s10 }
 0x4fe   : > { %s2278_s26 = scalar_lea.vmem %s1871_s10, 128  ;;  %p2285_p0 = scmp.lt.s32.totalorder %s1871_s10, %s2283_s4 }
 0x4ff   : > { %p2279_p11 = scmp.ne.s32.totalorder %s1871_s10, %s2278_s26  ;;  %p2286_p1 = scmp.lt.s32.totalorder %s2284_s0, %s2278_s26 }
 0x501   : > { %p2280_p12 = pnand %p2279_p11, %p2499_p5  ;;  %p2287_p2 = por %p2286_p1, %p2285_p0 }
 0x503   : > { %p2281_p13 = pneg %p2280_p12 }
 0x505   : > { %p2288_p3 = pnand %p2287_p2, %p2281_p13 }
 0x563   : > { %v1297_v27 = vpop.permute.xlu0 %1296 }
 0x564   : > { %1299 = vxpose.xlu0.c.b16.start.end [1/1] (short) (narrow) %v1297_v27, 32  ;;  %v2250_v27 = vld [vmem:[%s2821_s18 + $0x18] sm:$0xff]  }
 0x567   : > { %v1317_v28 = vpop.permute.xlu0 %1316 }
 0x568   : > { %v1327_v29 = vsel %vm1325_vm6, %v1317_v28, 0  ;;  %2186 = vmatprep.subr.msk.bf16.mxu1 %vm1325_vm6, %v1317_v28  ;;  %v2251_v28 = vld [vmem:[%s2821_s18 + $0x10] sm:$0xff]  }
 0x569   : > { %2127 = vmatpush3.bf16.msra.mxu1 %v1327_v29  ;;  %v2252_v29 = vld [vmem:[%s2821_s18 + $0x8] sm:$0xff]  }
 0x56a   : > { %2140 = vmatprep.subr.bf16.mxu1 %v2340_v1 }
 0x56e   : > { %v1216_v33 = vpop.permute.xlu1 %1215 }
 0x56f   : > { %v1218_v34 = vmul.f32 %v1216_v33, %v1118_v32 }
 0x571   : > { %2124 = vmatmul.mubr.msk.f32.vlgmr.msra.gmra.mxu0 %vm942_vm2, %v1218_v34 }
 0x572   : > { %2136 = vmatprep.mubr.msk.bf16.mxu0 %vm2341_vm1, %v2340_v1 }
 0x575   : > { %930 = vmax.xlane.f32.xlu0 %v929_v36 }
 0x5c6   : > { %v1307_v37 = vpop.trf.xlu0 }
 0x5c7   : > { %2128 = vmatprep.mubr.msk.bf16.mxu1 %vm1318_vm7, %v1307_v37 }
 0x5ca   : > { %v1308_v38 = vpop.trf.xlu0 }
 0x5cb   : > { %2129 = vmatmul.mubr.msk.bf16.vlgmr.msra.gmra.mxu1 %vm1318_vm7, %v1308_v38 }
 0x5cc   : > { %2144 = vmatprep.mubr.msk.bf16.mxu1 %vm2341_vm1, %v2340_v1  ;;  %2141 = vmatpush3.bf16.msra.mxu1 %v2242_v44 }
 0x5cd   : > { %2142 = vmatprep.subr.bf16.mxu1 %v2340_v1 }
 0x5d0   : > { %2143 = vmatpush3.bf16.msra.mxu1 %v2243_v58 }
 0x5d1   : > { %2156 = vmatprep.subr.mxu1 %v2340_v1 }
 0x5fe   : > { %v931_v39 = vpop.xlane.xlu0 %930 }
 0x5ff   : > { %v932_v40 = vsub.f32 %v924_v35, %v931_v39 }
 0x601   : > { %v933_v41 = vmul.f32 1.442695, %v932_v40 }
 0x603   : > { %2268 = vpow2.f32 %v933_v41 }
 0x610   : > { %v2269_v42 = vpop.eup %2268 }
 0x611   : > { %v935_v43 = vsel %vm712_vm3, %v2269_v42, 0.0 }
 0x612   : > { %936 = vadd.xlane.f32.xlu1 %v935_v43 }
 0x631   : > { %v1288_v45 = vpop.f32.mrf.mxu0 }
 0x632   : > { %2270 = vrcp.f32 %v1288_v45 }
 0x633   : > { %v2125_v46 = vpop.f32.mrf.mxu0 }
 0x68b   : > { %v2130_v47 = vpop.f32.mrf.mxu1 }
 0x68c   : > { %v1380_v50 = vmul.f32 %v2130_v47, %v2614_v60 }
 0x68d   : > { %v1363_v48 = vpop.f32.mrf.mxu1 }
 0x68e   : > { %v1378_v55 = vmul.f32 %v1363_v48, %v2631_v62 }
 0x68f   : > { %v2131_v49 = vpop.f32.mrf.mxu1 }
 0x690   : > { %v1381_v51 = vmul.f32 %v2131_v49, %v2609_v59  ;;  %v2244_v59 = vld [vmem:[%s2819_s16 + $0x8] sm:$0xff]  }
 0x691   : > { %v1366_v52 = vpop.f32.mrf.mxu1 }
 0x692   : > { %v1383_v53 = vpack.c.bf16 %v1381_v51, %v1380_v50  ;;  %v1379_v54 = vmul.f32 %v1366_v52, %v2622_v61  ;;  %v2271_v61 = vpop.eup %2270 }
 0x694   : > { %2133 = vmatpush3.bf16.msra.mxu0 %v1383_v53  ;;  %v1382_v56 = vpack.c.bf16 %v1379_v54, %v1378_v55  ;;  %v1994_v54 = vld [vmem:[%s2823_s20] ss:$0 sm:$0xff] }
 0x695   : > { %2134 = vmatprep.subr.bf16.mxu0 %v2340_v1 }
 0x698   : > { %2135 = vmatpush3.bf16.msra.mxu0 %v1382_v56  ;;  %v1995_v56 = vld [vmem:[%s2824_s21] ss:$0 sm:$0xff] }
 0x699   : > { %2148 = vmatprep.subr.bf16.mxu0 %v2340_v1 }
 0x69b   : > { %2137 = vmatmul.mubr.msk.bf16.vlgmr.msra.gmra.mxu0 %vm942_vm2, %v1384_v57  ;;  %v937_v60 = vpop.xlane.xlu1 %936 }
 0x69c   : > { %2152 = vmatprep.mubr.msk.bf16.mxu0 %vm2341_vm1, %v2340_v1  ;;  %2149 = vmatpush3.bf16.msra.mxu0 %v2244_v59  ;;  %2272 = vrcp.f32 %v937_v60 }
 0x69d   : > { %2150 = vmatprep.subr.bf16.mxu0 %v2340_v1 }
 0x6a0   : > { %2151 = vmatpush3.bf16.msra.mxu0 %v2245_v11 }
 0x6a1   : > { %2166 = vmatprep.subr.bf16.mxu0 %v2340_v1 }
 0x6a9   : > { %v2273_v8 = vpop.eup %2272 }
 0x6aa   : > { %v939_v9 = vmul.f32 %v2273_v8, %v2269_v42 }
 0x75b   : > { %v1422_v62 = vpop.f32.mrf.mxu0 }
 0x75c   : > { %v1428_v63 = vmul.f32 %v2271_v61, %v1422_v62 }
 0x75d   : > { %v2138_v0 = vpop.f32.mrf.mxu0 }
 0x75e   : > { %v1429_v2 = vadd.f32 %v1428_v63, %v1118_v32 }
 0x75f   : > { %v1425_v4 = vpop.f32.mrf.mxu0 }
 0x760   : > { %v1434_v5 = vpack.c.bf16 %v1429_v2, %v1429_v2 }
 0x761   : > { %v2139_v7 = vpop.f32.mrf.mxu0 }
 0x762   : > { %2145 = vmatmul.mubr.msk.bf16.vlgmr.msra.gmra.mxu1 %vm942_vm2, %v1434_v5 }
 0x763   : > { %2157 = vmatpush3.msk.msra.mxu1 %vm1571_vm8, %v1499_v6  ;;  %2158 = vmatprep.mubr.msk.f32.mxu1 %vm2341_vm1, %v2340_v1 }
 0x764   : > { %2161 = vmatprep.subr.mxu1 %v2340_v1 }
 0x76a   : > { %2159 = vmatmul.mubr.msk.f32.vlgmr.msra.gmra.mxu1 %vm712_vm3, %v939_v9 }
 0x76b   : > { %2162 = vmatpush3.msk.msra.mxu1 %vm1571_vm8, %v1663_v10  ;;  %2163 = vmatprep.mubr.msk.f32.mxu1 %vm2341_vm1, %v2340_v1 }
 0x76e   : > { %2164 = vmatmul.mubr.msk.f32.vlgmr.msra.gmra.mxu1 %vm712_vm3, %v939_v9 }
 0x822   : > { %v1484_v12 = vpop.f32.mrf.mxu1 }
 0x823   : > { %v1490_v14 = vadd.f32 %v1484_v12, %v2527_v3  ;;  %v2247_v3 = vld [vmem:[%s2821_s18 + $0x30] sm:$0xff]  }
 0x824   : > { %v2146_v15 = vpop.f32.mrf.mxu1 }
 0x825   : > { %v2718_v16 = vadd.f32 %v1977_v13, %v1490_v14 }
 0x826   : > { %v1487_v17 = vpop.f32.mrf.mxu1 }
 0x827   : > { %v1504_v19 = vpack.c.bf16 %v2718_v16, %v2718_v16 }
 0x828   : > { %v2147_v20 = vpop.f32.mrf.mxu1 }
 0x829   : > { %2153 = vmatmul.mubr.msk.bf16.vlgmr.msra.gmra.mxu0 %vm942_vm2, %v1504_v19 }
 0x82a   : > { %v1641_v21 = vpop.f32.mrf.mxu1  ;;  %2167 = vmatpush3.bf16.msra.mxu0 %v2246_v18  ;;  %2182 = vmatprep.mubr.msk.bf16.mxu0 %vm2341_vm1, %v2340_v1 }
 0x82b   : > { %2168 = vmatprep.subr.bf16.mxu0 %v2340_v1 }
 0x82c   : > { %v2160_v22 = vpop.f32.mrf.mxu1 }
 0x82e   : > { %v1733_v23 = vpop.f32.mrf.mxu1  ;;  %2169 = vmatpush3.bf16.msra.mxu0 %v2247_v3 }
 0x82f   : > { %2170 = vmatprep.subr.bf16.mxu0 %v2340_v1 }
 0x830   : > { %v2165_v25 = vpop.f32.mrf.mxu1 }
 0x832   : > { %2171 = vmatpush3.bf16.msra.mxu0 %v2248_v24 }
 0x833   : > { %2172 = vmatprep.subr.bf16.mxu0 %v2340_v1 }
 0x836   : > { %2173 = vmatpush3.bf16.msra.mxu0 %v2249_v26 }
 0x837   : > { %2174 = vmatprep.subr.bf16.mxu0 %v2340_v1 }
 0x83a   : > { %2175 = vmatpush3.bf16.msra.mxu0 %v2250_v27 }
 0x83b   : > { %2176 = vmatprep.subr.bf16.mxu0 %v2340_v1 }
 0x83e   : > { %2177 = vmatpush3.bf16.msra.mxu0 %v2251_v28 }
 0x83f   : > { %2178 = vmatprep.subr.bf16.mxu0 %v2340_v1 }
 0x842   : > { %2179 = vmatpush3.bf16.msra.mxu0 %v2252_v29 }
 0x843   : > { %2180 = vmatprep.subr.bf16.mxu0 %v2340_v1 }
 0x846   : > { %2181 = vmatpush3.bf16.msra.mxu0 %v2253_v30 }
 0x8e9   : > { %v1561_v32 = vpop.f32.mrf.mxu0 }
 0x8ea   : > { %v1562_v33 = vadd.f32 %v1978_v31, %v1561_v32 }
 0x8eb   : > { %v2154_v34 = vpop.f32.mrf.mxu0 }
 0x8ec   : > { %2274 = vtanh.f32 %v1562_v33 }
 0x8ed   : > { %v1564_v35 = vpop.f32.mrf.mxu0 }
 0x8ef   : > { %v2155_v36 = vpop.f32.mrf.mxu0 }
 0x8f9   : > { %v2275_v37 = vpop.eup %2274 }
 0x8fa   : > { %v1645_v38 = vmul.f32 %v2275_v37, %v1641_v21 }
 0x8fc   : > { %v1662_v39 = vpack.c.bf16 %v1645_v38, %v1645_v38 }
 0x8fe   : > { %2183 = vmatmul.mubr.bf16.vlgmr.msra.gmra.mxu0 %v1662_v39 }
 0x9be   : > { %v1819_v40 = vpop.f32.mrf.mxu0 }
 0x9bf   : > { %v1820_v41 = vadd.f32 %v1819_v40, %v1733_v23 }
 0x9c0   : > { %v2184_v42 = vpop.f32.mrf.mxu0 }
 0x9c1   : > { %v1827_v1 = vsel %vm942_vm2, %v1820_v41, 0.0 }
 0x9c2   : > { %1828 = vadd.xlane.f32.xlu0 %v1827_v1  ;;  %v1822_v43 = vpop.f32.mrf.mxu0 }
 0x9c4   : > { %v2185_v44 = vpop.f32.mrf.mxu0 }
 0xa4b   : > { %v1829_v45 = vpop.xlane.xlu0 %1828 }
 0xa4c   : > { %v1830_v46 = vmul.f32 0.03125, %v1829_v45 }
 0xa4e   : > { %v1831_v47 = vsub.f32 %v1820_v41, %v1830_v46 }
 0xa50   : > { %v1832_v48 = vmul.f32 %v1831_v47, %v1831_v47 }
 0xa52   : > { %v1833_v49 = vsel %vm942_vm2, %v1832_v48, 0.0 }
 0xa53   : > { %1834 = vadd.xlane.f32.xlu0 %v1833_v49 }
 0xadc   : > { %v1835_v50 = vpop.xlane.xlu0 %1834 }
 0xadd   : > { %v1836_v51 = vmul.f32 0.03125, %v1835_v50 }
 0xadf   : > { %v1837_v52 = vadd.f32 1e-05, %v1836_v51 }
 0xae1   : > { %2276 = vrsqrt.f32 %v1837_v52 }
 0xaee   : > { %v2277_v53 = vpop.eup %2276 }
 0xaef   : > { %v1839_v55 = vmul.f32 %v2277_v53, %v1831_v47 }
 0xaf1   : > { %v1846_v57 = vmul.f32 %v1994_v54, %v1839_v55 }
 0xaf3   : > { %v1853_v58 = vadd.f32 %v1995_v56, %v1846_v57 }
 0xaf5   : > { %v1854_v59 = vadd.f32 %v1853_v58, %v2718_v16 }
 0xaf7   : > { %1855 = vst.msk [vmem:[%s687_s1] sm:$0xff] %vm942_vm2, %v1854_v59 }
 0xaf8   : > { %2291 = shalt.err (!%p2288_p3)
}
 0xaf9   : > { %s2292_s7 = scalar_lea.hbm %s1868_s9, 128  ;;  %s2296_s11 = scalar_lea.hbm %s2825_s22, 256 }
 0xafa   : > { %p2293_p4 = scmp.ne.s32.totalorder %s1868_s9, %s2292_s7  ;;  %p2297_p9 = scmp.lt.s32.totalorder %s1868_s9, %s2825_s22 }
 0xafb   : > { %p2298_p10 = scmp.lt.s32.totalorder %s2296_s11, %s2292_s7 }
 0xafc   : > { %p2294_p7 = pnand %p2293_p4, %p2499_p5 }
 0xafd   : > { %p2299_p11 = por %p2298_p10, %p2297_p9 }
 0xafe   : > { %p2295_p8 = pneg %p2294_p7 }
 0xb00   : > { %p2300_p12 = pnand %p2299_p11, %p2295_p8 }
 0xb02   : > { %2303 = shalt.err (!%p2300_p12)
}
 0xb03   : > { %2187 = dma.vmem_to_hbm [thread:$0]  (%p2499_p5), %s1871_s10, 128, %s1868_s9, %s1857_s5  }
 0xb04 PF: > { %p2193_p13 = scmp.ge.s32.totalorder %s2338_s30, 2  ;;  %s1882_s26 = sand.u32 1, %s2326_s3  }
 0xb05   : > { %s1883_s2 = scalar_lea.sflag [#allocation3], %s1882_s26 }
 0xb06   : > { %p2190_p0 = pnand %p2193_p13, %p2503_p6 }
 0xb08   : > { %p2191_p1 = pneg %p2190_p0 }
 0xb0a   : > { %2321 = dma.done.wait (%p2191_p1), %s1883_s2, 128  }
 0xb0b   : > { %2323 = vsyncadd (%p2191_p1), %s1883_s2, 4294967168  ;;  %s2861_s30 = sld [smem:[#allocation6_spill]]  ;;  %s2864_s3 = smov %s2330_s28 }
 0xb0c   : > { %s2862_s4 = sld [smem:[#allocation5_spill]] }
 0xb0d   : > { %s2863_s29 = sld [smem:[#allocation7_spill]] }
 0xb11   : > { %p32_p2 = scmp.ge.s32.totalorder %s2861_s30, 4  }
 0xb12   : > { %s2865_s28 = smov %s2862_s4 }
 0xb13   :  { %34 = sbr.rel (!%p32_p2) target bundleno = 16 (0x10), region = 146 }
 0xb18   :  { %1888 = vsyncpa [#allocation3], 1 }
 0xb19   :  { %1890 = vsyncpa [#allocation3 + $0x1], 1 }

// kernel: _lambda_.2
= control target key start
LH: loop header
LB: loop body
LE: loop exit
PB: predicated region body
PF: predicated region fallthrough
CT: control target
= control target key end

     0   :  { %s4302_s6 = smov 1   ;;  %s4303_s10 = smov 2   ;;  %s4953_s0 = inlined_call_operand.smem [shape: u32[33], index: -1, kind: input, shape index: {}] }
   0x1   :  { %s4364_s5 = sld [smem:[%s4953_s0]]   ;;  %s4304_s14 = smov 3  }
   0x2   :  { %s4369_s9 = sld [smem:[%s4953_s0 + %s4302_s6]]   ;;  %s4305_s18 = smov 4  }
   0x3   :  { %s4374_s13 = sld [smem:[%s4953_s0 + %s4303_s10]]   ;;  %s4306_s22 = smov 5  }
   0x4   :  { %s4379_s17 = sld [smem:[%s4953_s0 + %s4304_s14]]   ;;  %s4307_s26 = smov 6  }
   0x5   :  { %s4384_s21 = sld [smem:[%s4953_s0 + %s4305_s18]]   ;;  %s4308_s30 = smov 7  }
   0x6   :  { %s4389_s25 = sld [smem:[%s4953_s0 + %s4306_s22]]   ;;  %s4309_s4 = smov 8  }
   0x7   :  { %4962 = sst [smem:[#allocation37_spill]] %s4364_s5  ;;  %s4310_s10 = smov 9  }
   0x8   :  { %4963 = sst [smem:[#allocation38_spill]] %s4369_s9  ;;  %s4311_s15 = smov 10  }
   0x9   :  { %4964 = sst [smem:[#allocation39_spill]] %s4374_s13  ;;  %s4312_s20 = smov 11  }
   0xa   :  { %4965 = sst [smem:[#allocation40_spill]] %s4379_s17  ;;  %s4314_s1 = smov 13  }
   0xb   :  { %s4394_s29 = sld [smem:[%s4953_s0 + %s4307_s26]]   ;;  %s4313_s26 = smov 12  }
   0xc   :  { %s4399_s3 = sld [smem:[%s4953_s0 + %s4308_s30]]   ;;  %s4315_s7 = smov 14  }
   0xd   :  { %s4404_s8 = sld [smem:[%s4953_s0 + %s4309_s4]]   ;;  %s4317_s22 = smov 16  }
   0xe   :  { %s4409_s14 = sld [smem:[%s4953_s0 + %s4310_s10]]   ;;  %s4318_s28 = smov 17  }
   0xf   :  { %s4414_s19 = sld [smem:[%s4953_s0 + %s4311_s15]]   ;;  %s4316_s15 = smov 15  }
  0x10   :  { %s4419_s24 = sld [smem:[%s4953_s0 + %s4312_s20]]  }
  0x11   :  { %4966 = sst [smem:[#allocation41_spill]] %s4394_s29 }
  0x12   :  { %s4424_s30 = sld [smem:[%s4953_s0 + %s4313_s26]]  }
  0x13   :  { %4967 = sst [smem:[#allocation42_spill]] %s4404_s8 }
  0x14   :  { %s4429_s6 = sld [smem:[%s4953_s0 + %s4314_s1]]  }
  0x15   :  { %s4434_s12 = sld [smem:[%s4953_s0 + %s4315_s7]]   ;;  %s4319_s7 = smov 18  }
  0x16   :  { %4968 = sst [smem:[#allocation43_spill]] %s4419_s24 }
  0x17   :  { %s4439_s20 = sld [smem:[%s4953_s0 + %s4316_s15]]   ;;  %s4320_s15 = smov 19  }
  0x18   :  { %s4444_s27 = sld [smem:[%s4953_s0 + %s4317_s22]]   ;;  %s4321_s22 = smov 20  }
  0x19   :  { %s4449_s4 = sld [smem:[%s4953_s0 + %s4318_s28]]   ;;  %s4322_s28 = smov 21  }
  0x1a   :  { %4969 = sst [smem:[#allocation44_spill]] %s4429_s6 }
  0x1b   :  { %s4454_s17 = sld [smem:[%s4953_s0 + %s4319_s7]]   ;;  %s4323_s7 = smov 22  }
  0x1c   :  { %s4459_s13 = sld [smem:[%s4953_s0 + %s4320_s15]]   ;;  %s4324_s15 = smov 23  }
  0x1d   :  { %s4464_s6 = sld [smem:[%s4953_s0 + %s4321_s22]]   ;;  %s4325_s22 = smov 24  }
  0x1e   :  { %s4469_s24 = sld [smem:[%s4953_s0 + %s4322_s28]]   ;;  %s4326_s28 = smov 25  }
  0x1f   :  { %4970 = sst [smem:[#allocation45_spill]] %s4449_s4 }
  0x20   :  { %s4474_s29 = sld [smem:[%s4953_s0 + %s4323_s7]]   ;;  %s4327_s7 = smov 26  }
  0x21   :  { %s4479_s9 = sld [smem:[%s4953_s0 + %s4324_s15]]   ;;  %s4328_s15 = smov 27  }
  0x23   :  { %4971 = sst [smem:[#allocation46_spill]] %s4464_s6 }
  0x24   :  { %4972 = sst [smem:[#allocation47_spill]] %s4469_s24 }
  0x25   :  { %s4484_s6 = sld [smem:[%s4953_s0 + %s4325_s22]]   ;;  %s4329_s22 = smov 28  }
  0x26   :  { %4973 = sst [smem:[#allocation48_spill]] %s4474_s29 }
  0x27   :  { %4974 = sst [smem:[#allocation49_spill]] %s4479_s9 }
  0x28   :  { %s4489_s24 = sld [smem:[%s4953_s0 + %s4326_s28]]   ;;  %s4330_s28 = smov 29  }
  0x29   :  { %s4494_s29 = sld [smem:[%s4953_s0 + %s4327_s7]]   ;;  %s4331_s7 = smov 30  }
  0x2a   :  { %s4499_s9 = sld [smem:[%s4953_s0 + %s4328_s15]]   ;;  %s4332_s15 = smov 31  }
  0x2b   :  { %4975 = sst [smem:[#allocation50_spill]] %s4484_s6 }
  0x2c   :  { %s4504_s6 = sld [smem:[%s4953_s0 + %s4329_s22]]   ;;  %s4333_s22 = smov 32  }
  0x2d   :  { %s4514_s8 = sld [smem:[%s4953_s0 + %s4331_s7]]  }
  0x2e   :  { %4976 = sst [smem:[#allocation51_spill]] %s4489_s24 }
  0x2f   :  { %s4509_s24 = sld [smem:[%s4953_s0 + %s4330_s28]]  }
  0x30   :  { %s4519_s5 = sld [smem:[%s4953_s0 + %s4332_s15]]  }
  0x32   :  { %4977 = sst [smem:[#allocation52_spill]] %s4504_s6 }
  0x33   :  { %s4524_s6 = sld [smem:[%s4953_s0 + %s4333_s22]]  }
  0x34   :  { %70 = vsyncpa [#allocation3], 0 }
  0x35   :  { %71 = vsyncpa [#allocation5], 0 }
  0x36   :  { %72 = vsyncpa [#allocation8], 0 }
  0x37   :  { %73 = vsyncpa [#allocation11], 0 }
  0x38   :  { %74 = vsyncpa [#allocation14], 0 }
  0x39   :  { %75 = vsyncpa [#allocation17], 0 }
  0x3a   :  { %76 = vsyncpa [#allocation20], 0 }
  0x3b   :  { %77 = vsyncpa [#allocation23], 0 }
  0x3c   :  { %78 = vsyncpa [#allocation26], 0  ;;  %s4526_s28 = smov 0  }
  0x3d LB: > { %s4334_s0 = smov [#allocation4]   ;;  %s4532_s2 = sadd.s32 4294967295, %s4300_s28   ;;  %s4300_s28 = sphi %s4526_s28, %s84_s28  }
  0x3e   : > { %s837_s1 = sshll.u32 %s4334_s0, 4  ;;  %p3168_p0 = scmp.ge.s32.totalorder %s4300_s28, 1  ;;  %s838_s1 = int_to_ptr.vmem [resolvable:$true] %s837_s1 }
  0x3f   : > { %p807_p1 = scmp.lt.s32.totalorder %s4300_s28, 3  ;;  %p4960_p2 = scmp.eq.s32.totalorder %s4532_s2, 0 }
  0x40   : > { %s4335_s10 = smov [#allocation7]   ;;  %s4336_s15 = smov [#allocation10]  }
  0x41   : > { %p4537_p3 = pnand %p3168_p0, %p807_p1  ;;  %s862_s11 = sshll.u32 %s4335_s10, 4  ;;  %s4543_s11 = int_to_ptr.vmem [resolvable:$true] %s862_s11 }
  0x42   : > { %s887_s16 = sshll.u32 %s4336_s15, 4  ;;  %s4337_s22 = smov [#allocation13]   ;;  %s4551_s16 = int_to_ptr.vmem [resolvable:$true] %s887_s16 }
  0x43   : > { %s4978_s7 = scalar_select %p4537_p3, 1, 0 }
  0x44   : > { %p3607_p4 = pneg %p4537_p3  ;;  %s909_s23 = sshll.u32 %s4337_s22, 4  ;;  %s4553_s23 = int_to_ptr.vmem [resolvable:$true] %s909_s23 }
  0x45   : > { %s3827_s0 = scalar_lea.vmem %s838_s1, 16  ;;  %s3834_s10 = scalar_lea.vmem %s838_s1, 32 }
  0x46   : > { %p4547_p5 = pnand %p4960_p2, %p3607_p4  ;;  %p3828_p7 = scmp.ne.s32.totalorder %s838_s1, %s3827_s0 }
  0x47   : > { %p3835_p10 = scmp.lt.s32.totalorder %s838_s1, %s838_s1  ;;  %p3836_p11 = scmp.lt.s32.totalorder %s3834_s10, %s3827_s0 }
  0x48   : > { %p4557_p6 = pneg %p4547_p5 }
  0x49   : > { %p3837_p12 = por %p3836_p11, %p3835_p10 }
  0x4a   : > { %p3830_p8 = pnand %p3828_p7, %p4557_p6 }
  0x4c   : > { %p3831_p9 = pneg %p3830_p8 }
  0x4e   : > { %p3838_p13 = pnand %p3837_p12, %p3831_p9 }
  0x50   : > { %3841 = shalt.err (!%p3838_p13)
}
  0x51   : > { %3613 = dma.hbm_to_vmem [thread:$0]  (!%p4547_p5), %s4389_s25, 16, %s838_s1, [#allocation5]  }
  0x52   : > { %s3853_s15 = scalar_lea.vmem %s4543_s11, 16  ;;  %s3860_s22 = scalar_lea.vmem %s4543_s11, 32 }
  0x53   : > { %p3854_p0 = scmp.ne.s32.totalorder %s4543_s11, %s3853_s15  ;;  %p3861_p7 = scmp.lt.s32.totalorder %s4543_s11, %s4543_s11 }
  0x54   : > { %p3862_p8 = scmp.lt.s32.totalorder %s3860_s22, %s3853_s15 }
  0x55   : > { %p3856_p1 = pnand %p3854_p0, %p4557_p6 }
  0x56   : > { %p3863_p9 = por %p3862_p8, %p3861_p7 }
  0x57   : > { %p3857_p4 = pneg %p3856_p1 }
  0x59   : > { %p3864_p10 = pnand %p3863_p9, %p3857_p4 }
  0x5b   : > { %3867 = shalt.err (!%p3864_p10)
}
  0x5c   : > { %3619 = dma.hbm_to_vmem [thread:$0]  (!%p4547_p5), %s4409_s14, 16, %s4543_s11, [#allocation8]  }
  0x5d   : > { %s3879_s1 = scalar_lea.vmem %s4551_s16, 16  ;;  %s3886_s0 = scalar_lea.vmem %s4551_s16, 32 }
  0x5e   : > { %p3880_p11 = scmp.ne.s32.totalorder %s4551_s16, %s3879_s1  ;;  %p3887_p0 = scmp.lt.s32.totalorder %s4551_s16, %s4551_s16 }
  0x5f   : > { %p3888_p1 = scmp.lt.s32.totalorder %s3886_s0, %s3879_s1 }
  0x60   : > { %p3882_p12 = pnand %p3880_p11, %p4557_p6 }
  0x61   : > { %p3889_p4 = por %p3888_p1, %p3887_p0 }
  0x62   : > { %p3883_p13 = pneg %p3882_p12 }
  0x64   : > { %p3890_p7 = pnand %p3889_p4, %p3883_p13 }
  0x66   : > { %3893 = shalt.err (!%p3890_p7)
}
  0x67   : > { %3625 = dma.hbm_to_vmem [thread:$0]  (!%p4547_p5), %s4424_s30, 16, %s4551_s16, [#allocation11]  }
  0x68   : > { %s3905_s11 = scalar_lea.vmem %s4553_s23, 16  ;;  %s3912_s10 = scalar_lea.vmem %s4553_s23, 32 }
  0x69   : > { %p3906_p8 = scmp.ne.s32.totalorder %s4553_s23, %s3905_s11  ;;  %p3913_p11 = scmp.lt.s32.totalorder %s4553_s23, %s4553_s23 }
  0x6a   : > { %p3914_p12 = scmp.lt.s32.totalorder %s3912_s10, %s3905_s11 }
  0x6b   : > { %p3908_p9 = pnand %p3906_p8, %p4557_p6 }
  0x6c   : > { %p3915_p13 = por %p3914_p12, %p3913_p11 }
  0x6d   : > { %p3909_p10 = pneg %p3908_p9 }
  0x6f   : > { %p3916_p0 = pnand %p3915_p13, %p3909_p10 }
  0x71   : > { %3919 = shalt.err (!%p3916_p0)
}
  0x72   : > { %3631 = dma.hbm_to_vmem [thread:$0]  (!%p4547_p5), %s4439_s20, 16, %s4553_s23, [#allocation14]  }
  0x73   : > { %s4338_s15 = smov [#allocation16]   ;;  %s4339_s22 = smov [#allocation19]  }
  0x74   : > { %s933_s16 = sshll.u32 %s4338_s15, 4  ;;  %s957_s1 = sshll.u32 %s4339_s22, 4  ;;  %s934_s16 = int_to_ptr.vmem [resolvable:$true] %s933_s16  ;;  %s958_s1 = int_to_ptr.vmem [resolvable:$true] %s957_s1 }
  0x75   : > { %s3931_s0 = scalar_lea.vmem %s934_s16, 16  ;;  %s3938_s11 = scalar_lea.vmem %s934_s16, 32 }
  0x76   : > { %p3932_p1 = scmp.ne.s32.totalorder %s934_s16, %s3931_s0  ;;  %p3939_p8 = scmp.lt.s32.totalorder %s934_s16, %s934_s16 }
  0x77   : > { %p3940_p9 = scmp.lt.s32.totalorder %s3938_s11, %s3931_s0 }
  0x78   : > { %p3934_p4 = pnand %p3932_p1, %p4557_p6 }
  0x79   : > { %p3941_p10 = por %p3940_p9, %p3939_p8 }
  0x7a   : > { %p3935_p7 = pneg %p3934_p4 }
  0x7c   : > { %p3942_p11 = pnand %p3941_p10, %p3935_p7 }
  0x7e   : > { %3945 = shalt.err (!%p3942_p11)
}
  0x7f   : > { %s4981_s4 = sld [smem:[#allocation45_spill]]  ;;  %s3957_s23 = scalar_lea.vmem %s958_s1, 16 }
  0x80   : > { %p3958_p12 = scmp.ne.s32.totalorder %s958_s1, %s3957_s23  ;;  %s3964_s10 = scalar_lea.vmem %s958_s1, 32 }
  0x81   : > { %p3965_p1 = scmp.lt.s32.totalorder %s958_s1, %s958_s1  ;;  %p3966_p4 = scmp.lt.s32.totalorder %s3964_s10, %s3957_s23 }
  0x82   : > { %p3960_p13 = pnand %p3958_p12, %p4557_p6 }
  0x83   : > { %p3967_p2 = por %p3966_p4, %p3965_p1 }
  0x84   : > { %p3961_p0 = pneg %p3960_p13 }
  0x85   : > { %3637 = dma.hbm_to_vmem [thread:$0]  (!%p4547_p5), %s4981_s4, 16, %s934_s16, [#allocation17]  }
  0x86   : > { %p3968_p3 = pnand %p3967_p2, %p3961_p0 }
  0x88   : > { %3971 = shalt.err (!%p3968_p3)
}
  0x89   : > { %3643 = dma.hbm_to_vmem [thread:$0]  (!%p4547_p5), %s4459_s13, 16, %s958_s1, [#allocation20]  }
  0x8a   : > { %s4340_s15 = smov [#allocation22]   ;;  %s4341_s16 = smov [#allocation25]  }
  0x8b   : > { %s999_s22 = sshll.u32 %s4340_s15, 4  ;;  %s1024_s0 = sshll.u32 %s4341_s16, 4  ;;  %s1000_s22 = int_to_ptr.vmem [resolvable:$true] %s999_s22  ;;  %s1025_s0 = int_to_ptr.vmem [resolvable:$true] %s1024_s0 }
  0x8c   : > { %s3983_s11 = scalar_lea.vmem %s1000_s22, 16  ;;  %s3990_s4 = scalar_lea.vmem %s1000_s22, 32 }
  0x8d   : > { %p3984_p7 = scmp.ne.s32.totalorder %s1000_s22, %s3983_s11  ;;  %p3991_p10 = scmp.lt.s32.totalorder %s1000_s22, %s1000_s22 }
  0x8e   : > { %p3992_p11 = scmp.lt.s32.totalorder %s3990_s4, %s3983_s11 }
  0x8f   : > { %p3986_p8 = pnand %p3984_p7, %p4557_p6 }
  0x90   : > { %p3993_p2 = por %p3992_p11, %p3991_p10 }
  0x91   : > { %p3987_p9 = pneg %p3986_p8 }
  0x93   : > { %p3994_p3 = pnand %p3993_p2, %p3987_p9 }
  0x95   : > { %3997 = shalt.err (!%p3994_p3)
}
  0x96   : > { %3649 = dma.hbm_to_vmem [thread:$0]  (!%p4547_p5), %s4499_s9, 16, %s1000_s22, [#allocation23]  }
  0x97   : > { %s4009_s1 = scalar_lea.vmem %s1025_s0, 16  ;;  %s4016_s23 = scalar_lea.vmem %s1025_s0, 32 }
  0x98   : > { %p4010_p12 = scmp.ne.s32.totalorder %s1025_s0, %s4009_s1  ;;  %p4017_p1 = scmp.lt.s32.totalorder %s1025_s0, %s1025_s0 }
  0x99   : > { %p4018_p4 = scmp.lt.s32.totalorder %s4016_s23, %s4009_s1 }
  0x9a   : > { %p4012_p13 = pnand %p4010_p12, %p4557_p6 }
  0x9b   : > { %p4019_p7 = por %p4018_p4, %p4017_p1 }
  0x9c   : > { %p4013_p0 = pneg %p4012_p13 }
  0x9e   : > { %p4020_p8 = pnand %p4019_p7, %p4013_p0 }
  0xa0   : > { %4023 = shalt.err (!%p4020_p8)
}
  0xa1   : > { %3655 = dma.hbm_to_vmem [thread:$0]  (!%p4547_p5), %s4514_s8, 16, %s1025_s0, [#allocation26]  }
  0xa2   : > { %s4342_s4 = smov [#allocation2]   ;;  %s4343_s15 = smov [#allocation6]  }
  0xa3   : > { %s826_s10 = sshll.u32 %s4342_s4, 4  ;;  %s851_s22 = sshll.u32 %s4343_s15, 4  ;;  %s827_s10 = int_to_ptr.vmem [resolvable:$true] %s826_s10  ;;  %s852_s22 = int_to_ptr.vmem [resolvable:$true] %s851_s22 }
  0xa4   : > { %s4035_s16 = scalar_lea.vmem %s827_s10, 16  ;;  %s4042_s11 = scalar_lea.vmem %s827_s10, 32 }
  0xa5   : > { %p4036_p9 = scmp.ne.s32.totalorder %s827_s10, %s4035_s16  ;;  %p4043_p2 = scmp.lt.s32.totalorder %s827_s10, %s827_s10 }
  0xa6   : > { %p4044_p3 = scmp.lt.s32.totalorder %s4042_s11, %s4035_s16 }
  0xa7   : > { %p4038_p10 = pnand %p4036_p9, %p4557_p6 }
  0xa8   : > { %p4045_p12 = por %p4044_p3, %p4043_p2 }
  0xa9   : > { %p4039_p11 = pneg %p4038_p10 }
  0xab   : > { %p4046_p13 = pnand %p4045_p12, %p4039_p11 }
  0xad   : > { %4049 = shalt.err (!%p4046_p13)
}
  0xae   : > { %3610 = dma.hbm_to_vmem [thread:$0]  (!%p4547_p5), %s4384_s21, 16, %s827_s10, [#allocation3]  }
  0xaf   : > { %s4061_s0 = scalar_lea.vmem %s852_s22, 16  ;;  %s4068_s1 = scalar_lea.vmem %s852_s22, 32 }
  0xb0   : > { %p4062_p0 = scmp.ne.s32.totalorder %s852_s22, %s4061_s0  ;;  %p4069_p7 = scmp.lt.s32.totalorder %s852_s22, %s852_s22 }
  0xb1   : > { %p4070_p8 = scmp.lt.s32.totalorder %s4068_s1, %s4061_s0 }
  0xb2   : > { %p4064_p1 = pnand %p4062_p0, %p4557_p6 }
  0xb3   : > { %p4071_p9 = por %p4070_p8, %p4069_p7 }
  0xb4   : > { %p4065_p4 = pneg %p4064_p1 }
  0xb6   : > { %p4072_p10 = pnand %p4071_p9, %p4065_p4 }
  0xb8   : > { %4075 = shalt.err (!%p4072_p10)
}
  0xb9   : > { %3616 = dma.hbm_to_vmem [thread:$0]  (!%p4547_p5), %s4399_s3, 16, %s852_s22, [#allocation5]  }
  0xba   : > { %s4344_s23 = smov [#allocation9]   ;;  %s4345_s10 = smov [#allocation12]  }
  0xbb   : > { %s873_s4 = sshll.u32 %s4344_s23, 4  ;;  %s898_s15 = sshll.u32 %s4345_s10, 4  ;;  %s874_s4 = int_to_ptr.vmem [resolvable:$true] %s873_s4  ;;  %s899_s15 = int_to_ptr.vmem [resolvable:$true] %s898_s15 }
  0xbc   : > { %s4087_s16 = scalar_lea.vmem %s874_s4, 16  ;;  %s4094_s11 = scalar_lea.vmem %s874_s4, 32 }
  0xbd   : > { %p4088_p11 = scmp.ne.s32.totalorder %s874_s4, %s4087_s16  ;;  %p4095_p12 = scmp.lt.s32.totalorder %s874_s4, %s874_s4 }
  0xbe   : > { %p4096_p13 = scmp.lt.s32.totalorder %s4094_s11, %s4087_s16 }
  0xbf   : > { %p4090_p2 = pnand %p4088_p11, %p4557_p6 }
  0xc0   : > { %p4097_p0 = por %p4096_p13, %p4095_p12 }
  0xc1   : > { %p4091_p3 = pneg %p4090_p2 }
  0xc3   : > { %p4098_p1 = pnand %p4097_p0, %p4091_p3 }
  0xc5   : > { %4101 = shalt.err (!%p4098_p1)
}
  0xc6   : > { %3622 = dma.hbm_to_vmem [thread:$0]  (!%p4547_p5), %s4414_s19, 16, %s874_s4, [#allocation8]  }
  0xc7   : > { %s4113_s22 = scalar_lea.vmem %s899_s15, 16  ;;  %s4120_s0 = scalar_lea.vmem %s899_s15, 32 }
  0xc8   : > { %p4114_p4 = scmp.ne.s32.totalorder %s899_s15, %s4113_s22  ;;  %p4121_p9 = scmp.lt.s32.totalorder %s899_s15, %s899_s15 }
  0xc9   : > { %p4122_p10 = scmp.lt.s32.totalorder %s4120_s0, %s4113_s22 }
  0xca   : > { %p4116_p7 = pnand %p4114_p4, %p4557_p6 }
  0xcb   : > { %p4123_p11 = por %p4122_p10, %p4121_p9 }
  0xcc   : > { %p4117_p8 = pneg %p4116_p7 }
  0xce   : > { %p4124_p2 = pnand %p4123_p11, %p4117_p8 }
  0xd0   : > { %4127 = shalt.err (!%p4124_p2)
}
  0xd1   : > { %3628 = dma.hbm_to_vmem [thread:$0]  (!%p4547_p5), %s4434_s12, 16, %s899_s15, [#allocation11]  }
  0xd2   : > { %s4346_s1 = smov [#allocation15]  }
  0xd3   : > { %s919_s23 = sshll.u32 %s4346_s1, 4  ;;  %s920_s23 = int_to_ptr.vmem [resolvable:$true] %s919_s23 }
  0xd4   : > { %s4139_s4 = scalar_lea.vmem %s920_s23, 256  ;;  %p4147_p0 = scmp.lt.s32.totalorder %s920_s23, %s920_s23 }
  0xd5   : > { %p4140_p3 = scmp.ne.s32.totalorder %s920_s23, %s4139_s4  ;;  %p4148_p1 = scmp.lt.s32.totalorder %s4139_s4, %s4139_s4 }
  0xd7   : > { %p4142_p12 = pnand %p4140_p3, %p4557_p6  ;;  %p4149_p4 = por %p4148_p1, %p4147_p0 }
  0xd9   : > { %p4143_p13 = pneg %p4142_p12 }
  0xdb   : > { %p4150_p7 = pnand %p4149_p4, %p4143_p13 }
  0xdd   : > { %4153 = shalt.err (!%p4150_p7)
}
  0xde   : > { %s4347_s10 = smov 64   ;;  %s4348_s16 = smov 4  }
  0xdf   : > { %3634 = dma.hbm_to_vmem [thread:$0]  (!%p4547_p5), %s4444_s27, 256, %s920_s23, [#allocation14], %s4347_s10, %s4347_s10, %s4348_s16  }
  0xe0   : > { %s4349_s15 = smov [#allocation18]   ;;  %s4350_s22 = smov [#allocation21]  }
  0xe1   : > { %s943_s11 = sshll.u32 %s4349_s15, 4  ;;  %s985_s0 = sshll.u32 %s4350_s22, 4  ;;  %s944_s11 = int_to_ptr.vmem [resolvable:$true] %s943_s11  ;;  %s986_s0 = int_to_ptr.vmem [resolvable:$true] %s985_s0 }
  0xe2   : > { %s4165_s1 = scalar_lea.vmem %s944_s11, 256  ;;  %p4173_p11 = scmp.lt.s32.totalorder %s944_s11, %s944_s11 }
  0xe3   : > { %p4166_p8 = scmp.ne.s32.totalorder %s944_s11, %s4165_s1  ;;  %p4174_p2 = scmp.lt.s32.totalorder %s4165_s1, %s4165_s1 }
  0xe5   : > { %p4168_p9 = pnand %p4166_p8, %p4557_p6  ;;  %p4175_p3 = por %p4174_p2, %p4173_p11 }
  0xe7   : > { %p4169_p10 = pneg %p4168_p9 }
  0xe9   : > { %p4176_p12 = pnand %p4175_p3, %p4169_p10 }
  0xeb   : > { %4179 = shalt.err (!%p4176_p12)
}
  0xec   : > { %3640 = dma.hbm_to_vmem [thread:$0]  (!%p4547_p5), %s4454_s17, 256, %s944_s11, [#allocation17], %s4347_s10, %s4347_s10, %s4348_s16  }
  0xed   : > { %s4191_s23 = scalar_lea.vmem %s986_s0, 256  ;;  %p4199_p4 = scmp.lt.s32.totalorder %s986_s0, %s986_s0 }
  0xee   : > { %p4192_p13 = scmp.ne.s32.totalorder %s986_s0, %s4191_s23  ;;  %p4200_p7 = scmp.lt.s32.totalorder %s4191_s23, %s4191_s23 }
  0xf0   : > { %p4194_p0 = pnand %p4192_p13, %p4557_p6  ;;  %p4201_p8 = por %p4200_p7, %p4199_p4 }
  0xf2   : > { %p4195_p1 = pneg %p4194_p0 }
  0xf4   : > { %p4202_p9 = pnand %p4201_p8, %p4195_p1 }
  0xf6   : > { %4205 = shalt.err (!%p4202_p9)
}
  0xf7   : > { %3646 = dma.hbm_to_vmem [thread:$0]  (!%p4547_p5), %s4494_s29, 256, %s986_s0, [#allocation20], %s4347_s10, %s4347_s10, %s4348_s16  }
  0xf8   : > { %s4351_s4 = smov [#allocation24]   ;;  %s4352_s11 = smov [#allocation27]  }
  0xf9   : > { %s1013_s15 = sshll.u32 %s4351_s4, 4  ;;  %s1035_s22 = sshll.u32 %s4352_s11, 4  ;;  %s1014_s15 = int_to_ptr.vmem [resolvable:$true] %s1013_s15  ;;  %s1036_s22 = int_to_ptr.vmem [resolvable:$true] %s1035_s22 }
  0xfa   : > { %s4217_s1 = scalar_lea.vmem %s1014_s15, 32  ;;  %p4225_p3 = scmp.lt.s32.totalorder %s1014_s15, %s1014_s15 }
  0xfb   : > { %p4218_p10 = scmp.ne.s32.totalorder %s1014_s15, %s4217_s1  ;;  %p4226_p12 = scmp.lt.s32.totalorder %s4217_s1, %s4217_s1 }
  0xfd   : > { %p4220_p11 = pnand %p4218_p10, %p4557_p6  ;;  %p4227_p13 = por %p4226_p12, %p4225_p3 }
  0xff   : > { %p4221_p2 = pneg %p4220_p11 }
 0x101   : > { %p4228_p0 = pnand %p4227_p13, %p4221_p2 }
 0x103   : > { %4231 = shalt.err (!%p4228_p0)
}
 0x104   : > { %3652 = dma.hbm_to_vmem [thread:$0]  (!%p4547_p5), %s4509_s24, 32, %s1014_s15, [#allocation23]  }
 0x105   : > { %s4243_s10 = scalar_lea.vmem %s1036_s22, 16  ;;  %s4250_s16 = scalar_lea.vmem %s1036_s22, 32 }
 0x106   : > { %p4244_p1 = scmp.ne.s32.totalorder %s1036_s22, %s4243_s10  ;;  %p4251_p8 = scmp.lt.s32.totalorder %s1036_s22, %s1036_s22 }
 0x107   : > { %p4252_p9 = scmp.lt.s32.totalorder %s4250_s16, %s4243_s10 }
 0x108   : > { %p4246_p4 = pnand %p4244_p1, %p4557_p6 }
 0x109   : > { %p4253_p10 = por %p4252_p9, %p4251_p8 }
 0x10a   : > { %p4247_p7 = pneg %p4246_p4 }
 0x10c   : > { %p4254_p11 = pnand %p4253_p10, %p4247_p7 }
 0x10e   : > { %4257 = shalt.err (!%p4254_p11)
}
 0x10f   : > { %3658 = dma.hbm_to_vmem [thread:$0]  (!%p4547_p5), %s4519_s5, 16, %s1036_s22, [#allocation26]  }
 0x110   : > { %p4982_p2 = scmp.ne.s32.totalorder %s4978_s7, 0 }
 0x111   : > { %p4983_p3 = scmp.eq.s32.totalorder (!%p4982_p2), %s4532_s2, 0 }
 0x112   : > { %1076 = sbr.rel (%p4982_p2) target bundleno = 3205 (0xc85), region = 148 }
 0x117   : > { %4263 = dma.done.wait (%p4983_p3), [#allocation3], 16   ;;  %p4984_p12 = pmov %p4983_p3 }
 0x118   : > { %p4985_p6 = pmov %p4983_p3 }
 0x119   : > { %4265 = vsyncadd (%p4984_p12), [#allocation3], 4294967280 }
 0x11a   : > { %4267 = dma.done.wait (%p4985_p6), [#allocation5], 32   ;;  %p4986_p13 = pmov %p4983_p3 }
 0x11b   : > { %p4987_p0 = pmov %p4983_p3 }
 0x11c   : > { %4269 = vsyncadd (%p4986_p13), [#allocation5], 4294967264 }
 0x11d   : > { %4271 = dma.done.wait (%p4987_p0), [#allocation8], 32   ;;  %p4988_p5 = pmov %p4987_p0 }
 0x11e   : > { %p4989_p1 = pmov %p4987_p0 }
 0x11f   : > { %4273 = vsyncadd (%p4988_p5), [#allocation8], 4294967264 }
 0x120   : > { %4275 = dma.done.wait (%p4989_p1), [#allocation11], 32   ;;  %p4990_p4 = pmov %p4987_p0 }
 0x121   : > { %p4991_p7 = pmov %p4987_p0 }
 0x122   : > { %4277 = vsyncadd (%p4990_p4), [#allocation11], 4294967264 }
 0x123   : > { %4279 = dma.done.wait (%p4991_p7), [#allocation14], 272   ;;  %p4992_p8 = pmov %p4987_p0 }
 0x124   : > { %p4993_p9 = pmov %p4987_p0 }
 0x125   : > { %4281 = vsyncadd (%p4992_p8), [#allocation14], 4294967024 }
 0x126   : > { %4283 = dma.done.wait (%p4993_p9), [#allocation17], 272   ;;  %p4994_p10 = pmov %p4987_p0 }
 0x127   : > { %p4995_p11 = pmov %p4987_p0 }
 0x128   : > { %4285 = vsyncadd (%p4994_p10), [#allocation17], 4294967024 }
 0x129   : > { %4287 = dma.done.wait (%p4995_p11), [#allocation20], 272   ;;  %p4996_p2 = pmov %p4987_p0 }
 0x12a   : > { %p4997_p3 = pmov %p4987_p0 }
 0x12b   : > { %4289 = vsyncadd (%p4996_p2), [#allocation20], 4294967024 }
 0x12c   : > { %4291 = dma.done.wait (%p4997_p3), [#allocation23], 48   ;;  %p4998_p12 = pmov %p4987_p0 }
 0x12d   : > { %p4999_p6 = pmov %p4987_p0 }
 0x12e   : > { %4293 = vsyncadd (%p4998_p12), [#allocation23], 4294967248 }
 0x12f   : > { %4295 = dma.done.wait (%p4999_p6), [#allocation26], 32   ;;  %p5000_p13 = pmov %p4987_p0 }
 0x130   : > { %s5001_s7 = sld [smem:[#allocation37_spill]]  ;;  %p1232_p0 = scmp.lt.s32.totalorder %s4532_s2, 1  ;;  %vm1498_vm0 = vcmask 261120   ;;  %vm1272_vm1 = vcmask 1040384   ;;  %v4353_v5 = vmov 0.0   ;;  %vm4354_vm2 = vmmov 0  }
 0x131   : > { %4297 = vsyncadd (%p5000_p13), [#allocation26], 4294967264  ;;  %s5002_s18 = sld [smem:[#allocation42_spill]]  ;;  %3354 = vmatprep.subr.bf16.mxu0 %v4353_v5  ;;  %3356 = vmatprep.mubr.msk.bf16.mxu0 %vm4354_vm2, %v4353_v5  ;;  %vm1268_vm3 = vcmask 15360   ;;  %vm1357_vm4 = vcmask 523264   ;;  %vm1963_vm5 = vcmask 1043456  }
 0x132   : > { %s5003_s26 = sld [smem:[#allocation46_spill]]  ;;  %s5017_s2 = smov (!%p1232_p0, %s4532_s2), 1  ;;  %3384 = vmatprep.subr.bf16.mxu1 %v4353_v5  ;;  %3388 = vmatprep.mubr.msk.bf16.mxu1 %vm4354_vm2, %v4353_v5  ;;  %v3224_v40 = vld [vmem:[#allocation2] ss:$0 sm:$0xff]  ;;  %v3225_v42 = vld [vmem:[#allocation4] ss:$0 sm:$0xff] }
 0x133   : > { %s5004_s0 = sld [smem:[#allocation38_spill]]  ;;  %s4713_s23 = sshll.u32 %s5017_s2, 3  ;;  %v3231_v45 = vld [vmem:[#allocation7] ss:$0 sm:$0xff]  ;;  %v3232_v51 = vld [vmem:[#allocation9] ss:$0 sm:$0xff] }
 0x134   : > { %s5005_s11 = sld [smem:[#allocation41_spill]]  ;;  %vm1956_vm6 = vcmask 64512   ;;  %vm2596_vm7 = vcmask 1041408  }
 0x135   : > { %s5006_s22 = sld [smem:[#allocation48_spill]] }
 0x136   : > { %s1235_s4 = scalar_lea.vmem %s5001_s7, %s4713_s23  ;;  %s5007_s1 = sld [smem:[#allocation47_spill]] }
 0x137   : > { %s1243_s15 = scalar_lea.vmem %s5002_s18, %s4713_s23  ;;  %v4719_v0 = vld [vmem:[%s1235_s4] sm:$0xff]  ;;  %s5008_s10 = sld [smem:[#allocation43_spill]] }
 0x138   : > { %v1675_v1 = vld [vmem:[%s1243_s15] sm:$0xff]  ;;  %v1499_v2 = vsel %vm1498_vm0, %v4719_v0, 0.0  ;;  %s5009_s16 = sld [smem:[#allocation50_spill]]  ;;  %s4355_s4 = smov 96  }
 0x139   : > { %v1678_v3 = vsel %vm1498_vm0, %v1675_v1, 0.0  ;;  %1500 = vadd.xlane.f32.xlu0 %v1499_v2  ;;  %v1259_v4 = vld [vmem:[%s5003_s26] sm:$0x1]  ;;  %s1239_s2 = scalar_lea.vmem %s5004_s0, %s4713_s23  ;;  %s5010_s7 = sld [smem:[#allocation49_spill]] }
 0x13a   : > { %v1274_v6 = vsel %vm1272_vm1, %v1259_v4, 0  ;;  %v1258_v7 = vld [vmem:[%s1239_s2] sm:$0xff]  ;;  %v3756_v19 = vld [vmem:[%s5005_s11 + $0x8] sm:$0xff]   ;;  %s5011_s18 = sld [smem:[#allocation44_spill]] }
 0x13b   : > { %3355 = vmatpush3.bf16.msra.mxu0 %v1274_v6  ;;  %v1260_v8 = vpack.c.bf16 %v1258_v7, %v1258_v7  ;;  %3385 = vmatpush3.bf16.msra.mxu1 %v3756_v19  ;;  %v3757_v20 = vld [vmem:[%s5005_s11] sm:$0xff]   ;;  %v3760_v21 = vld [vmem:[%s5006_s22 + $0x18] sm:$0xff]   ;;  %v3761_v22 = vld [vmem:[%s5006_s22 + $0x10] sm:$0xff]   ;;  %s5012_s0 = sld [smem:[#allocation39_spill]] }
 0x13c   : > { %3360 = vmatprep.subr.bf16.mxu0 %v4353_v5  ;;  %3386 = vmatprep.subr.bf16.mxu1 %v4353_v5  ;;  %v3762_v23 = vld [vmem:[%s5006_s22 + $0x8] sm:$0xff]   ;;  %v3763_v24 = vld [vmem:[%s5006_s22] sm:$0xff]   ;;  %s5013_s15 = sld [smem:[#allocation51_spill]] }
 0x13d   : > { %1679 = vadd.xlane.f32.xlu0 %v1678_v3  ;;  %v3210_v25 = vld [vmem:[%s5007_s1] ss:$0 sm:$0xff]  ;;  %v3758_v48 = vld [vmem:[%s5008_s10 + $0x8] sm:$0xff]   ;;  %s5014_s2 = sld [smem:[#allocation40_spill]] }
 0x13e   : > { %3357 = vmatmul.mubr.msk.bf16.vlgmr.msra.gmra.mxu0 %vm1268_vm3, %v1260_v8  ;;  %v3759_v52 = vld [vmem:[%s5008_s10] sm:$0xff]   ;;  %v3764_v55 = vld [vmem:[%s5009_s16 + $0x18] sm:$0xff]   ;;  %v3765_v56 = vld [vmem:[%s5009_s16 + $0x10] sm:$0xff]   ;;  %s5015_s1 = sld [smem:[#allocation52_spill]] }
 0x13f   : > { %3368 = vmatprep.mubr.msk.bf16.mxu0 %vm4354_vm2, %v4353_v5  ;;  %3387 = vmatpush3.bf16.msra.mxu1 %v3757_v20  ;;  %v3766_v57 = vld [vmem:[%s5009_s16 + $0x8] sm:$0xff]   ;;  %v3212_v62 = vld [vmem:[%s5010_s7] ss:$0 sm:$0xff]  ;;  %s1251_s7 = scalar_lea.vmem %s4524_s6, %s4713_s23 }
 0x140   : > { %3403 = vmatprep.subr.bf16.mxu1 %v4353_v5  ;;  %3361 = vmatpush3.bf16.msra.mxu0 %v3760_v21  ;;  %s1247_s26 = scalar_lea.vmem %s5011_s18, %s4713_s23  ;;  %v3767_v19 = vld [vmem:[%s5009_s16] sm:$0xff]  }
 0x141   : > { %3362 = vmatprep.subr.bf16.mxu0 %v4353_v5  ;;  %v2068_v6 = vld [vmem:[%s1247_s26] sm:$0xff]  ;;  %v4784_v21 = vld [vmem:[%s5012_s0 + $0x18] sm:$0xff] }
 0x144   : > { %3363 = vmatpush3.bf16.msra.mxu0 %v3761_v22  ;;  %v4790_v22 = vld [vmem:[%s5012_s0 + $0x10] sm:$0xff] }
 0x145   : > { %3364 = vmatprep.subr.bf16.mxu0 %v4353_v5 }
 0x148   : > { %3365 = vmatpush3.bf16.msra.mxu0 %v3762_v23  ;;  %v4795_v23 = vld [vmem:[%s5012_s0 + $0x8] sm:$0xff] }
 0x149   : > { %3366 = vmatprep.subr.bf16.mxu0 %v4353_v5 }
 0x14c   : > { %3367 = vmatpush3.bf16.msra.mxu0 %v3763_v24  ;;  %v4800_v24 = vld [vmem:[%s5012_s0] sm:$0xff] }
 0x14d   : > { %3372 = vmatprep.subr.bf16.mxu0 %v4353_v5 }
 0x1c2   : > { %v1501_v9 = vpop.xlane.xlu0 %1500 }
 0x1c3   : > { %v1503_v10 = vmul.f32 0.03125, %v1501_v9  ;;  %v2071_v9 = vsel %vm1498_vm0, %v2068_v6, 0.0 }
 0x1c5   : > { %v1504_v11 = vsub.f32 %v4719_v0, %v1503_v10 }
 0x1c6   : > { %v1680_v12 = vpop.xlane.xlu0 %1679 }
 0x1c7   : > { %v1681_v13 = vmul.f32 0.03125, %v1680_v12  ;;  %v1505_v14 = vmul.f32 %v1504_v11, %v1504_v11 }
 0x1c9   : > { %v1682_v15 = vsub.f32 %v1675_v1, %v1681_v13  ;;  %v1506_v16 = vsel %vm1498_vm0, %v1505_v14, 0.0  ;;  %v3226_v1 = vld [vmem:[#allocation6] ss:$0 sm:$0xff] }
 0x1ca   : > { %1507 = vadd.xlane.f32.xlu1 %v1506_v16 }
 0x1cb   : > { %v1683_v17 = vmul.f32 %v1682_v15, %v1682_v15 }
 0x1cd   : > { %v1684_v18 = vsel %vm1498_vm0, %v1683_v17, 0.0 }
 0x1ce   : > { %1685 = vadd.xlane.f32.xlu1 %v1684_v18 }
 0x1fe   : > { %v1310_v26 = vpop.f32.mrf.mxu0 }
 0x1ff   : > { %v1311_v27 = vadd.f32 %v3210_v25, %v1310_v26 }
 0x200   : > { %v3358_v28 = vpop.f32.mrf.mxu0 }
 0x201   : > { %3782 = vtanh.f32 %v1311_v27 }
 0x202   : > { %v1313_v29 = vpop.f32.mrf.mxu0 }
 0x204   : > { %v3359_v30 = vpop.f32.mrf.mxu0 }
 0x20e   : > { %v3783_v31 = vpop.eup %3782 }
 0x20f   : > { %v1325_v32 = vpack.c.bf16 %v3783_v31, %v3783_v31 }
 0x211   : > { %3369 = vmatmul.mubr.msk.bf16.vlgmr.msra.gmra.mxu0 %vm1357_vm4, %v1325_v32 }
 0x212   : > { %3380 = vmatprep.mubr.msk.bf16.mxu0 %vm4354_vm2, %v4353_v5  ;;  %3373 = vmatpush3.bf16.msra.mxu0 %v3764_v55 }
 0x213   : > { %3374 = vmatprep.subr.bf16.mxu0 %v4353_v5 }
 0x216   : > { %3375 = vmatpush3.bf16.msra.mxu0 %v3765_v56 }
 0x217   : > { %3376 = vmatprep.subr.bf16.mxu0 %v4353_v5 }
 0x21a   : > { %3377 = vmatpush3.bf16.msra.mxu0 %v3766_v57 }
 0x21b   : > { %3378 = vmatprep.subr.bf16.mxu0 %v4353_v5 }
 0x21e   : > { %3379 = vmatpush3.bf16.msra.mxu0 %v3767_v19 }
 0x21f   : > { %3392 = vmatprep.subr.mxu0 %v4353_v5 }
 0x253   : > { %v1508_v33 = vpop.xlane.xlu1 %1507 }
 0x254   : > { %v1509_v34 = vmul.f32 0.03125, %v1508_v33 }
 0x256   : > { %v1510_v35 = vadd.f32 1e-05, %v1509_v34 }
 0x257   : > { %v1686_v36 = vpop.xlane.xlu1 %1685 }
 0x258   : > { %3784 = vrsqrt.f32 %v1510_v35  ;;  %v1687_v37 = vmul.f32 0.03125, %v1686_v36 }
 0x25a   : > { %v1688_v38 = vadd.f32 1e-05, %v1687_v37 }
 0x25c   : > { %3786 = vrsqrt.f32 %v1688_v38 }
 0x265   : > { %v3785_v39 = vpop.eup %3784 }
 0x266   : > { %v1512_v41 = vmul.f32 %v3785_v39, %v1504_v11  ;;  %v3233_v11 = vld [vmem:[#allocation10] ss:$0 sm:$0xff] }
 0x268   : > { %v1519_v43 = vmul.f32 %v3224_v40, %v1512_v41 }
 0x269   : > { %v3787_v44 = vpop.eup %3786 }
 0x26a   : > { %v1690_v46 = vmul.f32 %v3787_v44, %v1682_v15  ;;  %v1526_v47 = vadd.f32 %v3225_v42, %v1519_v43 }
 0x26c   : > { %v1531_v49 = vpack.c.bf16 %v1526_v47, %v1526_v47  ;;  %v1697_v50 = vmul.f32 %v3231_v45, %v1690_v46 }
 0x26e   : > { %3389 = vmatmul.mubr.msk.bf16.vlgmr.msra.gmra.mxu1 %vm1498_vm0, %v1531_v49  ;;  %v1704_v53 = vadd.f32 %v3232_v51, %v1697_v50 }
 0x26f   : > { %3404 = vmatpush3.bf16.msra.mxu1 %v3758_v48  ;;  %3407 = vmatprep.mubr.msk.bf16.mxu1 %vm4354_vm2, %v4353_v5 }
 0x270   : > { %3405 = vmatprep.subr.bf16.mxu1 %v4353_v5  ;;  %v1709_v54 = vpack.c.bf16 %v1704_v53, %v1704_v53 }
 0x273   : > { %3406 = vmatpush3.bf16.msra.mxu1 %v3759_v52 }
 0x274   : > { %3422 = vmatprep.subr.mxu1 %v4353_v5 }
 0x276   : > { %3408 = vmatmul.mubr.msk.bf16.vlgmr.msra.gmra.mxu1 %vm1498_vm0, %v1709_v54 }
 0x277   : > { %3430 = vmatprep.mubr.msk.f32.mxu1 %vm4354_vm2, %v4353_v5  ;;  %3423 = vmatpush3.msra.mxu1 %v4784_v21 }
 0x278   : > { %3424 = vmatprep.subr.mxu1 %v4353_v5 }
 0x279   : > { %3425 = vmatpush3.msra.mxu1 %v4790_v22 }
 0x27a   : > { %3426 = vmatprep.subr.mxu1 %v4353_v5 }
 0x27b   : > { %3427 = vmatpush3.msra.mxu1 %v4795_v23 }
 0x27c   : > { %3428 = vmatprep.subr.mxu1 %v4353_v5 }
 0x27d   : > { %3429 = vmatpush3.msra.mxu1 %v4800_v24 }
 0x27e   : > { %3447 = vmatprep.subr.bf16.mxu1 %v4353_v5 }
 0x2d1   : > { %v1395_v58 = vpop.f32.mrf.mxu0 }
 0x2d2   : > { %v1396_v63 = vadd.f32 %v3212_v62, %v1395_v58 }
 0x2d3   : > { %v3370_v59 = vpop.f32.mrf.mxu0 }
 0x2d4   : > { %3788 = vtanh.f32 %v1396_v63 }
 0x2d5   : > { %v1398_v60 = vpop.f32.mrf.mxu0 }
 0x2d7   : > { %v3371_v61 = vpop.f32.mrf.mxu0 }
 0x2e1   : > { %v3789_v16 = vpop.eup %3788 }
 0x2e2   : > { %v1410_v20 = vpack.c.bf16 %v3789_v16, %v3789_v16  ;;  %v3244_v16 = vld [vmem:[#allocation16] ss:$0 sm:$0xff] }
 0x2e4   : > { %3381 = vmatmul.mubr.msk.bf16.vlgmr.msra.gmra.mxu0 %vm1357_vm4, %v1410_v20 }
 0x2e5   : > { %3400 = vmatprep.mubr.msk.f32.mxu0 %vm4354_vm2, %v4353_v5  ;;  %3393 = vmatpush3.msra.mxu0 %v4784_v21 }
 0x2e6   : > { %3394 = vmatprep.subr.mxu0 %v4353_v5 }
 0x2e7   : > { %3395 = vmatpush3.msra.mxu0 %v4790_v22 }
 0x2e8   : > { %3396 = vmatprep.subr.mxu0 %v4353_v5 }
 0x2e9   : > { %3397 = vmatpush3.msra.mxu0 %v4795_v23 }
 0x2ea   : > { %3398 = vmatprep.subr.mxu0 %v4353_v5 }
 0x2eb   : > { %3399 = vmatpush3.msra.mxu0 %v4800_v24 }
 0x2ec   : > { %3411 = vmatprep.subr.mxu0 %v4353_v5 }
 0x32e   : > { %v1588_v2 = vpop.f32.mrf.mxu1 }
 0x32f   : > { %v1589_v3 = vadd.f32 %v3226_v1, %v1588_v2  ;;  %v3242_v1 = vld [vmem:[#allocation12] ss:$0 sm:$0xff] }
 0x330   : > { %v3390_v4 = vpop.f32.mrf.mxu1 }
 0x331   : > { %v1594_v7 = vsel %vm1498_vm0, %v1589_v3, -inf  ;;  %v3768_v4 = vld [vmem:[#allocation15 + $0x8] sm:$0xff]  }
 0x332   : > { %1595 = vmax.xlane.f32.xlu0 %v1594_v7  ;;  %v1591_v8 = vpop.f32.mrf.mxu1 }
 0x333   : > { %v3243_v8 = vld [vmem:[#allocation13] ss:$0 sm:$0xff] }
 0x334   : > { %v3391_v10 = vpop.f32.mrf.mxu1 }
 0x336   : > { %2072 = vadd.xlane.f32.xlu0 %v2071_v9  ;;  %v1766_v12 = vpop.f32.mrf.mxu1  ;;  %v3769_v9 = vld [vmem:[#allocation15] sm:$0xff]  }
 0x337   : > { %v1767_v13 = vadd.f32 %v3233_v11, %v1766_v12 }
 0x338   : > { %v3409_v14 = vpop.f32.mrf.mxu1 }
 0x339   : > { %v1772_v15 = vsel %vm1498_vm0, %v1767_v13, -inf  ;;  %v1936_v25 = vpack.c.bf16 %v1767_v13, %v1767_v13 }
 0x33a   : > { %1773 = vmax.xlane.f32.xlu1 %v1772_v15  ;;  %v1769_v17 = vpop.f32.mrf.mxu1 }
 0x33c   : > { %v3410_v18 = vpop.f32.mrf.mxu1 }
 0x34c   : > { %1954 = vrot.lane.b32.xlu0 %v1936_v25, %s4355_s4 }
 0x3a4   : > { %v4827_v41 = vpop.f32.mrf.mxu0 }
 0x3a6   : > { %v3382_v42 = vpop.f32.mrf.mxu0 }
 0x3a8   : > { %v1482_v43 = vpop.f32.mrf.mxu0 }
 0x3aa   : > { %v3383_v44 = vpop.f32.mrf.mxu0 }
 0x3bb   : > { %v1596_v26 = vpop.xlane.xlu0 %1595 }
 0x3bc   : > { %v1597_v27 = vsub.f32 %v1589_v3, %v1596_v26 }
 0x3be   : > { %v1598_v28 = vmul.f32 1.442695, %v1597_v27 }
 0x3bf   : > { %v2073_v29 = vpop.xlane.xlu0 %2072 }
 0x3c0   : > { %3790 = vpow2.f32 %v1598_v28  ;;  %v2074_v30 = vmul.f32 0.03125, %v2073_v29  ;;  %v3218_v28 = vld [vmem:[%s5013_s15] ss:$0 sm:$0xff] }
 0x3c1   : > { %v1480_v29 = vadd.f32 %v3218_v28, %v4827_v41 }
 0x3c2   : > { %v2075_v31 = vsub.f32 %v2068_v6, %v2074_v30 }
 0x3c3   : > { %v1774_v32 = vpop.xlane.xlu1 %1773  ;;  %v1955_v38 = vpop.permute.xlu0 %1954  ;;  %v1485_v30 = vsel %vm1268_vm3, %v1480_v29, -inf }
 0x3c4   : > { %v1775_v33 = vsub.f32 %v1767_v13, %v1774_v32  ;;  %v2076_v34 = vmul.f32 %v2075_v31, %v2075_v31  ;;  %v1965_v40 = vsel %vm1963_vm5, %v1955_v38, 0 }
 0x3c6   : > { %v1776_v35 = vmul.f32 1.442695, %v1775_v33  ;;  %v2077_v36 = vsel %vm1498_vm0, %v2076_v34, 0.0 }
 0x3c7   : > { %2078 = vadd.xlane.f32.xlu1 %v2077_v36 }
 0x3c8   : > { %3792 = vpow2.f32 %v1776_v35 }
 0x3cd   : > { %v3791_v37 = vpop.eup %3790 }
 0x3ce   : > { %3401 = vmatmul.mubr.msk.f32.vlgmr.msra.gmra.mxu0 %vm1498_vm0, %v3791_v37 }
 0x3cf   : > { %3412 = vmatpush3.msra.mxu0 %v4784_v21  ;;  %3419 = vmatprep.mubr.msk.f32.mxu0 %vm4354_vm2, %v4353_v5 }
 0x3d0   : > { %3413 = vmatprep.subr.mxu0 %v4353_v5 }
 0x3d1   : > { %3414 = vmatpush3.msra.mxu0 %v4790_v22 }
 0x3d2   : > { %3415 = vmatprep.subr.mxu0 %v4353_v5 }
 0x3d3   : > { %3416 = vmatpush3.msra.mxu0 %v4795_v23 }
 0x3d4   : > { %3417 = vmatprep.subr.mxu0 %v4353_v5 }
 0x3d5   : > { %v3793_v39 = vpop.eup %3792  ;;  %3418 = vmatpush3.msra.mxu0 %v4800_v24 }
 0x3d6   : > { %3537 = vmatprep.subr.msk.bf16.mxu0 %vm1963_vm5, %v1955_v38  ;;  %3420 = vmatmul.mubr.msk.f32.vlgmr.msra.gmra.mxu0 %vm1498_vm0, %v3793_v39 }
 0x3d7   : > { %3434 = vmatpush3.bf16.msra.mxu0 %v1965_v40 }
 0x3d8   : > { %3439 = vmatprep.subr.bf16.mxu0 %v4353_v5 }
 0x450   : > { %v2079_v47 = vpop.xlane.xlu1 %2078 }
 0x451   : > { %v2080_v49 = vmul.f32 0.03125, %v2079_v47 }
 0x453   : > { %v2081_v51 = vadd.f32 1e-05, %v2080_v49 }
 0x48e   : > { %v1669_v45 = vpop.f32.mrf.mxu0 }
 0x490   : > { %v3402_v46 = vpop.f32.mrf.mxu0 }
 0x496   : > { %v1847_v48 = vpop.f32.mrf.mxu0 }
 0x497   : > { %3794 = vrcp.f32 %v1847_v48 }
 0x498   : > { %v3421_v50 = vpop.f32.mrf.mxu0  ;;  %3796 = vrsqrt.f32 %v2081_v51 }
 0x499   : > { %3798 = vrcp.f32 %v1669_v45 }
 0x4a4   : > { %v3795_v52 = vpop.eup %3794 }
 0x4a5   : > { %v1852_v53 = vmul.f32 %v3795_v52, %v3793_v39  ;;  %v3797_v59 = vpop.eup %3796 }
 0x4a6   : > { %v3799_v61 = vpop.eup %3798  ;;  %v2083_v62 = vmul.f32 %v3797_v59, %v2075_v31 }
 0x4a7   : > { %v1853_v54 = vsel %vm1498_vm0, %v1852_v53, 0.0  ;;  %v1935_v55 = vpack.c.bf16 %v1852_v53, %v1852_v53  ;;  %v4830_v2 = vmul.f32 %v3799_v61, %v3791_v37 }
 0x4a8   : > { %v1854_v56 = vrot.slane %v1853_v54, 4  ;;  %v2090_v7 = vmul.f32 %v3242_v1, %v2083_v62 }
 0x4a9   : > { %1937 = vxpose.xlu1.c.b16.start.end [1/1] (short) (narrow) %v1935_v55, 32  ;;  %v4865_v41 = vpack.c.bf16 %v4830_v2, %v4830_v2 }
 0x4aa   : > { %v1855_v57 = vadd.f32 %v1854_v56, %v1853_v54  ;;  %v2097_v10 = vadd.f32 %v3243_v8, %v2090_v7 }
 0x4ac   : > { %v1856_v58 = vrot.slane %v1855_v57, 2  ;;  %v2102_v11 = vpack.c.bf16 %v2097_v10, %v2097_v10 }
 0x4ae   : > { %v1857_v60 = vadd.f32 %v1856_v58, %v1855_v57 }
 0x4b0   : > { %v1858_v63 = vrot.slane %v1857_v60, 1 }
 0x4b2   : > { %v1859_v3 = vadd.f32 %v1858_v63, %v1857_v60 }
 0x4b4   : > { %v1860_v6 = vmul.f32 %v1859_v3, %v4830_v2 }
 0x4b6   : > { %3431 = vmatmul.mubr.msk.f32.vlgmr.msra.gmra.mxu1 %vm1498_vm0, %v1860_v6 }
 0x4b7   : > { %3448 = vmatpush3.bf16.msra.mxu1 %v3768_v4  ;;  %3451 = vmatprep.mubr.msk.bf16.mxu1 %vm4354_vm2, %v4353_v5 }
 0x4b8   : > { %3449 = vmatprep.subr.bf16.mxu1 %v4353_v5 }
 0x4bb   : > { %3450 = vmatpush3.bf16.msra.mxu1 %v3769_v9 }
 0x4bc   : > { %3466 = vmatprep.subr.mxu1 %v4353_v5 }
 0x4be   : > { %3452 = vmatmul.mubr.msk.bf16.vlgmr.msra.gmra.mxu1 %vm1498_vm0, %v2102_v11 }
 0x4bf   : > { %3467 = vmatpush3.msra.mxu1 %v4784_v21  ;;  %3474 = vmatprep.mubr.msk.f32.mxu1 %vm4354_vm2, %v4353_v5 }
 0x4c0   : > { %3468 = vmatprep.subr.mxu1 %v4353_v5 }
 0x4c1   : > { %3469 = vmatpush3.msra.mxu1 %v4790_v22 }
 0x4c2   : > { %3470 = vmatprep.subr.mxu1 %v4353_v5 }
 0x4c3   : > { %3471 = vmatpush3.msra.mxu1 %v4795_v23 }
 0x4c4   : > { %3472 = vmatprep.subr.mxu1 %v4353_v5 }
 0x4c5   : > { %3473 = vmatpush3.msra.mxu1 %v4800_v24 }
 0x4c6   : > { %3483 = vmatprep.subr.bf16.mxu1 %v4353_v5 }
 0x50b   : > { %v1945_v12 = vpop.trf.xlu1 }
 0x50c   : > { %3435 = vmatprep.mubr.msk.bf16.mxu0 %vm1956_vm6, %v1945_v12 }
 0x50f   : > { %v1946_v13 = vpop.trf.xlu1 }
 0x510   : > { %3436 = vmatmul.mubr.msk.bf16.vlgmr.msra.gmra.mxu0 %vm1956_vm6, %v1946_v13  ;;  %v3770_v13 = vld [vmem:[#allocation18 + $0x8] sm:$0xff]  }
 0x511   : > { %3443 = vmatprep.mubr.msk.bf16.mxu0 %vm4354_vm2, %v4353_v5 }
 0x576   : > { %v1930_v14 = vpop.f32.mrf.mxu1 }
 0x578   : > { %v3432_v15 = vpop.f32.mrf.mxu1 }
 0x57e   : > { %v2159_v17 = vpop.f32.mrf.mxu1 }
 0x57f   : > { %v2160_v18 = vadd.f32 %v3244_v16, %v2159_v17 }
 0x580   : > { %v3453_v19 = vpop.f32.mrf.mxu1 }
 0x581   : > { %v2165_v20 = vsel %vm1498_vm0, %v2160_v18, -inf  ;;  %v2329_v25 = vpack.c.bf16 %v2160_v18, %v2160_v18 }
 0x582   : > { %2166 = vmax.xlane.f32.xlu0 %v2165_v20  ;;  %v2162_v26 = vpop.f32.mrf.mxu1 }
 0x583   : > { %2347 = vrot.lane.b32.xlu1 %v2329_v25, %s4355_s4 }
 0x584   : > { %v3454_v27 = vpop.f32.mrf.mxu1 }
 0x5a7   : > { %1486 = vmax.xlane.f32.xlu1 %v1485_v30 }
 0x5d0   : > { %v3437_v31 = vpop.f32.mrf.mxu0 }
 0x5d1   : > { %v2018_v33 = vmul.f32 %v3437_v31, %v4790_v22 }
 0x5d2   : > { %v2001_v32 = vpop.f32.mrf.mxu0 }
 0x5d3   : > { %v2016_v35 = vmul.f32 %v2001_v32, %v4800_v24 }
 0x5d4   : > { %v3438_v34 = vpop.f32.mrf.mxu0 }
 0x5d5   : > { %v2019_v36 = vmul.f32 %v3438_v34, %v4784_v21 }
 0x5d6   : > { %v2004_v37 = vpop.f32.mrf.mxu0 }
 0x5d7   : > { %v2021_v38 = vpack.c.bf16 %v2019_v36, %v2018_v33  ;;  %v2017_v39 = vmul.f32 %v2004_v37, %v4795_v23  ;;  %v2524_v37 = vld [vmem:[%s5014_s2] sm:$0x3] }
 0x5d9   : > { %v2020_v40 = vpack.c.bf16 %v2017_v39, %v2016_v35  ;;  %3440 = vmatpush3.bf16.msra.mxu0 %v2021_v38 }
 0x5da   : > { %3441 = vmatprep.subr.bf16.mxu0 %v4353_v5 }
 0x5dd   : > { %3442 = vmatpush3.bf16.msra.mxu0 %v2020_v40  ;;  %v2688_v40 = vld [vmem:[#allocation24] sm:$0x3] }
 0x5de   : > { %3455 = vmatprep.subr.mxu0 %v4353_v5 }
 0x5e0   : > { %3444 = vmatmul.mubr.msk.bf16.vlgmr.msra.gmra.mxu0 %vm1498_vm0, %v4865_v41 }
 0x5e1   : > { %3456 = vmatpush3.msra.mxu0 %v4784_v21  ;;  %3463 = vmatprep.mubr.msk.f32.mxu0 %vm4354_vm2, %v4353_v5 }
 0x5e2   : > { %3457 = vmatprep.subr.mxu0 %v4353_v5 }
 0x5e3   : > { %3458 = vmatpush3.msra.mxu0 %v4790_v22 }
 0x5e4   : > { %3459 = vmatprep.subr.mxu0 %v4353_v5 }
 0x5e5   : > { %3460 = vmatpush3.msra.mxu0 %v4795_v23 }
 0x5e6   : > { %3461 = vmatprep.subr.mxu0 %v4353_v5 }
 0x5e7   : > { %3462 = vmatpush3.msra.mxu0 %v4800_v24 }
 0x5f5   : > { %v2348_v42 = vpop.permute.xlu1 %2347 }
 0x5f6   : > { %3538 = vmatprep.subr.msk.bf16.mxu0 %vm1963_vm5, %v2348_v42  ;;  %v2356_v47 = vsel %vm1963_vm5, %v2348_v42, 0 }
 0x60b   : > { %v2167_v43 = vpop.xlane.xlu0 %2166 }
 0x60c   : > { %v2168_v44 = vsub.f32 %v2160_v18, %v2167_v43  ;;  %v3256_v43 = vld [vmem:[#allocation19] ss:$0 sm:$0xff] }
 0x60e   : > { %v2169_v45 = vmul.f32 1.442695, %v2168_v44 }
 0x610   : > { %3800 = vpow2.f32 %v2169_v45 }
 0x61d   : > { %v3801_v46 = vpop.eup %3800 }
 0x61e   : > { %3464 = vmatmul.mubr.msk.f32.vlgmr.msra.gmra.mxu0 %vm1498_vm0, %v3801_v46 }
 0x61f   : > { %3478 = vmatpush3.bf16.msra.mxu0 %v2356_v47 }
 0x620   : > { %3491 = vmatprep.subr.bf16.mxu0 %v4353_v5 }
 0x630   : > { %v1487_v48 = vpop.xlane.xlu1 %1486 }
 0x631   : > { %v1488_v49 = vsub.f32 %v1480_v29, %v1487_v48  ;;  %v3774_v48 = vld [vmem:[%s5015_s1 + $0x38] sm:$0xff]  }
 0x633   : > { %v1489_v50 = vmul.f32 1.442695, %v1488_v49 }
 0x635   : > { %3802 = vpow2.f32 %v1489_v50 }
 0x636   : > { %3804 = vrcp.f32 %v1930_v14 }
 0x642   : > { %v4883_v51 = vpop.eup %3802 }
 0x643   : > { %v1491_v52 = vsel %vm1268_vm3, %v4883_v51, 0.0  ;;  %v3805_v53 = vpop.eup %3804 }
 0x644   : > { %1492 = vadd.xlane.f32.xlu1 %v1491_v52  ;;  %v3775_v52 = vld [vmem:[%s5015_s1 + $0x30] sm:$0xff]  }
 0x6a0   : > { %v2060_v54 = vpop.f32.mrf.mxu0 }
 0x6a1   : > { %v2066_v55 = vmul.f32 %v3805_v53, %v2060_v54  ;;  %v3776_v54 = vld [vmem:[%s5015_s1 + $0x28] sm:$0xff]  }
 0x6a2   : > { %v3445_v56 = vpop.f32.mrf.mxu0 }
 0x6a3   : > { %v2067_v31 = vadd.f32 %v2066_v55, %v4830_v2  ;;  %v3777_v56 = vld [vmem:[%s5015_s1 + $0x20] sm:$0xff]  }
 0x6a4   : > { %v2063_v57 = vpop.f32.mrf.mxu0 }
 0x6a5   : > { %v3778_v57 = vld [vmem:[%s5015_s1 + $0x18] sm:$0xff]  }
 0x6a6   : > { %v3446_v58 = vpop.f32.mrf.mxu0 }
 0x6a7   : > { %v3779_v58 = vld [vmem:[%s5015_s1 + $0x10] sm:$0xff]  }
 0x6de   : > { %v2240_v59 = vpop.f32.mrf.mxu0 }
 0x6df   : > { %3806 = vrcp.f32 %v2240_v59  ;;  %v3780_v59 = vld [vmem:[%s5015_s1 + $0x8] sm:$0xff]  }
 0x6e0   : > { %v3465_v60 = vpop.f32.mrf.mxu0 }
 0x6e1   : > { %v3781_v60 = vld [vmem:[%s5015_s1] sm:$0xff]  }
 0x6ec   : > { %v3807_v61 = vpop.eup %3806 }
 0x6ed   : > { %v2245_v62 = vmul.f32 %v3807_v61, %v3801_v46  ;;  %v3257_v61 = vld [vmem:[#allocation22] ss:$0 sm:$0xff] }
 0x6ef   : > { %v2328_v63 = vpack.c.bf16 %v2245_v62, %v2245_v62  ;;  %v2246_v1 = vsel %vm1498_vm0, %v2245_v62, 0.0 }
 0x6f0   : > { %v2247_v3 = vrot.slane %v2246_v1, 4 }
 0x6f1   : > { %2330 = vxpose.xlu0.c.b16.start.end [1/1] (short) (narrow) %v2328_v63, 32 }
 0x6f2   : > { %v2248_v4 = vadd.f32 %v2247_v3, %v2246_v1 }
 0x6f4   : > { %v2249_v6 = vrot.slane %v2248_v4, 2 }
 0x6f6   : > { %v2250_v7 = vadd.f32 %v2249_v6, %v2248_v4 }
 0x6f8   : > { %v2251_v8 = vrot.slane %v2250_v7, 1 }
 0x6fa   : > { %v2252_v9 = vadd.f32 %v2251_v8, %v2250_v7 }
 0x6fc   : > { %v2253_v10 = vmul.f32 %v2252_v9, %v4830_v2 }
 0x6fe   : > { %3475 = vmatmul.mubr.msk.f32.vlgmr.msra.gmra.mxu1 %vm1498_vm0, %v2253_v10 }
 0x6ff   : > { %3487 = vmatprep.mubr.msk.bf16.mxu1 %vm4354_vm2, %v4353_v5 }
 0x753   : > { %v2338_v11 = vpop.trf.xlu0 }
 0x754   : > { %3479 = vmatprep.mubr.msk.bf16.mxu0 %vm1956_vm6, %v2338_v11 }
 0x757   : > { %v2339_v12 = vpop.trf.xlu0 }
 0x758   : > { %3480 = vmatmul.mubr.msk.bf16.vlgmr.msra.gmra.mxu0 %vm1956_vm6, %v2339_v12 }
 0x759   : > { %3495 = vmatprep.mubr.msk.bf16.mxu0 %vm4354_vm2, %v4353_v5  ;;  %3492 = vmatpush3.bf16.msra.mxu0 %v3770_v13 }
 0x75a   : > { %3493 = vmatprep.subr.bf16.mxu0 %v4353_v5 }
 0x7be   : > { %v2323_v14 = vpop.f32.mrf.mxu1 }
 0x7bf   : > { %3808 = vrcp.f32 %v2323_v14 }
 0x7c0   : > { %v3476_v15 = vpop.f32.mrf.mxu1 }
 0x818   : > { %v3481_v16 = vpop.f32.mrf.mxu0 }
 0x819   : > { %v2409_v19 = vmul.f32 %v3481_v16, %v4790_v22  ;;  %v3772_v22 = vld [vmem:[#allocation21 + $0x8] sm:$0xff]  }
 0x81a   : > { %v2392_v17 = vpop.f32.mrf.mxu0 }
 0x81b   : > { %v2407_v28 = vmul.f32 %v2392_v17, %v4800_v24  ;;  %v3809_v24 = vpop.eup %3808 }
 0x81c   : > { %v3482_v18 = vpop.f32.mrf.mxu0 }
 0x81d   : > { %v2410_v20 = vmul.f32 %v3482_v18, %v4784_v21  ;;  %v3771_v21 = vld [vmem:[#allocation18] sm:$0xff]  }
 0x81e   : > { %v2395_v25 = vpop.f32.mrf.mxu0  ;;  %3494 = vmatpush3.bf16.msra.mxu0 %v3771_v21 }
 0x81f   : > { %v2412_v26 = vpack.c.bf16 %v2410_v20, %v2409_v19  ;;  %v2408_v27 = vmul.f32 %v2395_v25, %v4795_v23  ;;  %3507 = vmatprep.subr.mxu0 %v4353_v5  ;;  %v1493_v23 = vpop.xlane.xlu1 %1492 }
 0x820   : > { %3810 = vrcp.f32 %v1493_v23 }
 0x821   : > { %3484 = vmatpush3.bf16.msra.mxu1 %v2412_v26  ;;  %v2411_v29 = vpack.c.bf16 %v2408_v27, %v2407_v28  ;;  %v3273_v27 = vld [vmem:[#allocation25] ss:$0 sm:$0xff] }
 0x822   : > { %3485 = vmatprep.subr.bf16.mxu1 %v4353_v5 }
 0x825   : > { %3486 = vmatpush3.bf16.msra.mxu1 %v2411_v29  ;;  %v3274_v29 = vld [vmem:[#allocation27] ss:$0 sm:$0xff] }
 0x826   : > { %3499 = vmatprep.subr.bf16.mxu1 %v4353_v5 }
 0x828   : > { %3488 = vmatmul.mubr.msk.bf16.vlgmr.msra.gmra.mxu1 %vm1498_vm0, %v4865_v41  ;;  %v3773_v41 = vld [vmem:[#allocation21] sm:$0xff]  }
 0x829   : > { %3503 = vmatprep.mubr.msk.bf16.mxu1 %vm4354_vm2, %v4353_v5  ;;  %3500 = vmatpush3.bf16.msra.mxu1 %v3772_v22 }
 0x82a   : > { %3501 = vmatprep.subr.bf16.mxu1 %v4353_v5 }
 0x82d   : > { %v3811_v39 = vpop.eup %3810  ;;  %3502 = vmatpush3.bf16.msra.mxu1 %v3773_v41 }
 0x82e   : > { %v1495_v2 = vmul.f32 %v3811_v39, %v4883_v51  ;;  %3517 = vmatprep.subr.bf16.mxu1 %v4353_v5 }
 0x8e8   : > { %v2447_v30 = vpop.f32.mrf.mxu1 }
 0x8e9   : > { %v2453_v32 = vmul.f32 %v3809_v24, %v2447_v30 }
 0x8ea   : > { %v3489_v33 = vpop.f32.mrf.mxu1 }
 0x8eb   : > { %v2454_v34 = vadd.f32 %v2453_v32, %v2067_v31 }
 0x8ec   : > { %v2450_v35 = vpop.f32.mrf.mxu1 }
 0x8ed   : > { %v2459_v36 = vpack.c.bf16 %v2454_v34, %v2454_v34 }
 0x8ee   : > { %v3490_v38 = vpop.f32.mrf.mxu1 }
 0x8ef   : > { %3496 = vmatmul.mubr.msk.bf16.vlgmr.msra.gmra.mxu0 %vm1498_vm0, %v2459_v36 }
 0x8f0   : > { %3508 = vmatpush3.msk.msra.mxu0 %vm2596_vm7, %v2524_v37  ;;  %3509 = vmatprep.mubr.msk.f32.mxu0 %vm4354_vm2, %v4353_v5 }
 0x8f1   : > { %3512 = vmatprep.subr.mxu0 %v4353_v5 }
 0x8f7   : > { %3510 = vmatmul.mubr.msk.f32.vlgmr.msra.gmra.mxu0 %vm1268_vm3, %v1495_v2 }
 0x8f8   : > { %3513 = vmatpush3.msk.msra.mxu0 %vm2596_vm7, %v2688_v40  ;;  %3514 = vmatprep.mubr.msk.f32.mxu0 %vm4354_vm2, %v4353_v5 }
 0x8fb   : > { %3515 = vmatmul.mubr.msk.f32.vlgmr.msra.gmra.mxu0 %vm1268_vm3, %v1495_v2 }
 0x9af   : > { %v2509_v42 = vpop.f32.mrf.mxu0 }
 0x9b0   : > { %v2515_v44 = vadd.f32 %v2509_v42, %v4719_v0 }
 0x9b1   : > { %v3497_v45 = vpop.f32.mrf.mxu0 }
 0x9b2   : > { %v4922_v46 = vadd.f32 %v3256_v43, %v2515_v44 }
 0x9b3   : > { %v2512_v47 = vpop.f32.mrf.mxu0 }
 0x9b4   : > { %v2529_v49 = vpack.c.bf16 %v4922_v46, %v4922_v46 }
 0x9b5   : > { %v3498_v50 = vpop.f32.mrf.mxu0 }
 0x9b6   : > { %3504 = vmatmul.mubr.msk.bf16.vlgmr.msra.gmra.mxu1 %vm1498_vm0, %v2529_v49 }
 0x9b7   : > { %v2666_v51 = vpop.f32.mrf.mxu0  ;;  %3518 = vmatpush3.bf16.msra.mxu1 %v3774_v48  ;;  %3533 = vmatprep.mubr.msk.bf16.mxu1 %vm4354_vm2, %v4353_v5 }
 0x9b8   : > { %3519 = vmatprep.subr.bf16.mxu1 %v4353_v5 }
 0x9b9   : > { %v3511_v0 = vpop.f32.mrf.mxu0 }
 0x9bb   : > { %v2758_v53 = vpop.f32.mrf.mxu0  ;;  %3520 = vmatpush3.bf16.msra.mxu1 %v3775_v52 }
 0x9bc   : > { %3521 = vmatprep.subr.bf16.mxu1 %v4353_v5 }
 0x9bd   : > { %v3516_v55 = vpop.f32.mrf.mxu0 }
 0x9bf   : > { %3522 = vmatpush3.bf16.msra.mxu1 %v3776_v54 }
 0x9c0   : > { %3523 = vmatprep.subr.bf16.mxu1 %v4353_v5 }
 0x9c3   : > { %3524 = vmatpush3.bf16.msra.mxu1 %v3777_v56 }
 0x9c4   : > { %3525 = vmatprep.subr.bf16.mxu1 %v4353_v5 }
 0x9c7   : > { %3526 = vmatpush3.bf16.msra.mxu1 %v3778_v57 }
 0x9c8   : > { %3527 = vmatprep.subr.bf16.mxu1 %v4353_v5 }
 0x9cb   : > { %3528 = vmatpush3.bf16.msra.mxu1 %v3779_v58 }
 0x9cc   : > { %3529 = vmatprep.subr.bf16.mxu1 %v4353_v5 }
 0x9cf   : > { %3530 = vmatpush3.bf16.msra.mxu1 %v3780_v59 }
 0x9d0   : > { %3531 = vmatprep.subr.bf16.mxu1 %v4353_v5 }
 0x9d3   : > { %3532 = vmatpush3.bf16.msra.mxu1 %v3781_v60 }
 0xa76   : > { %v2586_v62 = vpop.f32.mrf.mxu1 }
 0xa77   : > { %v2587_v63 = vadd.f32 %v3257_v61, %v2586_v62 }
 0xa78   : > { %v3505_v1 = vpop.f32.mrf.mxu1 }
 0xa79   : > { %3812 = vtanh.f32 %v2587_v63 }
 0xa7a   : > { %v2589_v3 = vpop.f32.mrf.mxu1 }
 0xa7c   : > { %v3506_v4 = vpop.f32.mrf.mxu1 }
 0xa86   : > { %v3813_v6 = vpop.eup %3812 }
 0xa87   : > { %v2670_v7 = vmul.f32 %v3813_v6, %v2666_v51 }
 0xa89   : > { %v2687_v8 = vpack.c.bf16 %v2670_v7, %v2670_v7 }
 0xa8b   : > { %3534 = vmatmul.mubr.bf16.vlgmr.msra.gmra.mxu1 %v2687_v8 }
 0xb4b   : > { %v2844_v9 = vpop.f32.mrf.mxu1 }
 0xb4c   : > { %v2845_v10 = vadd.f32 %v2844_v9, %v2758_v53 }
 0xb4d   : > { %v3535_v11 = vpop.f32.mrf.mxu1 }
 0xb4e   : > { %v2852_v12 = vsel %vm1498_vm0, %v2845_v10, 0.0 }
 0xb4f   : > { %2853 = vadd.xlane.f32.xlu1 %v2852_v12  ;;  %v2847_v13 = vpop.f32.mrf.mxu1 }
 0xb51   : > { %v3536_v5 = vpop.f32.mrf.mxu1 }
 0xbd8   : > { %v2854_v14 = vpop.xlane.xlu1 %2853 }
 0xbd9   : > { %v2855_v15 = vmul.f32 0.03125, %v2854_v14 }
 0xbdb   : > { %v2856_v16 = vsub.f32 %v2845_v10, %v2855_v15 }
 0xbdd   : > { %v2857_v17 = vmul.f32 %v2856_v16, %v2856_v16 }
 0xbdf   : > { %v2858_v18 = vsel %vm1498_vm0, %v2857_v17, 0.0 }
 0xbe0   : > { %2859 = vadd.xlane.f32.xlu1 %v2858_v18 }
 0xc69   : > { %v2860_v19 = vpop.xlane.xlu1 %2859 }
 0xc6a   : > { %v2861_v20 = vmul.f32 0.03125, %v2860_v19 }
 0xc6c   : > { %v2862_v25 = vadd.f32 1e-05, %v2861_v20 }
 0xc6e   : > { %3814 = vrsqrt.f32 %v2862_v25 }
 0xc7b   : > { %v3815_v26 = vpop.eup %3814 }
 0xc7c   : > { %v2864_v28 = vmul.f32 %v3815_v26, %v2856_v16 }
 0xc7e   : > { %v2871_v21 = vmul.f32 %v3273_v27, %v2864_v28 }
 0xc80   : > { %v2878_v22 = vadd.f32 %v3274_v29, %v2871_v21 }
 0xc82   : > { %v2879_v23 = vadd.f32 %v2878_v22, %v4922_v46 }
 0xc84   : > { %2880 = vst.msk [vmem:[%s1251_s7] sm:$0xff] %vm1498_vm0, %v2879_v23 }
 0xc85 PF: > { %s84_s28 = sadd.s32 1, %s4300_s28  }
 0xc86   : > { %p81_p5 = scmp.ge.s32.totalorder %s84_s28, 4  }
 0xc88   :  { %83 = sbr.rel (!%p81_p5) target bundleno = 61 (0x3d), region = 288 }
 0xc8d   :  { %2900 = vsyncpa [#allocation3], 1 }
 0xc8e   :  { %2902 = vsyncpa [#allocation3 + $0x1], 1 }
 0xc8f   :  { %2903 = vsyncpa [#allocation5], 1 }
 0xc90   :  { %2904 = vsyncpa [#allocation8], 1 }
 0xc91   :  { %2905 = vsyncpa [#allocation11], 1 }
 0xc92   :  { %2906 = vsyncpa [#allocation14], 1 }
 0xc93   :  { %2907 = vsyncpa [#allocation17], 1 }
 0xc94   :  { %2908 = vsyncpa [#allocation20], 1 }
 0xc95   :  { %2909 = vsyncpa [#allocation23], 1 }
 0xc96   :  { %2910 = vsyncpa [#allocation26], 1 }

</bundles_post_ra>
